<compile_context>
chip_gen: v5e
topology: v5e:2x2
jax: 0.10.0
libtpu: 0.0.40
codegen_flags: <defaults>
</compile_context>

<pallas_src>
import numpy as np
import jax
import jax.numpy as jnp
from jax import lax
from jax.experimental import pallas as pl
from jax.experimental.pallas import tpu as pltpu


def _round_up(a, m):
    return (a + m - 1) // m * m


def _gelu_tanh(x):
    # tanh-form GELU (hits the EUP); |err| vs exact erf GELU ~1e-3, well inside
    # the bf16-matmul test tolerance.
    return 0.5 * x * (1.0 + jnp.tanh(0.7978845608028654 * (x + 0.044715 * x * x * x)))


def _softmax_last(x):
    m = jnp.max(x, axis=-1, keepdims=True)
    e = jnp.exp(x - m)
    # divide on the EUP slot instead of the VALU
    return e * pl.reciprocal(jnp.sum(e, axis=-1, keepdims=True), approx=True)


# ---------------------------------------------------------------------------
# Fused kernel: InstanceNorm -> (3 branches: conv3x3 -> GELU -> conv3x3 ->
# masked global-avg-pool) -> softmax/tanh gating -> out_gate -> t_gate1/2 ->
# conv_out residual -> prompt_trans.  One grid step == one batch element.
# ---------------------------------------------------------------------------
def _make_kernel(H, W, last_layer):
    Wp = _round_up(W + 2, 8)   # row pitch in the flat padded scratch
    doff = Wp + 8              # flat offset of pixel (0, 0) (sublane aligned)
    base = doff - Wp - 1       # flat start of tap (ky=0, kx=0) read slice
    Nout = H * Wp              # conv-output rows incl. the garbage gap columns
    N = H * W
    bf16 = jnp.bfloat16
    f32 = jnp.float32

    def kernel(*refs):
        if last_layer:
            (x_ref, skip_ref, cond_ref, w1_hbm, w2_hbm, b1_ref, b2_ref,
             wog_ref, bog_ref, wt1_ref, bt1_ref, wt2_ref, bt2_ref,
             wcox_ref, wcos_ref, bco_ref,
             xout_ref,
             pad1_ref, pad2_ref, w1_ref, w2_ref, dma_sem) = refs
            wpt_ref = bpt_ref = newc_ref = None
        else:
            (x_ref, skip_ref, cond_ref, w1_hbm, w2_hbm, b1_ref, b2_ref,
             wog_ref, bog_ref, wt1_ref, bt1_ref, wt2_ref, bt2_ref,
             wcox_ref, wcos_ref, bco_ref, wpt_ref, bpt_ref,
             xout_ref, newc_ref,
             pad1_ref, pad2_ref, w1_ref, w2_ref, dma_sem) = refs

        Cs = skip_ref.shape[1]
        Co = x_ref.shape[1]
        T = cond_ref.shape[1]
        D = cond_ref.shape[2]
        Hd = T * D

        # ---- one-time init.  The grid is sequential (dimension_semantics is
        # "arbitrary"), so program_id==0 runs first exactly once per core.
        # Invariant: only the data rows [doff + y*Wp, doff + y*Wp + W) of pad1
        # and the slab [doff, doff + Nout) of pad2 are ever rewritten; every
        # other element stays zero forever (it is the convs' zero padding).
        @pl.when(pl.program_id(0) == 0)
        def _init():
            pad1_ref[...] = jnp.zeros(pad1_ref.shape, bf16)
            pad2_ref[...] = jnp.zeros(pad2_ref.shape, bf16)
            # Grid-invariant conv weights: single-buffered VMEM copy (done once).
            c1 = pltpu.make_async_copy(w1_hbm, w1_ref, dma_sem.at[0])
            c2 = pltpu.make_async_copy(w2_hbm, w2_ref, dma_sem.at[1])
            c1.start()
            c2.start()
            c1.wait()
            c2.wait()

        x_cn = x_ref[0]                      # (Co, N) f32, channels-first
        skip_cn = skip_ref[0]                # (Cs, N) f32
        cond = cond_ref[0]                   # (T, D)  f32

        # ---- InstanceNorm2d (computed ONCE, shared by all three branches) ----
        mean = jnp.mean(skip_cn, axis=1, keepdims=True)
        var = jnp.mean(jnp.square(skip_cn - mean), axis=1, keepdims=True)
        normed = ((skip_cn - mean) * lax.rsqrt(var + 1e-5)).T.astype(bf16)   # (N, Cs)

        # stage into the flat padded scratch (left-aligned rows, pitch Wp)
        for y in range(H):
            pad1_ref[pl.ds(doff + y * Wp, W), :] = normed[y * W:(y + 1) * W, :]

        # 1 on real pixels, 0 on the inter-row gap columns
        col = lax.broadcasted_iota(jnp.int32, (Nout, 1), 0) % Wp
        mask = (col < W).astype(f32)

        # ---- conv3x3 #1 (3 branches fused along Cout): 9 accumulating dots ---
        acc1 = None
        for ky in range(3):
            for kx in range(3):
                lhs = pad1_ref[pl.ds(base + ky * Wp + kx, Nout), :]
                d = jnp.dot(lhs, w1_ref[ky * 3 + kx], preferred_element_type=f32)
                acc1 = d if acc1 is None else acc1 + d
        h1 = _gelu_tanh(acc1 + b1_ref[...]) * mask                 # (Nout, 3*Cs)

        # GELU(conv1) already has row pitch Wp -> ONE aligned store; the masked
        # gap columns double as conv2's zero padding.
        pad2_ref[pl.ds(doff, Nout), :] = h1.astype(bf16)

        # ---- conv3x3 #2 (block-diagonal over branches) + masked avg pool -----
        acc2 = None
        for ky in range(3):
            for kx in range(3):
                lhs = pad2_ref[pl.ds(base + ky * Wp + kx, Nout), :]
                d = jnp.dot(lhs, w2_ref[ky * 3 + kx], preferred_element_type=f32)
                acc2 = d if acc2 is None else acc2 + d
        pooled = (jnp.sum(acc2 * mask, axis=0, keepdims=True) * (1.0 / N)
                  + b2_ref[...])                                    # (1, 3*Hd)

        # ---- gating: softmax / softmax / tanh, condition update --------------
        fv = _softmax_last(pooled[:, 0:Hd].reshape(T, D))
        iv = _softmax_last(pooled[:, Hd:2 * Hd].reshape(T, D))
        cv = jnp.tanh(pooled[:, 2 * Hd:3 * Hd].reshape(T, D))
        upd = fv * cond + iv * cv                                   # (T, D)

        # out_gate: Linear(T*D -> c_emb) + Tanh
        o = jnp.tanh(jnp.dot(upd.reshape(1, Hd).astype(bf16), wog_ref[...],
                             preferred_element_type=f32) + bog_ref[...])   # (1, Ce)

        # ---- t_gate1 -> o-gate (folded into t_gate2's weights) -> t_gate2 ----
        hs = jnp.dot(wt1_ref[...], skip_cn.astype(bf16),
                     preferred_element_type=f32) + bt1_ref[...]             # (Ce, N)
        wt2_scaled = (wt2_ref[...].astype(f32) * o).astype(bf16)            # (Cs, Ce)
        hs = jnp.dot(wt2_scaled, hs.astype(bf16),
                     preferred_element_type=f32) + bt2_ref[...]             # (Cs, N)
        skip_new = skip_cn + hs

        # ---- conv_out over concat([x, skip], ch) as two dots + residual ------
        co = (jnp.dot(wcox_ref[...], x_cn.astype(bf16), preferred_element_type=f32)
              + jnp.dot(wcos_ref[...], skip_new.astype(bf16),
                        preferred_element_type=f32)
              + bco_ref[...])                                                # (Co, N)
        xout_ref[...] = (x_cn + co).reshape(1, Co, N)

        # ---- prompt_trans (skipped entirely for the last layer) --------------
        if not last_layer:
            nc = _gelu_tanh(jnp.dot(upd.astype(bf16), wpt_ref[...],
                                    preferred_element_type=f32) + bpt_ref[...])
            newc_ref[...] = nc.reshape(1, T, -1)

    return kernel


# ---------------------------------------------------------------------------
# Weight packing (trace-time, outside the kernel)
# ---------------------------------------------------------------------------
def _pack_params(p):
    """conv1 weights concatenated over Cout, conv2 block-diagonal, both as
    per-tap (9, Cin, Cout) bf16; the 1x1 / Linear weights of the channels-first
    tail are pre-transposed and their biases made columns."""
    Cs = p["filter_w1"].shape[2]
    Hd = p["filter_w2"].shape[3]
    bf16 = jnp.bfloat16

    w1 = jnp.concatenate([p["filter_w1"], p["info_w1"], p["content_w1"]], axis=3)
    b1 = jnp.concatenate([p["filter_b1"], p["info_b1"], p["content_b1"]], axis=1)

    z = jnp.zeros((3, 3, Cs, Hd), jnp.float32)
    w2 = jnp.concatenate([
        jnp.concatenate([p["filter_w2"], z, z], axis=3),
        jnp.concatenate([z, p["info_w2"], z], axis=3),
        jnp.concatenate([z, z, p["content_w2"]], axis=3)], axis=2)
    b2 = jnp.concatenate([p["filter_b2"], p["info_b2"], p["content_b2"]], axis=1)

    return {
        "w1": w1.reshape(9, Cs, 3 * Cs).astype(bf16), "b1": b1,
        "w2": w2.reshape(9, 3 * Cs, 3 * Hd).astype(bf16), "b2": b2,
        "wog": p["wog"].astype(bf16), "bog": p["bog"],
        "wt1t": p["wt1"].T.astype(bf16), "bt1c": p["bt1"].reshape(-1, 1),
        "wt2t": p["wt2"].T.astype(bf16), "bt2c": p["bt2"].reshape(-1, 1),
        "wcoxt": p["wco_x"].T.astype(bf16),
        "wcost": p["wco_s"].T.astype(bf16),
        "bcoc": p["bco"].reshape(-1, 1),
        "wpt": p["wpt"].astype(bf16), "bpt": p["bpt"],
    }


def _vmem_limit_bytes(H, W, Co, Cs, T, D, pk):
    """Rough per-step VMEM need (blocks x2 + scratch + value headroom)."""
    Wp = _round_up(W + 2, 8)
    Npad = (H + 2) * Wp + 16
    Nout = H * Wp
    n = H * W
    hd = T * D
    est = 2 * 4 * n * (2 * Co + Cs)                 # double-buffered f32 image blocks
    est += 8 * Npad * Cs                            # bf16 pad scratches (Cs + 3Cs)
    est += 2 * (pk["w1"].size + pk["w2"].size)      # single-buffered conv weights
    est += 6 * 4 * Nout * 3 * max(Cs, hd)           # f32 conv intermediates headroom
    est += 8 * 4 * n * max(Co, Cs)                  # tail intermediates headroom
    est += 8 << 20
    # TODO(synk): derive the cap from pltpu.get_tpu_info() and add row-band
    # tiling so large maps stay under it (v7x has only 64 MiB VMEM total).
    return int(min(max(est, 32 << 20), 48 << 20))


# ---------------------------------------------------------------------------
# pallas_call wrapper
# ---------------------------------------------------------------------------
def _fused_call(x_r, skip_r, cond, pk, H, W, last_layer):
    B, Co, N = x_r.shape
    Cs = skip_r.shape[1]
    T, D = cond.shape[1], cond.shape[2]
    Wp = _round_up(W + 2, 8)
    Npad = (H + 2) * Wp + 16

    def full(a):
        return pl.BlockSpec(a.shape, lambda b: (0,) * a.ndim)

    in_specs = [
        pl.BlockSpec((1, Co, N), lambda b: (b, 0, 0)),
        pl.BlockSpec((1, Cs, N), lambda b: (b, 0, 0)),
        pl.BlockSpec((1, T, D), lambda b: (b, 0, 0)),
        pl.BlockSpec(memory_space=pl.ANY),   # w1: stays in HBM, copied once
        pl.BlockSpec(memory_space=pl.ANY),   # w2: stays in HBM, copied once
    ]
    args = [x_r, skip_r, cond, pk["w1"], pk["w2"]]
    small = ["b1", "b2", "wog", "bog", "wt1t", "bt1c", "wt2t", "bt2c",
             "wcoxt", "wcost", "bcoc"]
    if not last_layer:
        small += ["wpt", "bpt"]
    for nme in small:
        in_specs.append(full(pk[nme]))
        args.append(pk[nme])

    scratch_shapes = [
        pltpu.VMEM((Npad, Cs), jnp.bfloat16),        # flat padded normed skip
        pltpu.VMEM((Npad, 3 * Cs), jnp.bfloat16),    # flat padded GELU(conv1)
        pltpu.VMEM(pk["w1"].shape, jnp.bfloat16),    # single-buffered conv1 w
        pltpu.VMEM(pk["w2"].shape, jnp.bfloat16),    # single-buffered conv2 w
        pltpu.SemaphoreType.DMA((2,)),
    ]

    if last_layer:
        out_specs = pl.BlockSpec((1, Co, N), lambda b: (b, 0, 0))
        out_shape = jax.ShapeDtypeStruct((B, Co, N), jnp.float32)
    else:
        Dh = pk["wpt"].shape[-1]
        out_specs = [pl.BlockSpec((1, Co, N), lambda b: (b, 0, 0)),
                     pl.BlockSpec((1, T, Dh), lambda b: (b, 0, 0))]
        out_shape = (jax.ShapeDtypeStruct((B, Co, N), jnp.float32),
                     jax.ShapeDtypeStruct((B, T, Dh), jnp.float32))

    grid_spec = pltpu.PrefetchScalarGridSpec(
        num_scalar_prefetch=0,
        grid=(B,),
        in_specs=in_specs,
        out_specs=out_specs,
        scratch_shapes=scratch_shapes,
    )
    return pl.pallas_call(
        _make_kernel(H, W, last_layer),
        out_shape=out_shape,
        grid_spec=grid_spec,
        compiler_params=pltpu.CompilerParams(
            # NOTE: must stay "arbitrary": the one-time scratch zero-init and
            # the one-time weight copy at program_id==0 rely on a sequential
            # grid.  TODO(synk): per-core init + band-parallel axis for v7x.
            dimension_semantics=("arbitrary",),
            vmem_limit_bytes=_vmem_limit_bytes(H, W, Co, Cs, T, D, pk),
        ),
    )(*args)


# ---------------------------------------------------------------------------
# Parameters & forward wrapper
# ---------------------------------------------------------------------------
def init_params(key, c_out, c_skip, prompt_len):
    c_emb = c_skip
    hidden = c_emb * prompt_len
    keys = jax.random.split(key, 32)
    it = iter(keys)

    def w(shape, scale=0.05):
        return (scale * jax.random.normal(next(it), shape)).astype(jnp.float32)

    p = {}
    for name in ("filter", "info", "content"):
        p[f"{name}_w1"] = w((3, 3, c_skip, c_skip))
        p[f"{name}_b1"] = w((1, c_skip))
        p[f"{name}_w2"] = w((3, 3, c_skip, hidden))
        p[f"{name}_b2"] = w((1, hidden))
    p["wog"] = w((hidden, c_emb)); p["bog"] = w((1, c_emb))
    p["wt1"] = w((c_skip, c_emb)); p["bt1"] = w((1, c_emb))
    p["wt2"] = w((c_emb, c_skip)); p["bt2"] = w((1, c_skip))
    p["wco_x"] = w((c_out, c_out)); p["wco_s"] = w((c_skip, c_out)); p["bco"] = w((1, c_out))
    p["wpt"] = w((c_emb, c_emb // 2)); p["bpt"] = w((1, c_emb // 2))
    return p


def task_feature_adapter(x_nchw, skip_nchw, condition, params,
                         prompt_len=1, last_layer=False):
    """x: (B, c_out, H, W), skip: (B, c_skip, H, W), condition: (B, T, D)."""
    del prompt_len  # implied by condition.shape[1]
    B, Co, H, W = x_nchw.shape
    Cs = skip_nchw.shape[1]
    # free reshapes -- no HBM transposes, the kernel is channels-first
    x_r = x_nchw.reshape(B, Co, H * W).astype(jnp.float32)
    skip_r = skip_nchw.reshape(B, Cs, H * W).astype(jnp.float32)
    pk = _pack_params(params)
    cond = condition.astype(jnp.float32)
    if last_layer:
        x_out = _fused_call(x_r, skip_r, cond, pk, H, W, True)
        new_cond = None
    else:
        x_out, new_cond = _fused_call(x_r, skip_r, cond, pk, H, W, False)
    return x_out.reshape(B, Co, H, W), new_cond


# ---------------------------------------------------------------------------
# Pure-JAX reference (for correctness check)
# ---------------------------------------------------------------------------
def ref_forward(x_nchw, skip_nchw, condition, p, prompt_len=1):
    x = jnp.transpose(x_nchw, (0, 2, 3, 1)).astype(jnp.float32)
    skip = jnp.transpose(skip_nchw, (0, 2, 3, 1)).astype(jnp.float32)
    B = skip.shape[0]

    def conv3(a, w, b):
        y = lax.conv_general_dilated(a, w, (1, 1), "SAME",
                                     dimension_numbers=("NHWC", "HWIO", "NHWC"))
        return y + b.reshape(1, 1, 1, -1)

    def branch(w1, b1, w2, b2):
        m = skip.mean(axis=(1, 2), keepdims=True)
        v = ((skip - m) ** 2).mean(axis=(1, 2), keepdims=True)
        n = (skip - m) / jnp.sqrt(v + 1e-5)
        h = jax.nn.gelu(conv3(n, w1, b1), approximate=False)
        h = conv3(h, w2, b2)
        return h.mean(axis=(1, 2))

    fv = jax.nn.softmax(branch(p["filter_w1"], p["filter_b1"], p["filter_w2"],
                               p["filter_b2"]).reshape(B, prompt_len, -1), axis=-1)
    iv = jax.nn.softmax(branch(p["info_w1"], p["info_b1"], p["info_w2"],
                               p["info_b2"]).reshape(B, prompt_len, -1), axis=-1)
    cv = jnp.tanh(branch(p["content_w1"], p["content_b1"], p["content_w2"],
                         p["content_b2"]).reshape(B, prompt_len, -1))
    upd = fv * condition + iv * cv
    cw = upd.reshape(B, -1)
    o = jnp.tanh(cw @ p["wog"] + p["bog"])
    hs = skip @ p["wt1"] + p["bt1"].reshape(1, 1, 1, -1)
    hs = o[:, None, None, :] * hs
    hs = hs @ p["wt2"] + p["bt2"].reshape(1, 1, 1, -1)
    skip2 = skip + hs
    xo = x + (x @ p["wco_x"] + skip2 @ p["wco_s"] + p["bco"].reshape(1, 1, 1, -1))
    newc = jax.nn.gelu(upd @ p["wpt"] + p["bpt"], approximate=False)
    return jnp.transpose(xo, (0, 3, 1, 2)), newc


if __name__ == "__main__":
    B, H, W = 2, 8, 8
    c_out, c_skip, prompt_len = 32, 16, 1

    key = jax.random.PRNGKey(0)
    kx, ks, kc, kp = jax.random.split(key, 4)
    x = jax.random.normal(kx, (B, c_out, H, W), jnp.float32)
    skip = jax.random.normal(ks, (B, c_skip, H, W), jnp.float32)
    condition = jax.random.normal(kc, (B, prompt_len, c_skip), jnp.float32)
    params = init_params(kp, c_out, c_skip, prompt_len)

    x_out, new_cond = task_feature_adapter(x, skip, condition, params,
                                           prompt_len=prompt_len, last_layer=False)
    jax.block_until_ready((x_out, new_cond))

    # tolerance accounts for bf16 MXU operands (f32 accumulate) and tanh-GELU
    x_ref, nc_ref = ref_forward(x, skip, condition, params, prompt_len)
    np.testing.assert_allclose(np.asarray(x_out), np.asarray(x_ref),
                               atol=3e-2, rtol=3e-2)
    np.testing.assert_allclose(np.asarray(new_cond), np.asarray(nc_ref),
                               atol=3e-2, rtol=3e-2)
    print("KERNEL_OK")
</pallas_src>

<mosaic_0001>
module attributes {stable_mosaic.version = 11 : i64} {
  func.func @kernel(%arg0: i32, %arg1: memref<1x32x64xf32, #tpu.memory_space<vmem>>, %arg2: memref<1x16x64xf32, #tpu.memory_space<vmem>>, %arg3: memref<1x1x16xf32, #tpu.memory_space<vmem>>, %arg4: memref<9x16x48xbf16, #tpu.memory_space<any>>, %arg5: memref<9x48x48xbf16, #tpu.memory_space<any>>, %arg6: memref<1x48xf32, #tpu.memory_space<vmem>>, %arg7: memref<1x48xf32, #tpu.memory_space<vmem>>, %arg8: memref<16x16xbf16, #tpu.memory_space<vmem>>, %arg9: memref<1x16xf32, #tpu.memory_space<vmem>>, %arg10: memref<16x16xbf16, #tpu.memory_space<vmem>>, %arg11: memref<16x1xf32, #tpu.memory_space<vmem>>, %arg12: memref<16x16xbf16, #tpu.memory_space<vmem>>, %arg13: memref<16x1xf32, #tpu.memory_space<vmem>>, %arg14: memref<32x32xbf16, #tpu.memory_space<vmem>>, %arg15: memref<32x16xbf16, #tpu.memory_space<vmem>>, %arg16: memref<32x1xf32, #tpu.memory_space<vmem>>, %arg17: memref<16x8xbf16, #tpu.memory_space<vmem>>, %arg18: memref<1x8xf32, #tpu.memory_space<vmem>>, %arg19: memref<1x32x64xf32, #tpu.memory_space<vmem>>, %arg20: memref<1x1x8xf32, #tpu.memory_space<vmem>>, %arg21: memref<176x16xbf16, #tpu.memory_space<vmem>>, %arg22: memref<176x48xbf16, #tpu.memory_space<vmem>>, %arg23: memref<9x16x48xbf16, #tpu.memory_space<vmem>>, %arg24: memref<9x48x48xbf16, #tpu.memory_space<vmem>>, %arg25: memref<2x!tpu.dma_semaphore, #tpu.memory_space<semaphore_mem>>) attributes {dimension_semantics = [#tpu.dimension_semantics<arbitrary>], iteration_bounds = array<i64: 2>, scalar_prefetch = 0 : i64, scratch_operands = 5 : i64, tpu.core_type = #tpu.core_type<tc>, window_params = [{transform_indices = @transform_0, window_bounds = array<i64: 1, 32, 64>}, {transform_indices = @transform_1, window_bounds = array<i64: 1, 16, 64>}, {transform_indices = @transform_2, window_bounds = array<i64: 1, 1, 16>}, {}, {}, {pipeline_mode = #tpu.pipeline_mode<synchronous>, transform_indices = @transform_5, window_bounds = array<i64: 1, 48>}, {pipeline_mode = #tpu.pipeline_mode<synchronous>, transform_indices = @transform_6, window_bounds = array<i64: 1, 48>}, {pipeline_mode = #tpu.pipeline_mode<synchronous>, transform_indices = @transform_7, window_bounds = array<i64: 16, 16>}, {pipeline_mode = #tpu.pipeline_mode<synchronous>, transform_indices = @transform_8, window_bounds = array<i64: 1, 16>}, {pipeline_mode = #tpu.pipeline_mode<synchronous>, transform_indices = @transform_9, window_bounds = array<i64: 16, 16>}, {pipeline_mode = #tpu.pipeline_mode<synchronous>, transform_indices = @transform_10, window_bounds = array<i64: 16, 1>}, {pipeline_mode = #tpu.pipeline_mode<synchronous>, transform_indices = @transform_11, window_bounds = array<i64: 16, 16>}, {pipeline_mode = #tpu.pipeline_mode<synchronous>, transform_indices = @transform_12, window_bounds = array<i64: 16, 1>}, {pipeline_mode = #tpu.pipeline_mode<synchronous>, transform_indices = @transform_13, window_bounds = array<i64: 32, 32>}, {pipeline_mode = #tpu.pipeline_mode<synchronous>, transform_indices = @transform_14, window_bounds = array<i64: 32, 16>}, {pipeline_mode = #tpu.pipeline_mode<synchronous>, transform_indices = @transform_15, window_bounds = array<i64: 32, 1>}, {pipeline_mode = #tpu.pipeline_mode<synchronous>, transform_indices = @transform_16, window_bounds = array<i64: 16, 8>}, {pipeline_mode = #tpu.pipeline_mode<synchronous>, transform_indices = @transform_17, window_bounds = array<i64: 1, 8>}, {transform_indices = @transform_18, window_bounds = array<i64: 1, 32, 64>}, {transform_indices = @transform_19, window_bounds = array<i64: 1, 1, 8>}]} {
    %c0_i32 = arith.constant 0 : i32
    %0 = arith.cmpi eq, %arg0, %c0_i32 : i32
    %1 = arith.extui %0 : i1 to i32
    %c0_i32_0 = arith.constant 0 : i32
    %2 = arith.cmpi ne, %1, %c0_i32_0 : i32
    scf.if %2 {
      %cst_174 = arith.constant 0.000000e+00 : bf16
      %265 = vector.broadcast %cst_174 : bf16 to vector<176x16xbf16>
      %c0_175 = arith.constant 0 : index
      %c0_176 = arith.constant 0 : index
      %266 = vector.load %arg21[%c0_175, %c0_176] : memref<176x16xbf16, #tpu.memory_space<vmem>>, vector<176x16xbf16>
      tpu.vector_store %arg21[%c0_175, %c0_176], %265 {strides = array<i32>} : memref<176x16xbf16, #tpu.memory_space<vmem>>, vector<176x16xbf16>,
      %cst_177 = arith.constant 0.000000e+00 : bf16
      %267 = vector.broadcast %cst_177 : bf16 to vector<176x48xbf16>
      %c0_178 = arith.constant 0 : index
      %c0_179 = arith.constant 0 : index
      %268 = vector.load %arg22[%c0_178, %c0_179] : memref<176x48xbf16, #tpu.memory_space<vmem>>, vector<176x48xbf16>
      tpu.vector_store %arg22[%c0_178, %c0_179], %267 {strides = array<i32>} : memref<176x48xbf16, #tpu.memory_space<vmem>>, vector<176x48xbf16>,
      %c0_i32_180 = arith.constant 0 : i32
      %269 = tpu.memref_slice %arg25[%c0_i32_180] : memref<2x!tpu.dma_semaphore, #tpu.memory_space<semaphore_mem>> -> memref<1x!tpu.dma_semaphore, #tpu.memory_space<semaphore_mem>>
      %270 = tpu.memref_squeeze %269 : memref<1x!tpu.dma_semaphore, #tpu.memory_space<semaphore_mem>> -> memref<!tpu.dma_semaphore, #tpu.memory_space<semaphore_mem>>
      tpu.enqueue_dma source(%arg4 : memref<9x16x48xbf16, #tpu.memory_space<any>>) target(%arg23 : memref<9x16x48xbf16, #tpu.memory_space<vmem>>) target_semaphore(%270 : memref<!tpu.dma_semaphore, #tpu.memory_space<semaphore_mem>>)
      %c1_i32_181 = arith.constant 1 : i32
      %271 = tpu.memref_slice %arg25[%c1_i32_181] : memref<2x!tpu.dma_semaphore, #tpu.memory_space<semaphore_mem>> -> memref<1x!tpu.dma_semaphore, #tpu.memory_space<semaphore_mem>>
      %272 = tpu.memref_squeeze %271 : memref<1x!tpu.dma_semaphore, #tpu.memory_space<semaphore_mem>> -> memref<!tpu.dma_semaphore, #tpu.memory_space<semaphore_mem>>
      tpu.enqueue_dma source(%arg5 : memref<9x48x48xbf16, #tpu.memory_space<any>>) target(%arg24 : memref<9x48x48xbf16, #tpu.memory_space<vmem>>) target_semaphore(%272 : memref<!tpu.dma_semaphore, #tpu.memory_space<semaphore_mem>>)
      %c0_i32_182 = arith.constant 0 : i32
      %273 = tpu.memref_slice %arg25[%c0_i32_182] : memref<2x!tpu.dma_semaphore, #tpu.memory_space<semaphore_mem>> -> memref<1x!tpu.dma_semaphore, #tpu.memory_space<semaphore_mem>>
      %274 = tpu.memref_squeeze %273 : memref<1x!tpu.dma_semaphore, #tpu.memory_space<semaphore_mem>> -> memref<!tpu.dma_semaphore, #tpu.memory_space<semaphore_mem>>
      tpu.wait_dma2 semaphore(%274 : memref<!tpu.dma_semaphore, #tpu.memory_space<semaphore_mem>>) src(%arg4 : memref<9x16x48xbf16, #tpu.memory_space<any>>) dst(%arg23 : memref<9x16x48xbf16, #tpu.memory_space<vmem>>)
      %c1_i32_183 = arith.constant 1 : i32
      %275 = tpu.memref_slice %arg25[%c1_i32_183] : memref<2x!tpu.dma_semaphore, #tpu.memory_space<semaphore_mem>> -> memref<1x!tpu.dma_semaphore, #tpu.memory_space<semaphore_mem>>
      %276 = tpu.memref_squeeze %275 : memref<1x!tpu.dma_semaphore, #tpu.memory_space<semaphore_mem>> -> memref<!tpu.dma_semaphore, #tpu.memory_space<semaphore_mem>>
      tpu.wait_dma2 semaphore(%276 : memref<!tpu.dma_semaphore, #tpu.memory_space<semaphore_mem>>) src(%arg5 : memref<9x48x48xbf16, #tpu.memory_space<any>>) dst(%arg24 : memref<9x48x48xbf16, #tpu.memory_space<vmem>>)
    } else {
    }
    %c0 = arith.constant 0 : index
    %c0_1 = arith.constant 0 : index
    %c0_2 = arith.constant 0 : index
    %3 = vector.load %arg1[%c0, %c0_1, %c0_2] : memref<1x32x64xf32, #tpu.memory_space<vmem>>, vector<1x32x64xf32>
    %4 = vector.shape_cast %3 : vector<1x32x64xf32> to vector<32x64xf32>
    %c0_3 = arith.constant 0 : index
    %c0_4 = arith.constant 0 : index
    %c0_5 = arith.constant 0 : index
    %5 = vector.load %arg2[%c0_3, %c0_4, %c0_5] : memref<1x16x64xf32, #tpu.memory_space<vmem>>, vector<1x16x64xf32>
    %6 = vector.shape_cast %5 : vector<1x16x64xf32> to vector<16x64xf32>
    %c0_6 = arith.constant 0 : index
    %c0_7 = arith.constant 0 : index
    %c0_8 = arith.constant 0 : index
    %7 = vector.load %arg3[%c0_6, %c0_7, %c0_8] : memref<1x1x16xf32, #tpu.memory_space<vmem>>, vector<1x1x16xf32>
    %8 = vector.shape_cast %7 : vector<1x1x16xf32> to vector<1x16xf32>
    %cst = arith.constant dense<0.000000e+00> : vector<16xf32>
    %9 = vector.multi_reduction <add>, %6, %cst [1] : vector<16x64xf32> to vector<16xf32>
    %10 = vector.shape_cast %9 : vector<16xf32> to vector<16x1xf32>
    %cst_9 = arith.constant 6.400000e+01 : f32
    %11 = vector.broadcast %cst_9 : f32 to vector<16x1xf32>
    %12 = arith.divf %10, %11 : vector<16x1xf32>
    %13 = vector.broadcast %12 : vector<16x1xf32> to vector<16x64xf32>
    %14 = arith.subf %6, %13 : vector<16x64xf32>
    %15 = arith.mulf %14, %14 : vector<16x64xf32>
    %cst_10 = arith.constant dense<0.000000e+00> : vector<16xf32>
    %16 = vector.multi_reduction <add>, %15, %cst_10 [1] : vector<16x64xf32> to vector<16xf32>
    %17 = vector.shape_cast %16 : vector<16xf32> to vector<16x1xf32>
    %cst_11 = arith.constant 6.400000e+01 : f32
    %18 = vector.broadcast %cst_11 : f32 to vector<16x1xf32>
    %19 = arith.divf %17, %18 : vector<16x1xf32>
    %20 = vector.broadcast %12 : vector<16x1xf32> to vector<16x64xf32>
    %21 = arith.subf %6, %20 : vector<16x64xf32>
    %cst_12 = arith.constant 9.99999974E-6 : f32
    %22 = vector.broadcast %cst_12 : f32 to vector<16x1xf32>
    %23 = arith.addf %19, %22 : vector<16x1xf32>
    %24 = math.rsqrt %23 : vector<16x1xf32>
    %25 = vector.broadcast %24 : vector<16x1xf32> to vector<16x64xf32>
    %26 = arith.mulf %21, %25 : vector<16x64xf32>
    %27 = tpu.transpose %26, [1, 0] : vector<16x64xf32> -> vector<64x16xf32>
    %28 = arith.truncf %27 : vector<64x16xf32> to vector<64x16xbf16>
    %29 = vector.extract_strided_slice %28 {offsets = [0, 0], sizes = [8, 16], strides = [1, 1]} : vector<64x16xbf16> to vector<8x16xbf16>
    %c24 = arith.constant 24 : index
    %c0_13 = arith.constant 0 : index
    %30 = vector.load %arg21[%c24, %c0_13] : memref<176x16xbf16, #tpu.memory_space<vmem>>, vector<8x16xbf16>
    tpu.vector_store %arg21[%c24, %c0_13], %29 {strides = array<i32>} : memref<176x16xbf16, #tpu.memory_space<vmem>>, vector<8x16xbf16>,
    %31 = vector.extract_strided_slice %28 {offsets = [8, 0], sizes = [8, 16], strides = [1, 1]} : vector<64x16xbf16> to vector<8x16xbf16>
    %c40 = arith.constant 40 : index
    %c0_14 = arith.constant 0 : index
    %32 = vector.load %arg21[%c40, %c0_14] : memref<176x16xbf16, #tpu.memory_space<vmem>>, vector<8x16xbf16>
    tpu.vector_store %arg21[%c40, %c0_14], %31 {strides = array<i32>} : memref<176x16xbf16, #tpu.memory_space<vmem>>, vector<8x16xbf16>,
    %33 = vector.extract_strided_slice %28 {offsets = [16, 0], sizes = [8, 16], strides = [1, 1]} : vector<64x16xbf16> to vector<8x16xbf16>
    %c56 = arith.constant 56 : index
    %c0_15 = arith.constant 0 : index
    %34 = vector.load %arg21[%c56, %c0_15] : memref<176x16xbf16, #tpu.memory_space<vmem>>, vector<8x16xbf16>
    tpu.vector_store %arg21[%c56, %c0_15], %33 {strides = array<i32>} : memref<176x16xbf16, #tpu.memory_space<vmem>>, vector<8x16xbf16>,
    %35 = vector.extract_strided_slice %28 {offsets = [24, 0], sizes = [8, 16], strides = [1, 1]} : vector<64x16xbf16> to vector<8x16xbf16>
    %c72 = arith.constant 72 : index
    %c0_16 = arith.constant 0 : index
    %36 = vector.load %arg21[%c72, %c0_16] : memref<176x16xbf16, #tpu.memory_space<vmem>>, vector<8x16xbf16>
    tpu.vector_store %arg21[%c72, %c0_16], %35 {strides = array<i32>} : memref<176x16xbf16, #tpu.memory_space<vmem>>, vector<8x16xbf16>,
    %37 = vector.extract_strided_slice %28 {offsets = [32, 0], sizes = [8, 16], strides = [1, 1]} : vector<64x16xbf16> to vector<8x16xbf16>
    %c88 = arith.constant 88 : index
    %c0_17 = arith.constant 0 : index
    %38 = vector.load %arg21[%c88, %c0_17] : memref<176x16xbf16, #tpu.memory_space<vmem>>, vector<8x16xbf16>
    tpu.vector_store %arg21[%c88, %c0_17], %37 {strides = array<i32>} : memref<176x16xbf16, #tpu.memory_space<vmem>>, vector<8x16xbf16>,
    %39 = vector.extract_strided_slice %28 {offsets = [40, 0], sizes = [8, 16], strides = [1, 1]} : vector<64x16xbf16> to vector<8x16xbf16>
    %c104 = arith.constant 104 : index
    %c0_18 = arith.constant 0 : index
    %40 = vector.load %arg21[%c104, %c0_18] : memref<176x16xbf16, #tpu.memory_space<vmem>>, vector<8x16xbf16>
    tpu.vector_store %arg21[%c104, %c0_18], %39 {strides = array<i32>} : memref<176x16xbf16, #tpu.memory_space<vmem>>, vector<8x16xbf16>,
    %41 = vector.extract_strided_slice %28 {offsets = [48, 0], sizes = [8, 16], strides = [1, 1]} : vector<64x16xbf16> to vector<8x16xbf16>
    %c120 = arith.constant 120 : index
    %c0_19 = arith.constant 0 : index
    %42 = vector.load %arg21[%c120, %c0_19] : memref<176x16xbf16, #tpu.memory_space<vmem>>, vector<8x16xbf16>
    tpu.vector_store %arg21[%c120, %c0_19], %41 {strides = array<i32>} : memref<176x16xbf16, #tpu.memory_space<vmem>>, vector<8x16xbf16>,
    %43 = vector.extract_strided_slice %28 {offsets = [56, 0], sizes = [8, 16], strides = [1, 1]} : vector<64x16xbf16> to vector<8x16xbf16>
    %c136 = arith.constant 136 : index
    %c0_20 = arith.constant 0 : index
    %44 = vector.load %arg21[%c136, %c0_20] : memref<176x16xbf16, #tpu.memory_space<vmem>>, vector<8x16xbf16>
    tpu.vector_store %arg21[%c136, %c0_20], %43 {strides = array<i32>} : memref<176x16xbf16, #tpu.memory_space<vmem>>, vector<8x16xbf16>,
    %45 = tpu.iota {dimensions = array<i32: 0>} : vector<128x1xi32>
    %c16_i32 = arith.constant 16 : i32
    %c0_i32_21 = arith.constant 0 : i32
    %46 = arith.cmpi eq, %c16_i32, %c0_i32_21 : i32
    %c1_i32 = arith.constant 1 : i32
    %47 = arith.select %46, %c1_i32, %c16_i32 : i32
    %48 = vector.broadcast %47 : i32 to vector<128x1xi32>
    %49 = arith.remsi %45, %48 : vector<128x1xi32>
    %c0_i32_22 = arith.constant 0 : i32
    %50 = vector.broadcast %c0_i32_22 : i32 to vector<128x1xi32>
    %51 = arith.cmpi ne, %49, %50 : vector<128x1xi32>
    %c0_i32_23 = arith.constant 0 : i32
    %52 = vector.broadcast %c0_i32_23 : i32 to vector<128x1xi32>
    %53 = arith.cmpi slt, %49, %52 : vector<128x1xi32>
    %c0_i32_24 = arith.constant 0 : i32
    %54 = arith.cmpi slt, %47, %c0_i32_24 : i32
    %55 = vector.broadcast %54 : i1 to vector<128x1xi1>
    %56 = vector.broadcast %55 : vector<128x1xi1> to vector<128x1xi1>
    %57 = arith.xori %53, %56 : vector<128x1xi1>
    %58 = arith.andi %57, %51 : vector<128x1xi1>
    %59 = vector.broadcast %47 : i32 to vector<128x1xi32>
    %60 = arith.addi %49, %59 : vector<128x1xi32>
    %61 = arith.select %58, %60, %49 : vector<128x1xi1>, vector<128x1xi32>
    %c8_i32 = arith.constant 8 : i32
    %62 = vector.broadcast %c8_i32 : i32 to vector<128x1xi32>
    %63 = arith.cmpi slt, %61, %62 : vector<128x1xi32>
    %64 = arith.extui %63 : vector<128x1xi1> to vector<128x1xi32>
    %65 = arith.sitofp %64 : vector<128x1xi32> to vector<128x1xf32>
    %c7 = arith.constant 7 : index
    %c0_25 = arith.constant 0 : index
    %66 = vector.load %arg21[%c7, %c0_25] : memref<176x16xbf16, #tpu.memory_space<vmem>>, vector<128x16xbf16>
    %c0_26 = arith.constant 0 : index
    %c0_27 = arith.constant 0 : index
    %c0_28 = arith.constant 0 : index
    %67 = vector.load %arg23[%c0_26, %c0_27, %c0_28] : memref<9x16x48xbf16, #tpu.memory_space<vmem>>, vector<1x16x48xbf16>
    %68 = vector.shape_cast %67 : vector<1x16x48xbf16> to vector<16x48xbf16>
    %cst_29 = arith.constant dense<0.000000e+00> : vector<128x48xf32>
    %69 = tpu.matmul %66, %68, %cst_29 {dimension_numbers = #tpu.dot_dimension_numbers<[1], [0], [0], [1], [0, 0, 1, 1], [], []>} : vector<128x16xbf16>, vector<16x48xbf16>, vector<128x48xf32> -> vector<128x48xf32>
    %c8 = arith.constant 8 : index
    %c0_30 = arith.constant 0 : index
    %70 = vector.load %arg21[%c8, %c0_30] : memref<176x16xbf16, #tpu.memory_space<vmem>>, vector<128x16xbf16>
    %c1 = arith.constant 1 : index
    %c0_31 = arith.constant 0 : index
    %c0_32 = arith.constant 0 : index
    %71 = vector.load %arg23[%c1, %c0_31, %c0_32] : memref<9x16x48xbf16, #tpu.memory_space<vmem>>, vector<1x16x48xbf16>
    %72 = vector.shape_cast %71 : vector<1x16x48xbf16> to vector<16x48xbf16>
    %cst_33 = arith.constant dense<0.000000e+00> : vector<128x48xf32>
    %73 = tpu.matmul %70, %72, %cst_33 {dimension_numbers = #tpu.dot_dimension_numbers<[1], [0], [0], [1], [0, 0, 1, 1], [], []>} : vector<128x16xbf16>, vector<16x48xbf16>, vector<128x48xf32> -> vector<128x48xf32>
    %74 = arith.addf %69, %73 : vector<128x48xf32>
    %c9 = arith.constant 9 : index
    %c0_34 = arith.constant 0 : index
    %75 = vector.load %arg21[%c9, %c0_34] : memref<176x16xbf16, #tpu.memory_space<vmem>>, vector<128x16xbf16>
    %c2 = arith.constant 2 : index
    %c0_35 = arith.constant 0 : index
    %c0_36 = arith.constant 0 : index
    %76 = vector.load %arg23[%c2, %c0_35, %c0_36] : memref<9x16x48xbf16, #tpu.memory_space<vmem>>, vector<1x16x48xbf16>
    %77 = vector.shape_cast %76 : vector<1x16x48xbf16> to vector<16x48xbf16>
    %cst_37 = arith.constant dense<0.000000e+00> : vector<128x48xf32>
    %78 = tpu.matmul %75, %77, %cst_37 {dimension_numbers = #tpu.dot_dimension_numbers<[1], [0], [0], [1], [0, 0, 1, 1], [], []>} : vector<128x16xbf16>, vector<16x48xbf16>, vector<128x48xf32> -> vector<128x48xf32>
    %79 = arith.addf %74, %78 : vector<128x48xf32>
    %c23 = arith.constant 23 : index
    %c0_38 = arith.constant 0 : index
    %80 = vector.load %arg21[%c23, %c0_38] : memref<176x16xbf16, #tpu.memory_space<vmem>>, vector<128x16xbf16>
    %c3 = arith.constant 3 : index
    %c0_39 = arith.constant 0 : index
    %c0_40 = arith.constant 0 : index
    %81 = vector.load %arg23[%c3, %c0_39, %c0_40] : memref<9x16x48xbf16, #tpu.memory_space<vmem>>, vector<1x16x48xbf16>
    %82 = vector.shape_cast %81 : vector<1x16x48xbf16> to vector<16x48xbf16>
    %cst_41 = arith.constant dense<0.000000e+00> : vector<128x48xf32>
    %83 = tpu.matmul %80, %82, %cst_41 {dimension_numbers = #tpu.dot_dimension_numbers<[1], [0], [0], [1], [0, 0, 1, 1], [], []>} : vector<128x16xbf16>, vector<16x48xbf16>, vector<128x48xf32> -> vector<128x48xf32>
    %84 = arith.addf %79, %83 : vector<128x48xf32>
    %c24_42 = arith.constant 24 : index
    %c0_43 = arith.constant 0 : index
    %85 = vector.load %arg21[%c24_42, %c0_43] : memref<176x16xbf16, #tpu.memory_space<vmem>>, vector<128x16xbf16>
    %c4 = arith.constant 4 : index
    %c0_44 = arith.constant 0 : index
    %c0_45 = arith.constant 0 : index
    %86 = vector.load %arg23[%c4, %c0_44, %c0_45] : memref<9x16x48xbf16, #tpu.memory_space<vmem>>, vector<1x16x48xbf16>
    %87 = vector.shape_cast %86 : vector<1x16x48xbf16> to vector<16x48xbf16>
    %cst_46 = arith.constant dense<0.000000e+00> : vector<128x48xf32>
    %88 = tpu.matmul %85, %87, %cst_46 {dimension_numbers = #tpu.dot_dimension_numbers<[1], [0], [0], [1], [0, 0, 1, 1], [], []>} : vector<128x16xbf16>, vector<16x48xbf16>, vector<128x48xf32> -> vector<128x48xf32>
    %89 = arith.addf %84, %88 : vector<128x48xf32>
    %c25 = arith.constant 25 : index
    %c0_47 = arith.constant 0 : index
    %90 = vector.load %arg21[%c25, %c0_47] : memref<176x16xbf16, #tpu.memory_space<vmem>>, vector<128x16xbf16>
    %c5 = arith.constant 5 : index
    %c0_48 = arith.constant 0 : index
    %c0_49 = arith.constant 0 : index
    %91 = vector.load %arg23[%c5, %c0_48, %c0_49] : memref<9x16x48xbf16, #tpu.memory_space<vmem>>, vector<1x16x48xbf16>
    %92 = vector.shape_cast %91 : vector<1x16x48xbf16> to vector<16x48xbf16>
    %cst_50 = arith.constant dense<0.000000e+00> : vector<128x48xf32>
    %93 = tpu.matmul %90, %92, %cst_50 {dimension_numbers = #tpu.dot_dimension_numbers<[1], [0], [0], [1], [0, 0, 1, 1], [], []>} : vector<128x16xbf16>, vector<16x48xbf16>, vector<128x48xf32> -> vector<128x48xf32>
    %94 = arith.addf %89, %93 : vector<128x48xf32>
    %c39 = arith.constant 39 : index
    %c0_51 = arith.constant 0 : index
    %95 = vector.load %arg21[%c39, %c0_51] : memref<176x16xbf16, #tpu.memory_space<vmem>>, vector<128x16xbf16>
    %c6 = arith.constant 6 : index
    %c0_52 = arith.constant 0 : index
    %c0_53 = arith.constant 0 : index
    %96 = vector.load %arg23[%c6, %c0_52, %c0_53] : memref<9x16x48xbf16, #tpu.memory_space<vmem>>, vector<1x16x48xbf16>
    %97 = vector.shape_cast %96 : vector<1x16x48xbf16> to vector<16x48xbf16>
    %cst_54 = arith.constant dense<0.000000e+00> : vector<128x48xf32>
    %98 = tpu.matmul %95, %97, %cst_54 {dimension_numbers = #tpu.dot_dimension_numbers<[1], [0], [0], [1], [0, 0, 1, 1], [], []>} : vector<128x16xbf16>, vector<16x48xbf16>, vector<128x48xf32> -> vector<128x48xf32>
    %99 = arith.addf %94, %98 : vector<128x48xf32>
    %c40_55 = arith.constant 40 : index
    %c0_56 = arith.constant 0 : index
    %100 = vector.load %arg21[%c40_55, %c0_56] : memref<176x16xbf16, #tpu.memory_space<vmem>>, vector<128x16xbf16>
    %c7_57 = arith.constant 7 : index
    %c0_58 = arith.constant 0 : index
    %c0_59 = arith.constant 0 : index
    %101 = vector.load %arg23[%c7_57, %c0_58, %c0_59] : memref<9x16x48xbf16, #tpu.memory_space<vmem>>, vector<1x16x48xbf16>
    %102 = vector.shape_cast %101 : vector<1x16x48xbf16> to vector<16x48xbf16>
    %cst_60 = arith.constant dense<0.000000e+00> : vector<128x48xf32>
    %103 = tpu.matmul %100, %102, %cst_60 {dimension_numbers = #tpu.dot_dimension_numbers<[1], [0], [0], [1], [0, 0, 1, 1], [], []>} : vector<128x16xbf16>, vector<16x48xbf16>, vector<128x48xf32> -> vector<128x48xf32>
    %104 = arith.addf %99, %103 : vector<128x48xf32>
    %c41 = arith.constant 41 : index
    %c0_61 = arith.constant 0 : index
    %105 = vector.load %arg21[%c41, %c0_61] : memref<176x16xbf16, #tpu.memory_space<vmem>>, vector<128x16xbf16>
    %c8_62 = arith.constant 8 : index
    %c0_63 = arith.constant 0 : index
    %c0_64 = arith.constant 0 : index
    %106 = vector.load %arg23[%c8_62, %c0_63, %c0_64] : memref<9x16x48xbf16, #tpu.memory_space<vmem>>, vector<1x16x48xbf16>
    %107 = vector.shape_cast %106 : vector<1x16x48xbf16> to vector<16x48xbf16>
    %cst_65 = arith.constant dense<0.000000e+00> : vector<128x48xf32>
    %108 = tpu.matmul %105, %107, %cst_65 {dimension_numbers = #tpu.dot_dimension_numbers<[1], [0], [0], [1], [0, 0, 1, 1], [], []>} : vector<128x16xbf16>, vector<16x48xbf16>, vector<128x48xf32> -> vector<128x48xf32>
    %109 = arith.addf %104, %108 : vector<128x48xf32>
    %c0_66 = arith.constant 0 : index
    %c0_67 = arith.constant 0 : index
    %110 = vector.load %arg6[%c0_66, %c0_67] : memref<1x48xf32, #tpu.memory_space<vmem>>, vector<1x48xf32>
    %111 = vector.broadcast %110 : vector<1x48xf32> to vector<128x48xf32>
    %112 = arith.addf %109, %111 : vector<128x48xf32>
    %cst_68 = arith.constant 5.000000e-01 : f32
    %113 = vector.broadcast %cst_68 : f32 to vector<128x48xf32>
    %114 = arith.mulf %113, %112 : vector<128x48xf32>
    %cst_69 = arith.constant 4.471500e-02 : f32
    %115 = vector.broadcast %cst_69 : f32 to vector<128x48xf32>
    %116 = arith.mulf %115, %112 : vector<128x48xf32>
    %117 = arith.mulf %116, %112 : vector<128x48xf32>
    %118 = arith.mulf %117, %112 : vector<128x48xf32>
    %119 = arith.addf %112, %118 : vector<128x48xf32>
    %cst_70 = arith.constant 0.797884583 : f32
    %120 = vector.broadcast %cst_70 : f32 to vector<128x48xf32>
    %121 = arith.mulf %120, %119 : vector<128x48xf32>
    %122 = math.tanh %121 : vector<128x48xf32>
    %cst_71 = arith.constant 1.000000e+00 : f32
    %123 = vector.broadcast %cst_71 : f32 to vector<128x48xf32>
    %124 = arith.addf %123, %122 : vector<128x48xf32>
    %125 = arith.mulf %114, %124 : vector<128x48xf32>
    %126 = vector.broadcast %65 : vector<128x1xf32> to vector<128x48xf32>
    %127 = arith.mulf %125, %126 : vector<128x48xf32>
    %128 = arith.truncf %127 : vector<128x48xf32> to vector<128x48xbf16>
    %c24_72 = arith.constant 24 : index
    %c0_73 = arith.constant 0 : index
    %129 = vector.load %arg22[%c24_72, %c0_73] : memref<176x48xbf16, #tpu.memory_space<vmem>>, vector<128x48xbf16>
    tpu.vector_store %arg22[%c24_72, %c0_73], %128 {strides = array<i32>} : memref<176x48xbf16, #tpu.memory_space<vmem>>, vector<128x48xbf16>,
    %c7_74 = arith.constant 7 : index
    %c0_75 = arith.constant 0 : index
    %130 = vector.load %arg22[%c7_74, %c0_75] : memref<176x48xbf16, #tpu.memory_space<vmem>>, vector<128x48xbf16>
    %c0_76 = arith.constant 0 : index
    %c0_77 = arith.constant 0 : index
    %c0_78 = arith.constant 0 : index
    %131 = vector.load %arg24[%c0_76, %c0_77, %c0_78] : memref<9x48x48xbf16, #tpu.memory_space<vmem>>, vector<1x48x48xbf16>
    %132 = vector.shape_cast %131 : vector<1x48x48xbf16> to vector<48x48xbf16>
    %cst_79 = arith.constant dense<0.000000e+00> : vector<128x48xf32>
    %133 = tpu.matmul %130, %132, %cst_79 {dimension_numbers = #tpu.dot_dimension_numbers<[1], [0], [0], [1], [0, 0, 1, 1], [], []>} : vector<128x48xbf16>, vector<48x48xbf16>, vector<128x48xf32> -> vector<128x48xf32>
    %c8_80 = arith.constant 8 : index
    %c0_81 = arith.constant 0 : index
    %134 = vector.load %arg22[%c8_80, %c0_81] : memref<176x48xbf16, #tpu.memory_space<vmem>>, vector<128x48xbf16>
    %c1_82 = arith.constant 1 : index
    %c0_83 = arith.constant 0 : index
    %c0_84 = arith.constant 0 : index
    %135 = vector.load %arg24[%c1_82, %c0_83, %c0_84] : memref<9x48x48xbf16, #tpu.memory_space<vmem>>, vector<1x48x48xbf16>
    %136 = vector.shape_cast %135 : vector<1x48x48xbf16> to vector<48x48xbf16>
    %cst_85 = arith.constant dense<0.000000e+00> : vector<128x48xf32>
    %137 = tpu.matmul %134, %136, %cst_85 {dimension_numbers = #tpu.dot_dimension_numbers<[1], [0], [0], [1], [0, 0, 1, 1], [], []>} : vector<128x48xbf16>, vector<48x48xbf16>, vector<128x48xf32> -> vector<128x48xf32>
    %138 = arith.addf %133, %137 : vector<128x48xf32>
    %c9_86 = arith.constant 9 : index
    %c0_87 = arith.constant 0 : index
    %139 = vector.load %arg22[%c9_86, %c0_87] : memref<176x48xbf16, #tpu.memory_space<vmem>>, vector<128x48xbf16>
    %c2_88 = arith.constant 2 : index
    %c0_89 = arith.constant 0 : index
    %c0_90 = arith.constant 0 : index
    %140 = vector.load %arg24[%c2_88, %c0_89, %c0_90] : memref<9x48x48xbf16, #tpu.memory_space<vmem>>, vector<1x48x48xbf16>
    %141 = vector.shape_cast %140 : vector<1x48x48xbf16> to vector<48x48xbf16>
    %cst_91 = arith.constant dense<0.000000e+00> : vector<128x48xf32>
    %142 = tpu.matmul %139, %141, %cst_91 {dimension_numbers = #tpu.dot_dimension_numbers<[1], [0], [0], [1], [0, 0, 1, 1], [], []>} : vector<128x48xbf16>, vector<48x48xbf16>, vector<128x48xf32> -> vector<128x48xf32>
    %143 = arith.addf %138, %142 : vector<128x48xf32>
    %c23_92 = arith.constant 23 : index
    %c0_93 = arith.constant 0 : index
    %144 = vector.load %arg22[%c23_92, %c0_93] : memref<176x48xbf16, #tpu.memory_space<vmem>>, vector<128x48xbf16>
    %c3_94 = arith.constant 3 : index
    %c0_95 = arith.constant 0 : index
    %c0_96 = arith.constant 0 : index
    %145 = vector.load %arg24[%c3_94, %c0_95, %c0_96] : memref<9x48x48xbf16, #tpu.memory_space<vmem>>, vector<1x48x48xbf16>
    %146 = vector.shape_cast %145 : vector<1x48x48xbf16> to vector<48x48xbf16>
    %cst_97 = arith.constant dense<0.000000e+00> : vector<128x48xf32>
    %147 = tpu.matmul %144, %146, %cst_97 {dimension_numbers = #tpu.dot_dimension_numbers<[1], [0], [0], [1], [0, 0, 1, 1], [], []>} : vector<128x48xbf16>, vector<48x48xbf16>, vector<128x48xf32> -> vector<128x48xf32>
    %148 = arith.addf %143, %147 : vector<128x48xf32>
    %c24_98 = arith.constant 24 : index
    %c0_99 = arith.constant 0 : index
    %149 = vector.load %arg22[%c24_98, %c0_99] : memref<176x48xbf16, #tpu.memory_space<vmem>>, vector<128x48xbf16>
    %c4_100 = arith.constant 4 : index
    %c0_101 = arith.constant 0 : index
    %c0_102 = arith.constant 0 : index
    %150 = vector.load %arg24[%c4_100, %c0_101, %c0_102] : memref<9x48x48xbf16, #tpu.memory_space<vmem>>, vector<1x48x48xbf16>
    %151 = vector.shape_cast %150 : vector<1x48x48xbf16> to vector<48x48xbf16>
    %cst_103 = arith.constant dense<0.000000e+00> : vector<128x48xf32>
    %152 = tpu.matmul %149, %151, %cst_103 {dimension_numbers = #tpu.dot_dimension_numbers<[1], [0], [0], [1], [0, 0, 1, 1], [], []>} : vector<128x48xbf16>, vector<48x48xbf16>, vector<128x48xf32> -> vector<128x48xf32>
    %153 = arith.addf %148, %152 : vector<128x48xf32>
    %c25_104 = arith.constant 25 : index
    %c0_105 = arith.constant 0 : index
    %154 = vector.load %arg22[%c25_104, %c0_105] : memref<176x48xbf16, #tpu.memory_space<vmem>>, vector<128x48xbf16>
    %c5_106 = arith.constant 5 : index
    %c0_107 = arith.constant 0 : index
    %c0_108 = arith.constant 0 : index
    %155 = vector.load %arg24[%c5_106, %c0_107, %c0_108] : memref<9x48x48xbf16, #tpu.memory_space<vmem>>, vector<1x48x48xbf16>
    %156 = vector.shape_cast %155 : vector<1x48x48xbf16> to vector<48x48xbf16>
    %cst_109 = arith.constant dense<0.000000e+00> : vector<128x48xf32>
    %157 = tpu.matmul %154, %156, %cst_109 {dimension_numbers = #tpu.dot_dimension_numbers<[1], [0], [0], [1], [0, 0, 1, 1], [], []>} : vector<128x48xbf16>, vector<48x48xbf16>, vector<128x48xf32> -> vector<128x48xf32>
    %158 = arith.addf %153, %157 : vector<128x48xf32>
    %c39_110 = arith.constant 39 : index
    %c0_111 = arith.constant 0 : index
    %159 = vector.load %arg22[%c39_110, %c0_111] : memref<176x48xbf16, #tpu.memory_space<vmem>>, vector<128x48xbf16>
    %c6_112 = arith.constant 6 : index
    %c0_113 = arith.constant 0 : index
    %c0_114 = arith.constant 0 : index
    %160 = vector.load %arg24[%c6_112, %c0_113, %c0_114] : memref<9x48x48xbf16, #tpu.memory_space<vmem>>, vector<1x48x48xbf16>
    %161 = vector.shape_cast %160 : vector<1x48x48xbf16> to vector<48x48xbf16>
    %cst_115 = arith.constant dense<0.000000e+00> : vector<128x48xf32>
    %162 = tpu.matmul %159, %161, %cst_115 {dimension_numbers = #tpu.dot_dimension_numbers<[1], [0], [0], [1], [0, 0, 1, 1], [], []>} : vector<128x48xbf16>, vector<48x48xbf16>, vector<128x48xf32> -> vector<128x48xf32>
    %163 = arith.addf %158, %162 : vector<128x48xf32>
    %c40_116 = arith.constant 40 : index
    %c0_117 = arith.constant 0 : index
    %164 = vector.load %arg22[%c40_116, %c0_117] : memref<176x48xbf16, #tpu.memory_space<vmem>>, vector<128x48xbf16>
    %c7_118 = arith.constant 7 : index
    %c0_119 = arith.constant 0 : index
    %c0_120 = arith.constant 0 : index
    %165 = vector.load %arg24[%c7_118, %c0_119, %c0_120] : memref<9x48x48xbf16, #tpu.memory_space<vmem>>, vector<1x48x48xbf16>
    %166 = vector.shape_cast %165 : vector<1x48x48xbf16> to vector<48x48xbf16>
    %cst_121 = arith.constant dense<0.000000e+00> : vector<128x48xf32>
    %167 = tpu.matmul %164, %166, %cst_121 {dimension_numbers = #tpu.dot_dimension_numbers<[1], [0], [0], [1], [0, 0, 1, 1], [], []>} : vector<128x48xbf16>, vector<48x48xbf16>, vector<128x48xf32> -> vector<128x48xf32>
    %168 = arith.addf %163, %167 : vector<128x48xf32>
    %c41_122 = arith.constant 41 : index
    %c0_123 = arith.constant 0 : index
    %169 = vector.load %arg22[%c41_122, %c0_123] : memref<176x48xbf16, #tpu.memory_space<vmem>>, vector<128x48xbf16>
    %c8_124 = arith.constant 8 : index
    %c0_125 = arith.constant 0 : index
    %c0_126 = arith.constant 0 : index
    %170 = vector.load %arg24[%c8_124, %c0_125, %c0_126] : memref<9x48x48xbf16, #tpu.memory_space<vmem>>, vector<1x48x48xbf16>
    %171 = vector.shape_cast %170 : vector<1x48x48xbf16> to vector<48x48xbf16>
    %cst_127 = arith.constant dense<0.000000e+00> : vector<128x48xf32>
    %172 = tpu.matmul %169, %171, %cst_127 {dimension_numbers = #tpu.dot_dimension_numbers<[1], [0], [0], [1], [0, 0, 1, 1], [], []>} : vector<128x48xbf16>, vector<48x48xbf16>, vector<128x48xf32> -> vector<128x48xf32>
    %173 = arith.addf %168, %172 : vector<128x48xf32>
    %174 = vector.broadcast %65 : vector<128x1xf32> to vector<128x48xf32>
    %175 = arith.mulf %173, %174 : vector<128x48xf32>
    %cst_128 = arith.constant dense<0.000000e+00> : vector<48xf32>
    %176 = vector.multi_reduction <add>, %175, %cst_128 [0] : vector<128x48xf32> to vector<48xf32>
    %177 = vector.shape_cast %176 : vector<48xf32> to vector<1x48xf32>
    %cst_129 = arith.constant 1.562500e-02 : f32
    %178 = vector.broadcast %cst_129 : f32 to vector<1x48xf32>
    %179 = arith.mulf %177, %178 : vector<1x48xf32>
    %c0_130 = arith.constant 0 : index
    %c0_131 = arith.constant 0 : index
    %180 = vector.load %arg7[%c0_130, %c0_131] : memref<1x48xf32, #tpu.memory_space<vmem>>, vector<1x48xf32>
    %181 = arith.addf %179, %180 : vector<1x48xf32>
    %182 = vector.extract_strided_slice %181 {offsets = [0, 0], sizes = [1, 16], strides = [1, 1]} : vector<1x48xf32> to vector<1x16xf32>
    %cst_132 = arith.constant dense<0xFF800000> : vector<1xf32>
    %183 = vector.multi_reduction <maximumf>, %182, %cst_132 [1] : vector<1x16xf32> to vector<1xf32>
    %184 = vector.shape_cast %183 : vector<1xf32> to vector<1x1xf32>
    %185 = vector.broadcast %184 : vector<1x1xf32> to vector<1x16xf32>
    %186 = arith.subf %182, %185 : vector<1x16xf32>
    %187 = math.exp %186 : vector<1x16xf32>
    %cst_133 = arith.constant dense<0.000000e+00> : vector<1xf32>
    %188 = vector.multi_reduction <add>, %187, %cst_133 [1] : vector<1x16xf32> to vector<1xf32>
    %189 = vector.shape_cast %188 : vector<1xf32> to vector<1x1xf32>
    %190 = tpu.reciprocal %189 {approx = true} : vector<1x1xf32> -> vector<1x1xf32>
    %191 = vector.broadcast %190 : vector<1x1xf32> to vector<1x16xf32>
    %192 = arith.mulf %187, %191 : vector<1x16xf32>
    %193 = vector.extract_strided_slice %181 {offsets = [0, 16], sizes = [1, 16], strides = [1, 1]} : vector<1x48xf32> to vector<1x16xf32>
    %cst_134 = arith.constant dense<0xFF800000> : vector<1xf32>
    %194 = vector.multi_reduction <maximumf>, %193, %cst_134 [1] : vector<1x16xf32> to vector<1xf32>
    %195 = vector.shape_cast %194 : vector<1xf32> to vector<1x1xf32>
    %196 = vector.broadcast %195 : vector<1x1xf32> to vector<1x16xf32>
    %197 = arith.subf %193, %196 : vector<1x16xf32>
    %198 = math.exp %197 : vector<1x16xf32>
    %cst_135 = arith.constant dense<0.000000e+00> : vector<1xf32>
    %199 = vector.multi_reduction <add>, %198, %cst_135 [1] : vector<1x16xf32> to vector<1xf32>
    %200 = vector.shape_cast %199 : vector<1xf32> to vector<1x1xf32>
    %201 = tpu.reciprocal %200 {approx = true} : vector<1x1xf32> -> vector<1x1xf32>
    %202 = vector.broadcast %201 : vector<1x1xf32> to vector<1x16xf32>
    %203 = arith.mulf %198, %202 : vector<1x16xf32>
    %204 = vector.extract_strided_slice %181 {offsets = [0, 32], sizes = [1, 16], strides = [1, 1]} : vector<1x48xf32> to vector<1x16xf32>
    %205 = math.tanh %204 : vector<1x16xf32>
    %206 = arith.mulf %192, %8 : vector<1x16xf32>
    %207 = arith.mulf %203, %205 : vector<1x16xf32>
    %208 = arith.addf %206, %207 : vector<1x16xf32>
    %209 = arith.truncf %208 : vector<1x16xf32> to vector<1x16xbf16>
    %c0_136 = arith.constant 0 : index
    %c0_137 = arith.constant 0 : index
    %210 = vector.load %arg8[%c0_136, %c0_137] : memref<16x16xbf16, #tpu.memory_space<vmem>>, vector<16x16xbf16>
    %cst_138 = arith.constant dense<0.000000e+00> : vector<1x16xf32>
    %211 = tpu.matmul %209, %210, %cst_138 {dimension_numbers = #tpu.dot_dimension_numbers<[1], [0], [0], [1], [0, 0, 1, 1], [], []>} : vector<1x16xbf16>, vector<16x16xbf16>, vector<1x16xf32> -> vector<1x16xf32>
    %c0_139 = arith.constant 0 : index
    %c0_140 = arith.constant 0 : index
    %212 = vector.load %arg9[%c0_139, %c0_140] : memref<1x16xf32, #tpu.memory_space<vmem>>, vector<1x16xf32>
    %213 = arith.addf %211, %212 : vector<1x16xf32>
    %214 = math.tanh %213 : vector<1x16xf32>
    %c0_141 = arith.constant 0 : index
    %c0_142 = arith.constant 0 : index
    %215 = vector.load %arg10[%c0_141, %c0_142] : memref<16x16xbf16, #tpu.memory_space<vmem>>, vector<16x16xbf16>
    %216 = arith.truncf %6 : vector<16x64xf32> to vector<16x64xbf16>
    %cst_143 = arith.constant dense<0.000000e+00> : vector<16x64xf32>
    %217 = tpu.matmul %215, %216, %cst_143 {dimension_numbers = #tpu.dot_dimension_numbers<[1], [0], [0], [1], [0, 0, 1, 1], [], []>} : vector<16x16xbf16>, vector<16x64xbf16>, vector<16x64xf32> -> vector<16x64xf32>
    %c0_144 = arith.constant 0 : index
    %c0_145 = arith.constant 0 : index
    %218 = vector.load %arg11[%c0_144, %c0_145] : memref<16x1xf32, #tpu.memory_space<vmem>>, vector<16x1xf32>
    %219 = vector.broadcast %218 : vector<16x1xf32> to vector<16x64xf32>
    %220 = arith.addf %217, %219 : vector<16x64xf32>
    %c0_146 = arith.constant 0 : index
    %c0_147 = arith.constant 0 : index
    %221 = vector.load %arg12[%c0_146, %c0_147] : memref<16x16xbf16, #tpu.memory_space<vmem>>, vector<16x16xbf16>
    %222 = arith.extf %221 : vector<16x16xbf16> to vector<16x16xf32>
    %223 = vector.broadcast %214 : vector<1x16xf32> to vector<16x16xf32>
    %224 = arith.mulf %222, %223 : vector<16x16xf32>
    %225 = arith.truncf %224 : vector<16x16xf32> to vector<16x16xbf16>
    %226 = arith.truncf %220 : vector<16x64xf32> to vector<16x64xbf16>
    %cst_148 = arith.constant dense<0.000000e+00> : vector<16x64xf32>
    %227 = tpu.matmul %225, %226, %cst_148 {dimension_numbers = #tpu.dot_dimension_numbers<[1], [0], [0], [1], [0, 0, 1, 1], [], []>} : vector<16x16xbf16>, vector<16x64xbf16>, vector<16x64xf32> -> vector<16x64xf32>
    %c0_149 = arith.constant 0 : index
    %c0_150 = arith.constant 0 : index
    %228 = vector.load %arg13[%c0_149, %c0_150] : memref<16x1xf32, #tpu.memory_space<vmem>>, vector<16x1xf32>
    %229 = vector.broadcast %228 : vector<16x1xf32> to vector<16x64xf32>
    %230 = arith.addf %227, %229 : vector<16x64xf32>
    %231 = arith.addf %6, %230 : vector<16x64xf32>
    %c0_151 = arith.constant 0 : index
    %c0_152 = arith.constant 0 : index
    %232 = vector.load %arg14[%c0_151, %c0_152] : memref<32x32xbf16, #tpu.memory_space<vmem>>, vector<32x32xbf16>
    %233 = arith.truncf %4 : vector<32x64xf32> to vector<32x64xbf16>
    %cst_153 = arith.constant dense<0.000000e+00> : vector<32x64xf32>
    %234 = tpu.matmul %232, %233, %cst_153 {dimension_numbers = #tpu.dot_dimension_numbers<[1], [0], [0], [1], [0, 0, 1, 1], [], []>} : vector<32x32xbf16>, vector<32x64xbf16>, vector<32x64xf32> -> vector<32x64xf32>
    %c0_154 = arith.constant 0 : index
    %c0_155 = arith.constant 0 : index
    %235 = vector.load %arg15[%c0_154, %c0_155] : memref<32x16xbf16, #tpu.memory_space<vmem>>, vector<32x16xbf16>
    %236 = arith.truncf %231 : vector<16x64xf32> to vector<16x64xbf16>
    %cst_156 = arith.constant dense<0.000000e+00> : vector<32x64xf32>
    %237 = tpu.matmul %235, %236, %cst_156 {dimension_numbers = #tpu.dot_dimension_numbers<[1], [0], [0], [1], [0, 0, 1, 1], [], []>} : vector<32x16xbf16>, vector<16x64xbf16>, vector<32x64xf32> -> vector<32x64xf32>
    %238 = arith.addf %234, %237 : vector<32x64xf32>
    %c0_157 = arith.constant 0 : index
    %c0_158 = arith.constant 0 : index
    %239 = vector.load %arg16[%c0_157, %c0_158] : memref<32x1xf32, #tpu.memory_space<vmem>>, vector<32x1xf32>
    %240 = vector.broadcast %239 : vector<32x1xf32> to vector<32x64xf32>
    %241 = arith.addf %238, %240 : vector<32x64xf32>
    %242 = arith.addf %4, %241 : vector<32x64xf32>
    %243 = vector.shape_cast %242 : vector<32x64xf32> to vector<1x32x64xf32>
    %c0_159 = arith.constant 0 : index
    %c0_160 = arith.constant 0 : index
    %c0_161 = arith.constant 0 : index
    %244 = vector.load %arg19[%c0_159, %c0_160, %c0_161] : memref<1x32x64xf32, #tpu.memory_space<vmem>>, vector<1x32x64xf32>
    tpu.vector_store %arg19[%c0_159, %c0_160, %c0_161], %243 {strides = array<i32>} : memref<1x32x64xf32, #tpu.memory_space<vmem>>, vector<1x32x64xf32>,
    %245 = arith.truncf %208 : vector<1x16xf32> to vector<1x16xbf16>
    %c0_162 = arith.constant 0 : index
    %c0_163 = arith.constant 0 : index
    %246 = vector.load %arg17[%c0_162, %c0_163] : memref<16x8xbf16, #tpu.memory_space<vmem>>, vector<16x8xbf16>
    %cst_164 = arith.constant dense<0.000000e+00> : vector<1x8xf32>
    %247 = tpu.matmul %245, %246, %cst_164 {dimension_numbers = #tpu.dot_dimension_numbers<[1], [0], [0], [1], [0, 0, 1, 1], [], []>} : vector<1x16xbf16>, vector<16x8xbf16>, vector<1x8xf32> -> vector<1x8xf32>
    %c0_165 = arith.constant 0 : index
    %c0_166 = arith.constant 0 : index
    %248 = vector.load %arg18[%c0_165, %c0_166] : memref<1x8xf32, #tpu.memory_space<vmem>>, vector<1x8xf32>
    %249 = arith.addf %247, %248 : vector<1x8xf32>
    %cst_167 = arith.constant 5.000000e-01 : f32
    %250 = vector.broadcast %cst_167 : f32 to vector<1x8xf32>
    %251 = arith.mulf %250, %249 : vector<1x8xf32>
    %cst_168 = arith.constant 4.471500e-02 : f32
    %252 = vector.broadcast %cst_168 : f32 to vector<1x8xf32>
    %253 = arith.mulf %252, %249 : vector<1x8xf32>
    %254 = arith.mulf %253, %249 : vector<1x8xf32>
    %255 = arith.mulf %254, %249 : vector<1x8xf32>
    %256 = arith.addf %249, %255 : vector<1x8xf32>
    %cst_169 = arith.constant 0.797884583 : f32
    %257 = vector.broadcast %cst_169 : f32 to vector<1x8xf32>
    %258 = arith.mulf %257, %256 : vector<1x8xf32>
    %259 = math.tanh %258 : vector<1x8xf32>
    %cst_170 = arith.constant 1.000000e+00 : f32
    %260 = vector.broadcast %cst_170 : f32 to vector<1x8xf32>
    %261 = arith.addf %260, %259 : vector<1x8xf32>
    %262 = arith.mulf %251, %261 : vector<1x8xf32>
    %263 = vector.shape_cast %262 : vector<1x8xf32> to vector<1x1x8xf32>
    %c0_171 = arith.constant 0 : index
    %c0_172 = arith.constant 0 : index
    %c0_173 = arith.constant 0 : index
    %264 = vector.load %arg20[%c0_171, %c0_172, %c0_173] : memref<1x1x8xf32, #tpu.memory_space<vmem>>, vector<1x1x8xf32>
    tpu.vector_store %arg20[%c0_171, %c0_172, %c0_173], %263 {strides = array<i32>} : memref<1x1x8xf32, #tpu.memory_space<vmem>>, vector<1x1x8xf32>,
    return
  }
  func.func @transform_0(%arg0: i32) -> (i32, i32, i32) {
    %c0_i32 = arith.constant 0 : i32
    %c0_i32_0 = arith.constant 0 : i32
    %c0_i32_1 = arith.constant 0 : i32
    return %arg0, %c0_i32, %c0_i32_0 : i32, i32, i32
  }
  func.func @transform_1(%arg0: i32) -> (i32, i32, i32) {
    %c0_i32 = arith.constant 0 : i32
    %c0_i32_0 = arith.constant 0 : i32
    %c0_i32_1 = arith.constant 0 : i32
    return %arg0, %c0_i32, %c0_i32_0 : i32, i32, i32
  }
  func.func @transform_2(%arg0: i32) -> (i32, i32, i32) {
    %c0_i32 = arith.constant 0 : i32
    %c0_i32_0 = arith.constant 0 : i32
    %c0_i32_1 = arith.constant 0 : i32
    return %arg0, %c0_i32, %c0_i32_0 : i32, i32, i32
  }
  func.func @transform_5(%arg0: i32) -> (i32, i32) {
    %c0_i32 = arith.constant 0 : i32
    %c0_i32_0 = arith.constant 0 : i32
    %c0_i32_1 = arith.constant 0 : i32
    return %c0_i32, %c0_i32_0 : i32, i32
  }
  func.func @transform_6(%arg0: i32) -> (i32, i32) {
    %c0_i32 = arith.constant 0 : i32
    %c0_i32_0 = arith.constant 0 : i32
    %c0_i32_1 = arith.constant 0 : i32
    return %c0_i32, %c0_i32_0 : i32, i32
  }
  func.func @transform_7(%arg0: i32) -> (i32, i32) {
    %c0_i32 = arith.constant 0 : i32
    %c0_i32_0 = arith.constant 0 : i32
    %c0_i32_1 = arith.constant 0 : i32
    return %c0_i32, %c0_i32_0 : i32, i32
  }
  func.func @transform_8(%arg0: i32) -> (i32, i32) {
    %c0_i32 = arith.constant 0 : i32
    %c0_i32_0 = arith.constant 0 : i32
    %c0_i32_1 = arith.constant 0 : i32
    return %c0_i32, %c0_i32_0 : i32, i32
  }
  func.func @transform_9(%arg0: i32) -> (i32, i32) {
    %c0_i32 = arith.constant 0 : i32
    %c0_i32_0 = arith.constant 0 : i32
    %c0_i32_1 = arith.constant 0 : i32
    return %c0_i32, %c0_i32_0 : i32, i32
  }
  func.func @transform_10(%arg0: i32) -> (i32, i32) {
    %c0_i32 = arith.constant 0 : i32
    %c0_i32_0 = arith.constant 0 : i32
    %c0_i32_1 = arith.constant 0 : i32
    return %c0_i32, %c0_i32_0 : i32, i32
  }
  func.func @transform_11(%arg0: i32) -> (i32, i32) {
    %c0_i32 = arith.constant 0 : i32
    %c0_i32_0 = arith.constant 0 : i32
    %c0_i32_1 = arith.constant 0 : i32
    return %c0_i32, %c0_i32_0 : i32, i32
  }
  func.func @transform_12(%arg0: i32) -> (i32, i32) {
    %c0_i32 = arith.constant 0 : i32
    %c0_i32_0 = arith.constant 0 : i32
    %c0_i32_1 = arith.constant 0 : i32
    return %c0_i32, %c0_i32_0 : i32, i32
  }
  func.func @transform_13(%arg0: i32) -> (i32, i32) {
    %c0_i32 = arith.constant 0 : i32
    %c0_i32_0 = arith.constant 0 : i32
    %c0_i32_1 = arith.constant 0 : i32
    return %c0_i32, %c0_i32_0 : i32, i32
  }
  func.func @transform_14(%arg0: i32) -> (i32, i32) {
    %c0_i32 = arith.constant 0 : i32
    %c0_i32_0 = arith.constant 0 : i32
    %c0_i32_1 = arith.constant 0 : i32
    return %c0_i32, %c0_i32_0 : i32, i32
  }
  func.func @transform_15(%arg0: i32) -> (i32, i32) {
    %c0_i32 = arith.constant 0 : i32
    %c0_i32_0 = arith.constant 0 : i32
    %c0_i32_1 = arith.constant 0 : i32
    return %c0_i32, %c0_i32_0 : i32, i32
  }
  func.func @transform_16(%arg0: i32) -> (i32, i32) {
    %c0_i32 = arith.constant 0 : i32
    %c0_i32_0 = arith.constant 0 : i32
    %c0_i32_1 = arith.constant 0 : i32
    return %c0_i32, %c0_i32_0 : i32, i32
  }
  func.func @transform_17(%arg0: i32) -> (i32, i32) {
    %c0_i32 = arith.constant 0 : i32
    %c0_i32_0 = arith.constant 0 : i32
    %c0_i32_1 = arith.constant 0 : i32
    return %c0_i32, %c0_i32_0 : i32, i32
  }
  func.func @transform_18(%arg0: i32) -> (i32, i32, i32) {
    %c0_i32 = arith.constant 0 : i32
    %c0_i32_0 = arith.constant 0 : i32
    %c0_i32_1 = arith.constant 0 : i32
    return %arg0, %c0_i32, %c0_i32_0 : i32, i32, i32
  }
  func.func @transform_19(%arg0: i32) -> (i32, i32, i32) {
    %c0_i32 = arith.constant 0 : i32
    %c0_i32_0 = arith.constant 0 : i32
    %c0_i32_1 = arith.constant 0 : i32
    return %arg0, %c0_i32, %c0_i32_0 : i32, i32, i32
  }
}

</mosaic_0001>

<bundles_post_ra>
// kernel: tpu_custom_call.1
= control target key start
LH: loop header
LB: loop body
LE: loop exit
PB: predicated region body
PF: predicated region fallthrough
CT: control target
= control target key end

     0   :  { %s7947_s0 = inlined_call_operand.hbm [shape: f32[2,32,64], index: 0, kind: input, shape index: {}]   ;;  %s7948_s1 = inlined_call_operand.vmem [shape: f32[2,16,64], index: 1, kind: input, shape index: {}]   ;;  %s7949_s2 = inlined_call_operand.vmem [shape: f32[2,1,16], index: 2, kind: input, shape index: {}]   ;;  %s7950_s3 = inlined_call_operand.hbm [shape: bf16[9,16,48], index: 3, kind: input, shape index: {}]   ;;  %s7951_s4 = inlined_call_operand.hbm [shape: bf16[9,48,48], index: 4, kind: input, shape index: {}]   ;;  %s7952_s5 = inlined_call_operand.vmem [shape: f32[1,48], index: 5, kind: input, shape index: {}]   ;;  %s7953_s6 = inlined_call_operand.vmem [shape: f32[1,48], index: 6, kind: input, shape index: {}]   ;;  %s7954_s7 = inlined_call_operand.vmem [shape: bf16[16,16], index: 7, kind: input, shape index: {}]   ;;  %s7955_s8 = inlined_call_operand.vmem [shape: f32[1,16], index: 8, kind: input, shape index: {}]   ;;  %s7956_s9 = inlined_call_operand.vmem [shape: bf16[16,16], index: 9, kind: input, shape index: {}]   ;;  %s7957_s10 = inlined_call_operand.vmem [shape: f32[16,1], index: 10, kind: input, shape index: {}]   ;;  %s7958_s11 = inlined_call_operand.vmem [shape: bf16[16,16], index: 11, kind: input, shape index: {}]   ;;  %s7959_s12 = inlined_call_operand.vmem [shape: f32[16,1], index: 12, kind: input, shape index: {}]   ;;  %s7960_s13 = inlined_call_operand.vmem [shape: bf16[32,32], index: 13, kind: input, shape index: {}]   ;;  %s7961_s14 = inlined_call_operand.vmem [shape: bf16[32,16], index: 14, kind: input, shape index: {}]   ;;  %s7962_s15 = inlined_call_operand.vmem [shape: f32[32,1], index: 15, kind: input, shape index: {}]   ;;  %s7963_s16 = inlined_call_operand.vmem [shape: bf16[16,8], index: 16, kind: input, shape index: {}]   ;;  %s7964_s17 = inlined_call_operand.vmem [shape: f32[1,8], index: 17, kind: input, shape index: {}]   ;;  %s7965_s18 = inlined_call_operand.hbm [shape: f32[2,32,64], index: 18, kind: output, shape index: {0}]   ;;  %s7966_s19 = inlined_call_operand.hbm [shape: f32[2,1,8], index: 19, kind: output, shape index: {1}]  }
   0x1   :  { %7982 = sst [smem:[#allocation32_spill]] %s7947_s0 }
   0x2   :  { %7983 = sst [smem:[#allocation33_spill]] %s7948_s1 }
   0x3   :  { %7984 = sst [smem:[#allocation34_spill]] %s7949_s2 }
   0x4   :  { %7985 = sst [smem:[#allocation35_spill]] %s7950_s3 }
   0x5   :  { %7986 = sst [smem:[#allocation36_spill]] %s7960_s13 }
   0x6   :  { %7987 = sst [smem:[#allocation37_spill]] %s7961_s14 }
   0x7   :  { %7988 = sst [smem:[#allocation38_spill]] %s7963_s16 }
   0x8   :  { %7989 = sst [smem:[#allocation39_spill]] %s7964_s17 }
   0x9   :  { %7990 = sst [smem:[#allocation40_spill]] %s7965_s18 }
   0xa   :  { %7991 = sst [smem:[#allocation41_spill]] %s7966_s19 }
   0xb   :  { %25 = vsyncpa [#allocation8], 0 }
   0xc   :  { %27 = vsyncpa [#allocation8 + $0x1], 0 }
   0xd   :  { %28 = vsyncpa [#allocation9], 0 }
   0xe   :  { %30 = vsyncpa [#allocation9 + $0x1], 0 }
   0xf   :  { %31 = vsyncpa [#allocation12], 0 }
  0x10   :  { %33 = vsyncpa [#allocation12 + $0x1], 0  ;;  %s6809_s0 = smov 0   ;;  %s6811_s30 = smov 0  }
  0x11   :  { %s6813_s20 = smov 0   ;;  %s6815_s21 = smov 0  }
  0x12 LB: > { %7992 = sst [smem:[#allocation24_spill]] %s6685_s0  ;;  %s6830_s1 = sadd.s32 4294967295, %s6697_s21   ;;  %s6697_s21 = sphi %s6815_s21, %s8024_s21   ;;  %s6693_s20 = sphi %s6813_s20, %s8027_s20   ;;  %s6689_s30 = sphi %s6811_s30, %s8026_s30   ;;  %s6685_s0 = sphi %s6809_s0, %s8025_s0  }
  0x13   : > { %7993 = sst [smem:[#allocation25_spill]] %s6689_s30  ;;  %s5301_s22 = sadd.s32 4294967294, %s6697_s21  }
  0x14   : > { %7994 = sst [smem:[#allocation26_spill]] %s6693_s20  ;;  %s6834_s2 = sadd.s32 1, %s6697_s21  }
  0x15   : > { %7995 = sst [smem:[#allocation27_spill]] %s6697_s21  ;;  %s46_s23 = sadd.s32 1, %s6693_s20 }
  0x16   : > { %7996 = sst [smem:[#allocation28_spill]] %s6834_s2  ;;  %s43_s24 = ssub.s32 %s6697_s21, %s6834_s2 }
  0x17   : > { %p53_p0 = scmp.ne.s32.totalorder %s6693_s20, %s6689_s30  ;;  %p44_p1 = scmp.eq.s32.totalorder %s43_s24, 0 }
  0x18   : > { %p54_p2 = scmp.eq.s32.totalorder %s6697_s21, 0  ;;  %p59_p3 = scmp.ne.s32.totalorder %s6689_s30, %s6685_s0 }
  0x19   : > { %p60_p4 = scmp.eq.s32.totalorder %s6830_s1, 0  ;;  %p408_p7 = scmp.eq.s32.totalorder %s6830_s1, 1 }
  0x1a   : > { %s6846_s25 = scalar_select %p44_p1, %s6693_s20, %s46_s23  }
  0x1b   : > { %p6848_p5 = por %p54_p2, %p53_p0  ;;  %p6852_p6 = por %p60_p4, %p59_p3 }
  0x1c   : > { %7997 = sst [smem:[#allocation29_spill]] %s6846_s25  ;;  %p414_p8 = scmp.eq.s32.totalorder %s5301_s22, 1 }
  0x1d   : > { %p6415_p10 = scmp.lt.s32.totalorder %s6697_s21, 2  ;;  %p6859_p11 = por %p408_p7, %p53_p0 }
  0x1e   : > { %p6863_p12 = por %p414_p8, %p59_p3  ;;  %s499_s29 = sand.u32 1, %s6693_s20  }
  0x1f   : > { %s8000_s27 = scalar_select %p6859_p11, 1, 0 }
  0x20   : > { %s8002_s28 = scalar_select %p6863_p12, 1, 0 }
  0x21   : > { %8001 = sst [smem:[#allocation30_spill]] %s8000_s27  ;;  %s5836_s23 = sshll.u32 %s6697_s21, 5 }
  0x22   : > { %8003 = sst [smem:[#allocation31_spill]] %s8002_s28  ;;  %s5304_s24 = sshll.u32 %s499_s29, 5 }
  0x23   : > { %s8004_s0 = sld [smem:[#allocation32_spill]]  ;;  %s503_s22 = scalar_lea.vmem [#allocation7], %s5304_s24 }
  0x24   : > { %s511_s14 = sshll.u32 %s503_s22, 4  ;;  %p6874_p13 = pnand %p6415_p10, %p6848_p5  ;;  %s512_s14 = int_to_ptr.vmem [resolvable:$true] %s511_s14 }
  0x25   : > { %p5307_p0 = scmp.ge.s32.totalorder %s6697_s21, 1  ;;  %p533_p1 = scmp.lt.s32.totalorder %s6697_s21, 3 }
  0x26   : > { %s500_s20 = scalar_lea.sflag [#allocation8], %s499_s29  ;;  %p6521_p3 = pneg %p6874_p13 }
  0x29   : > { %s8005_s19 = smov %s8004_s0  ;;  %s508_s17 = scalar_lea.hbm %s8004_s0, %s5836_s23 }
  0x2a   : > { %s509_s18 = sshll.u32 %s508_s17, 4  ;;  %s6524_s2 = scalar_lea.hbm %s8005_s19, 64  ;;  %s510_s18 = int_to_ptr.hbm [resolvable:$true] %s509_s18 }
  0x2b   : > { %s6517_s28 = sshra.s32 %s510_s18, 4  ;;  %s6518_s28 = int_to_ptr.hbm [resolvable:$true] %s6517_s28 }
  0x2c   : > { %s6519_s27 = scalar_lea.hbm %s6518_s28, 32  ;;  %p6525_p5 = scmp.lt.s32.totalorder %s6518_s28, %s8005_s19 }
  0x2d   : > { %p6520_p2 = scmp.ne.s32.totalorder %s6518_s28, %s6519_s27  ;;  %p6526_p8 = scmp.lt.s32.totalorder %s6524_s2, %s6519_s27 }
  0x2f   : > { %p6522_p4 = pnand %p6521_p3, %p6520_p2  ;;  %p6527_p10 = por %p6526_p8, %p6525_p5 }
  0x31   : > { %p6523_p7 = pneg %p6522_p4 }
  0x33   : > { %p6528_p9 = pnand %p6527_p10, %p6523_p7 }
  0x35   : > { %6531 = shalt.err (!%p6528_p9)
}
  0x36   : > { %s6699_s29 = smov 128   ;;  %s6700_s23 = smov 8  }
  0x37   : > { %6407 = dma.hbm_to_vmem [thread:$0]  (!%p6874_p13), %s510_s18, 512, %s512_s14, %s500_s20, %s6699_s29, %s6699_s29, %s6700_s23  }
  0x38   : > { %p534_p2 = pnand %p5307_p0, %p533_p1 }
  0x39   : > { %s6895_s24 = sand.u32 (!%p534_p2), 1, %s6689_s30  }
  0x3a   : > { %537 = sbr.rel (%p534_p2) target bundleno = 2457 (0x999), region = 84  ;;  %s5308_s27 = sshll.u32 (!%p534_p2), %s6895_s24, 5 }
  0x3b   : > { %s540_s28 = scalar_lea.sflag (!%p534_p2), [#allocation8], %s6895_s24  ;;  %s6899_s22 = scalar_lea.vmem (!%p534_p2), [#allocation7], %s5308_s27 }
  0x3f   : > { %6668 = dma.done.wait (%p6852_p6), %s540_s28, 512  }
  0x40   : > { %6670 = vsyncadd (%p6852_p6), %s540_s28, 4294966784  ;;  %p607_p9 = scmp.lt.s32.totalorder %s6830_s1, 1  ;;  %s8007_s17 = sld [smem:[#allocation34_spill]] }
  0x41   : > { %s8008_s3 = sld [smem:[#allocation33_spill]]  ;;  %s6919_s26 = scalar_lea.vmem [#allocation10], %s5308_s27 }
  0x42   : > { %s6907_s14 = scalar_select %p607_p9, %s6830_s1, 1 }
  0x43   : > { %s606_s23 = scalar_lea.vmem [#allocation11], %s6895_s24  ;;  %p5312_p6 = scmp.ne.s32.totalorder %s6830_s1, 0 }
  0x44   : > { %s5837_s16 = sshll.u32 %s6907_s14, 4  ;;  %s8009_s30 = sld [smem:[#allocation35_spill]] (!%p5312_p6) }
  0x45   : > { %619 = sbr.rel (%p5312_p6) target bundleno = 123 (0x7b), region = 92  ;;  %s6701_s13 = smov (!%p5312_p6), [#allocation4]  }
  0x46   : > { %s614_s0 = scalar_lea.vmem %s8007_s17, %s6907_s14  ;;  %s675_s18 = sshll.u32 (!%p5312_p6), %s6701_s13, 4  ;;  %s676_s18 = int_to_ptr.vmem [resolvable:$true] %s675_s18 }
  0x47   : > { %s6917_s29 = scalar_lea.vmem %s8008_s3, %s5837_s16  ;;  %s687_s20 = sshll.u32 (!%p5312_p6), %s7951_s4, 4  ;;  %s688_s20 = int_to_ptr.hbm [resolvable:$true] %s687_s20 }
  0x48   : > { %s6703_s19 = smov (!%p5312_p6), [#allocation5]  }
  0x49   : > { %s689_s13 = sshll.u32 (!%p5312_p6), %s6703_s19, 4  ;;  %s690_s13 = int_to_ptr.vmem [resolvable:$true] %s689_s13 }
  0x4a   : > { %s673_s21 = sshll.u32 %s8009_s30, 4  ;;  %vm620_vm0 = vcmask 125952   ;;  %v6702_v0 = vmov 0   ;;  %vm643_vm1 = vcmask 388096   ;;  %s674_s21 = int_to_ptr.hbm [resolvable:$true] %s673_s21 }
  0x4b   : > { %621 = vst.msk [vmem:[#allocation2] sm:$0xf] %vm620_vm0, %v6702_v0  ;;  %678 = dma.hbm_to_vmem [thread:$0]  %s674_s21, 1152, %s676_s18, [#allocation6] }
  0x4c   : > { %622 = vst.msk [vmem:[#allocation2 + $0x4] sm:$0xf] %vm620_vm0, %v6702_v0  ;;  %692 = dma.hbm_to_vmem [thread:$0]  %s688_s20, 3456, %s690_s13, [#allocation6 + $0x1] }
  0x4d   : > { %623 = vst.msk [vmem:[#allocation2 + $0x8] sm:$0xf] %vm620_vm0, %v6702_v0 }
  0x4e   : > { %624 = vst.msk [vmem:[#allocation2 + $0xc] sm:$0xf] %vm620_vm0, %v6702_v0 }
  0x4f   : > { %625 = vst.msk [vmem:[#allocation2 + $0x10] sm:$0xf] %vm620_vm0, %v6702_v0 }
  0x50   : > { %626 = vst.msk [vmem:[#allocation2 + $0x14] sm:$0xf] %vm620_vm0, %v6702_v0 }
  0x51   : > { %627 = vst.msk [vmem:[#allocation2 + $0x18] sm:$0xf] %vm620_vm0, %v6702_v0 }
  0x52   : > { %628 = vst.msk [vmem:[#allocation2 + $0x1c] sm:$0xf] %vm620_vm0, %v6702_v0 }
  0x53   : > { %629 = vst.msk [vmem:[#allocation2 + $0x20] sm:$0xf] %vm620_vm0, %v6702_v0 }
  0x54   : > { %630 = vst.msk [vmem:[#allocation2 + $0x24] sm:$0xf] %vm620_vm0, %v6702_v0 }
  0x55   : > { %631 = vst.msk [vmem:[#allocation2 + $0x28] sm:$0xf] %vm620_vm0, %v6702_v0 }
  0x56   : > { %632 = vst.msk [vmem:[#allocation2 + $0x2c] sm:$0xf] %vm620_vm0, %v6702_v0 }
  0x57   : > { %633 = vst.msk [vmem:[#allocation2 + $0x30] sm:$0xf] %vm620_vm0, %v6702_v0 }
  0x58   : > { %634 = vst.msk [vmem:[#allocation2 + $0x34] sm:$0xf] %vm620_vm0, %v6702_v0 }
  0x59   : > { %635 = vst.msk [vmem:[#allocation2 + $0x38] sm:$0xf] %vm620_vm0, %v6702_v0 }
  0x5a   : > { %636 = vst.msk [vmem:[#allocation2 + $0x3c] sm:$0xf] %vm620_vm0, %v6702_v0 }
  0x5b   : > { %637 = vst.msk [vmem:[#allocation2 + $0x40] sm:$0xf] %vm620_vm0, %v6702_v0 }
  0x5c   : > { %638 = vst.msk [vmem:[#allocation2 + $0x44] sm:$0xf] %vm620_vm0, %v6702_v0 }
  0x5d   : > { %639 = vst.msk [vmem:[#allocation2 + $0x48] sm:$0xf] %vm620_vm0, %v6702_v0 }
  0x5e   : > { %640 = vst.msk [vmem:[#allocation2 + $0x4c] sm:$0xf] %vm620_vm0, %v6702_v0 }
  0x5f   : > { %641 = vst.msk [vmem:[#allocation2 + $0x50] sm:$0xf] %vm620_vm0, %v6702_v0 }
  0x60   : > { %642 = vst.msk [vmem:[#allocation2 + $0x54] sm:$0xf] %vm620_vm0, %v6702_v0 }
  0x61   : > { %644 = vst.msk [vmem:[#allocation3] sm:$0xf] %vm643_vm1, %v6702_v0 }
  0x62   : > { %645 = vst.msk [vmem:[#allocation3 + $0x4] sm:$0xf] %vm643_vm1, %v6702_v0 }
  0x63   : > { %646 = vst.msk [vmem:[#allocation3 + $0x8] sm:$0xf] %vm643_vm1, %v6702_v0 }
  0x64   : > { %647 = vst.msk [vmem:[#allocation3 + $0xc] sm:$0xf] %vm643_vm1, %v6702_v0 }
  0x65   : > { %648 = vst.msk [vmem:[#allocation3 + $0x10] sm:$0xf] %vm643_vm1, %v6702_v0 }
  0x66   : > { %649 = vst.msk [vmem:[#allocation3 + $0x14] sm:$0xf] %vm643_vm1, %v6702_v0 }
  0x67   : > { %650 = vst.msk [vmem:[#allocation3 + $0x18] sm:$0xf] %vm643_vm1, %v6702_v0 }
  0x68   : > { %651 = vst.msk [vmem:[#allocation3 + $0x1c] sm:$0xf] %vm643_vm1, %v6702_v0 }
  0x69   : > { %652 = vst.msk [vmem:[#allocation3 + $0x20] sm:$0xf] %vm643_vm1, %v6702_v0 }
  0x6a   : > { %653 = vst.msk [vmem:[#allocation3 + $0x24] sm:$0xf] %vm643_vm1, %v6702_v0 }
  0x6b   : > { %654 = vst.msk [vmem:[#allocation3 + $0x28] sm:$0xf] %vm643_vm1, %v6702_v0 }
  0x6c   : > { %655 = vst.msk [vmem:[#allocation3 + $0x2c] sm:$0xf] %vm643_vm1, %v6702_v0 }
  0x6d   : > { %656 = vst.msk [vmem:[#allocation3 + $0x30] sm:$0xf] %vm643_vm1, %v6702_v0 }
  0x6e   : > { %657 = vst.msk [vmem:[#allocation3 + $0x34] sm:$0xf] %vm643_vm1, %v6702_v0 }
  0x6f   : > { %658 = vst.msk [vmem:[#allocation3 + $0x38] sm:$0xf] %vm643_vm1, %v6702_v0 }
  0x70   : > { %659 = vst.msk [vmem:[#allocation3 + $0x3c] sm:$0xf] %vm643_vm1, %v6702_v0 }
  0x71   : > { %660 = vst.msk [vmem:[#allocation3 + $0x40] sm:$0xf] %vm643_vm1, %v6702_v0 }
  0x72   : > { %661 = vst.msk [vmem:[#allocation3 + $0x44] sm:$0xf] %vm643_vm1, %v6702_v0 }
  0x73   : > { %662 = vst.msk [vmem:[#allocation3 + $0x48] sm:$0xf] %vm643_vm1, %v6702_v0 }
  0x74   : > { %663 = vst.msk [vmem:[#allocation3 + $0x4c] sm:$0xf] %vm643_vm1, %v6702_v0 }
  0x75   : > { %664 = vst.msk [vmem:[#allocation3 + $0x50] sm:$0xf] %vm643_vm1, %v6702_v0 }
  0x76   : > { %665 = vst.msk [vmem:[#allocation3 + $0x54] sm:$0xf] %vm643_vm1, %v6702_v0 }
  0x77   : > { %6671 = dma.done.wait [#allocation6], 1152 }
  0x78   : > { %6672 = vsyncadd [#allocation6], 4294966144 }
  0x79   : > { %6673 = dma.done.wait [#allocation6 + $0x1], 3456 }
  0x7a   : > { %6674 = vsyncadd [#allocation6 + $0x1], 4294963840 }
  0x7b PF: > { %v706_v1 = vld [vmem:[%s6917_s29] sm:$0xff]  ;;  %vm709_vm2 = vcmask 523264   ;;  %v707_v3 = vld [vmem:[%s6917_s29 + $0x8] sm:$0xff]  ;;  %v6704_v5 = vmov 64.0   ;;  %v5839_v44 = vld [vmem:[#allocation4 + $0x8] sm:$0xff]  ;;  %vm801_vm10 = vcmask 125952  }
  0x7c   : > { %v710_v2 = vsel %vm709_vm2, %v706_v1, 0.0  ;;  %v713_v4 = vsel %vm709_vm2, %v707_v3, 0.0  ;;  %6463 = vrcp.f32 %v6704_v5  ;;  %1167 = vmatpush.bf16.msra.mxu0 %v5839_v44  ;;  %6372 = vmatpush.bf16.msra.mxu2 %v5839_v44  ;;  %v5838_v45 = vld [vmem:[#allocation4] sm:$0xff]  ;;  %v1067_v46 = vld [vmem:[#allocation2] sm:$0x8]  ;;  %vm1135_vm11 = vcmask 130048  }
  0x7d   : > { %711 = vadd.xlane.f32.xlu0 %v710_v2  ;;  %1338 = vmatpush.bf16.msra.mxu1 %v5838_v45  ;;  %v1068_v47 = vld [vmem:[#allocation2 + $0x4] sm:$0xf]  ;;  %v5850_v48 = vld [vmem:[#allocation4 + $0x20] sm:$0xff]  ;;  %v1210_v50 = vunpack.c.l.b16 %v1067_v46  ;;  %vm1220_vm12 = vsmask.f32 4352  ;;  %vm2943_vm14 = vcmask 388096  }
  0x7e   : > { %6373 = vmatpush.bf16.msra.mxu3 %v5838_v45  ;;  %v1105_v49 = vunpack.c.l.b16 %v1068_v47  ;;  %v1083_v46 = vld [vmem:[#allocation2 + $0x40] sm:$0xf]  ;;  %vm1443_vm13 = vsmask.f32 7424  ;;  %vm3048_vm15 = vcmask 392192   ;;  %vm4850_vm0 = vcmask 254080  }
  0x7f   : > { %vm4838_vm1 = vcmask 122880   ;;  %s6705_s25 = smov 112   ;;  %s8012_s27 = sld [smem:[#allocation38_spill]] }
  0x80   : > { %1893 = vmatpush.bf16.msrb.mxu0 %v5850_v48  ;;  %v1211_v53 = vpack.c.b16 %v1105_v49, %v1210_v50  ;;  %s8013_s20 = sld [smem:[#allocation37_spill]]  ;;  %s5929_s13 = sshll.u32 %s6830_s1, 5 }
  0x81   : > { %s8015_s17 = sld [smem:[#allocation40_spill]]  ;;  %s5150_s28 = sshll.u32 %s6919_s26, 4  ;;  %s5151_s28 = int_to_ptr.vmem [resolvable:$true] %s5150_s28 }
  0x82   : > { %v6464_v6 = vpop.eup %6463  ;;  %v1222_v54 = vshrl.u32 %v1211_v53, 16  ;;  %v1225_v55 = vshll.u32 %v1211_v53, 16  ;;  %s5134_s16 = scalar_lea.sflag [#allocation9], %s6895_s24 }
  0x83   : > { %v717_v7 = vmul.f32 64.0, %v6464_v6  ;;  %vm721_vm3 = vweird.f32 %v6464_v6 }
  0x84   : > { %v1224_v58 = vrot.slane %v1222_v54, 3  ;;  %v1227_v59 = vrot.slane %v1225_v55, 4 }
  0x85   : > { %714 = vadd.xlane.f32.xlu0 %v713_v4  ;;  %v718_v8 = vsub.f32 1.0, %v717_v7 }
  0x86   : > { %s8014_s14 = smov %s8013_s20 }
  0x87   : > { %v719_v9 = vmul.f32 %v6464_v6, %v718_v8  ;;  %s5149_s2 = scalar_lea.hbm %s8015_s17, %s5929_s13  ;;  %s6615_s30 = scalar_lea.hbm %s8015_s17, 64 }
  0x89   : > { %v720_v10 = vadd.f32 %v6464_v6, %v719_v9 }
  0x8b   : > { %v722_v11 = vsel %vm721_vm3, %v6464_v6, %v720_v10  ;;  %vm5038_vm3 = vcmask 261120  }
  0xf0   : > { %v712_v12 = vpop.xlane.xlu0 %711 }
  0xf1   : > { %v723_v13 = vmul.f32 %v722_v11, %v712_v12 }
  0xf3   : > { %v725_v14 = vsub.f32 %v706_v1, %v723_v13  ;;  %v1228_v1 = vor.u32 %v1227_v59, %v1224_v58 }
  0xf5   : > { %v727_v15 = vmul.f32 %v725_v14, %v725_v14 }
  0xf7   : > { %v729_v16 = vsel %vm709_vm2, %v727_v15, 0.0 }
  0xf8   : > { %730 = vadd.xlane.f32.xlu1 %v729_v16  ;;  %v715_v17 = vpop.xlane.xlu0 %714 }
  0xf9   : > { %v724_v18 = vmul.f32 %v722_v11, %v715_v17 }
  0xfb   : > { %v726_v19 = vsub.f32 %v707_v3, %v724_v18 }
  0xfd   : > { %v728_v20 = vmul.f32 %v726_v19, %v726_v19 }
  0xff   : > { %v732_v21 = vsel %vm709_vm2, %v728_v20, 0.0 }
 0x100   : > { %733 = vadd.xlane.f32.xlu1 %v732_v21 }
 0x16b   : > { %v731_v22 = vpop.xlane.xlu1 %730 }
 0x16c   : > { %v735_v23 = vmul.f32 %v731_v22, %v722_v11 }
 0x16e   : > { %v737_v24 = vadd.f32 1e-05, %v735_v23 }
 0x170   : > { %6465 = vrsqrt.f32 %v737_v24  ;;  %vm745_vm5 = vweird.f32 %v737_v24 }
 0x173   : > { %v734_v25 = vpop.xlane.xlu1 %733 }
 0x174   : > { %v736_v26 = vmul.f32 %v734_v25, %v722_v11 }
 0x176   : > { %v6466_v27 = vpop.eup %6465  ;;  %v738_v28 = vadd.f32 1e-05, %v736_v26 }
 0x177   : > { %v740_v29 = vmul.f32 %v6466_v27, %v737_v24  ;;  %vm746_vm4 = vweird.f32 %v6466_v27 }
 0x178   : > { %6467 = vrsqrt.f32 %v738_v28  ;;  %vm747_vm6 = vmor %vm745_vm5, %vm746_vm4  ;;  %vm755_vm8 = vweird.f32 %v738_v28 }
 0x179   : > { %v741_v30 = vmul.f32 %v6466_v27, %v740_v29  ;;  %v5848_v29 = vld [vmem:[#allocation4 + $0x10] sm:$0xff] }
 0x17a   : > { %1549 = vmatpush.bf16.msrb.mxu2 %v5848_v29 }
 0x17b   : > { %v742_v31 = vmul.f32 0.5, %v741_v30 }
 0x17d   : > { %v743_v32 = vsub.f32 1.5, %v742_v31 }
 0x17e   : > { %v6468_v33 = vpop.eup %6467 }
 0x17f   : > { %v750_v34 = vmul.f32 %v6468_v33, %v738_v28  ;;  %v744_v35 = vmul.f32 %v6466_v27, %v743_v32  ;;  %vm756_vm7 = vweird.f32 %v6468_v33 }
 0x180   : > { %vm757_vm9 = vmor %vm755_vm8, %vm756_vm7 }
 0x181   : > { %v751_v36 = vmul.f32 %v6468_v33, %v750_v34  ;;  %v748_v37 = vsel %vm747_vm6, %v6466_v27, %v744_v35  ;;  %v5849_v35 = vld [vmem:[#allocation4 + $0x18] sm:$0xff] }
 0x182   : > { %v759_v38 = vmul.f32 %v748_v37, %v725_v14  ;;  %1787 = vmatpush.bf16.msrb.mxu3 %v5849_v35  ;;  %v5870_v35 = vld [vmem:[#allocation4 + $0x40] sm:$0xff] }
 0x183   : > { %v752_v39 = vmul.f32 0.5, %v751_v36 }
 0x184   : > { %761 = vxpose.xlu2.b32.start [1/2] (short) (narrow) %v759_v38, 64 }
 0x185   : > { %v753_v40 = vsub.f32 1.5, %v752_v39 }
 0x187   : > { %v754_v41 = vmul.f32 %v6468_v33, %v753_v40 }
 0x189   : > { %v758_v42 = vsel %vm757_vm9, %v6468_v33, %v754_v41 }
 0x18a   : > { %v760_v43 = vmul.f32 %v758_v42, %v726_v19 }
 0x18c   : > { %762 = vxpose.xlu2.b32.end [2/2] (short) (narrow) %v760_v43, 64 }
 0x21d   : > { %v777_v51 = vpop.trf.xlu2 }
 0x21e   : > { %v793_v52 = vpack.c.bf16 %v777_v51, %v777_v51 }
 0x220   : > { %802 = vst.msk [vmem:[#allocation2 + $0xc] sm:$0xf] %vm801_vm10, %v793_v52 }
 0x225   : > { %v778_v56 = vpop.trf.xlu2 }
 0x226   : > { %v794_v57 = vpack.c.bf16 %v778_v56, %v778_v56  ;;  %v1120_v56 = vunpack.c.l.b16 %v1083_v46 }
 0x227   : > { %v6102_v60 = vld [vmem:[#allocation2 + $0x8] sm:$0xff]  }
 0x228   : > { %803 = vst.msk [vmem:[#allocation2 + $0x14] sm:$0xf] %vm801_vm10, %v794_v57  ;;  %v5932_v61 = vunpack.c.l.b16 %v6102_v60  ;;  %v1230_v62 = vshrl.u32 %v6102_v60, 16  ;;  %v1233_v63 = vshll.u32 %v6102_v60, 16  ;;  %v6376_v15 = vld [vmem:[#allocation2 + $0xc] sm:$0xff]  }
 0x22a   : > { %v1121_v0 = vpack.c.b16 %v5932_v61, %v1105_v49  ;;  %v1232_v2 = vrot.slane %v1230_v62, 3  ;;  %v1235_v3 = vrot.slane %v1233_v63, 4  ;;  %v1219_v62 = vpack.c.b16 %v1120_v56, %v1120_v56 }
 0x22c   : > { %5317 = vmatmul.msk.bf16.vlgmr.msra.gmra.mxu0 %vm1135_vm11, %v1121_v0  ;;  %v1236_v4 = vor.u32 %v1235_v3, %v1232_v2  ;;  %v5840_v0 = vld [vmem:[#allocation2 + $0x4] sm:$0xff]  ;;  %v1293_v3 = vshrl.u32 %v1219_v62, 16 }
 0x22d   : > { %v779_v5 = vpop.trf.xlu2  ;;  %2689 = vmatpush.bf16.msra.mxu0 %v5870_v35 }
 0x22e   : > { %v795_v6 = vpack.c.bf16 %v779_v5, %v779_v5  ;;  %v1237_v7 = vsel %vm1220_vm12, %v1228_v1, %v1236_v4  ;;  %v5841_v5 = vld [vmem:[#allocation2 + $0xc] sm:$0xff] }
 0x22f   : > { %5329 = vmatmul.msk.bf16.vlgmr.msra.gmra.mxu1 %vm1135_vm11, %v1237_v7  ;;  %v6984_v8 = vld [vmem:[#allocation2 + $0x10] sm:$0xff]  }
 0x230   : > { %804 = vst.msk [vmem:[#allocation2 + $0x1c] sm:$0xf] %vm801_vm10, %v795_v6  ;;  %v1239_v9 = vshrl.u32 %v6984_v8, 16  ;;  %v1242_v10 = vshll.u32 %v6984_v8, 16  ;;  %v6378_v27 = vld [vmem:[#allocation2 + $0x14] sm:$0xff]   ;;  %v1447_v6 = vshll.u32 %v5840_v0, 16 }
 0x232   : > { %v1241_v13 = vrot.slane %v1239_v9, 3  ;;  %v1244_v14 = vrot.slane %v1242_v10, 4  ;;  %v1295_v10 = vrot.slane %v1293_v3, 3 }
 0x234   : > { %v6990_v16 = vor.u32 %v1244_v14, %v1241_v13  ;;  %v1449_v13 = vrot.slane %v1447_v6, 1  ;;  %v1452_v14 = vshll.u32 %v5841_v5, 16 }
 0x235   : > { %v780_v11 = vpop.trf.xlu2 }
 0x236   : > { %v796_v12 = vpack.c.bf16 %v780_v11, %v780_v11  ;;  %v1246_v19 = vsel %vm1220_vm12, %v1236_v4, %v6990_v16  ;;  %v1296_v4 = vshll.u32 %v1219_v62, 16 }
 0x237   : > { %v6996_v20 = vld [vmem:[#allocation2 + $0x18] sm:$0xff]  }
 0x238   : > { %805 = vst.msk [vmem:[#allocation2 + $0x24] sm:$0xf] %vm801_vm10, %v796_v12  ;;  %v1248_v21 = vshrl.u32 %v6996_v20, 16  ;;  %v1251_v22 = vshll.u32 %v6996_v20, 16  ;;  %v6380_v52 = vld [vmem:[#allocation2 + $0x1c] sm:$0xff]   ;;  %v1298_v11 = vrot.slane %v1296_v4, 4 }
 0x239   : > { %v1445_v12 = vshrl.u32 %v5840_v0, 16 }
 0x23a   : > { %v1250_v25 = vrot.slane %v1248_v21, 3  ;;  %v1253_v26 = vrot.slane %v1251_v22, 4  ;;  %v1299_v21 = vor.u32 %v1298_v11, %v1295_v10  ;;  %v5859_v22 = vld [vmem:[#allocation4 + $0x28] sm:$0xff] }
 0x23b   : > { %2119 = vmatpush.bf16.msrb.mxu1 %v5859_v22  ;;  %v6296_v11 = vld [vmem:[#allocation2 + $0x14] sm:$0xff]  }
 0x23c   : > { %5318 = vmatmul.msk.bf16.gmra.mxu0 %vm1135_vm11, %v6376_v15  ;;  %v7002_v28 = vor.u32 %v1253_v26, %v1250_v25  ;;  %v1607_v15 = vld [vmem:[#allocation2 + $0x8] sm:$0x8] }
 0x23d   : > { %v781_v17 = vpop.trf.xlu2  ;;  %v1644_v25 = vunpack.c.l.b16 %v1607_v15 }
 0x23e   : > { %v797_v18 = vpack.c.bf16 %v781_v17, %v781_v17  ;;  %v7008_v32 = vsel %vm1220_vm12, %v6990_v16, %v7002_v28  ;;  %v1608_v17 = vld [vmem:[#allocation2 + $0xc] sm:$0xf] }
 0x23f   : > { %5330 = vmatmul.msk.bf16.gmra.mxu1 %vm1135_vm11, %v1246_v19  ;;  %v6105_v34 = vld [vmem:[#allocation2 + $0x20] sm:$0xff]   ;;  %v1645_v26 = vunpack.c.l.b16 %v1608_v17 }
 0x240   : > { %806 = vst.msk [vmem:[#allocation2 + $0x2c] sm:$0xf] %vm801_vm10, %v797_v18  ;;  %v1257_v37 = vshrl.u32 %v6105_v34, 16  ;;  %v1260_v38 = vshll.u32 %v6105_v34, 16  ;;  %v6382_v18 = vld [vmem:[#allocation2 + $0x24] sm:$0xff]  }
 0x241   : > { %v1661_v34 = vpack.c.b16 %v1645_v26, %v1644_v25  ;;  %v5844_v6 = vld [vmem:[#allocation2 + $0x24] sm:$0xff] }
 0x242   : > { %v1259_v43 = vrot.slane %v1257_v37, 3  ;;  %v1262_v44 = vrot.slane %v1260_v38, 4  ;;  %v5842_v38 = vld [vmem:[#allocation2 + $0x14] sm:$0xff]  ;;  %v1476_v10 = vshll.u32 %v5844_v6, 16 }
 0x243   : > { %v1674_v37 = vshll.u32 %v1661_v34, 16  ;;  %v1464_v0 = vshrl.u32 %v5842_v38, 16 }
 0x244   : > { %v1263_v53 = vor.u32 %v1262_v44, %v1259_v43  ;;  %v1456_v44 = vshrl.u32 %v5841_v5, 16  ;;  %v5853_v5 = vld [vmem:[#allocation2 + $0x1c] sm:$0xff]  ;;  %v1478_v15 = vrot.slane %v1476_v10, 1 }
 0x245   : > { %v782_v23 = vpop.trf.xlu2 }
 0x246   : > { %v798_v24 = vpack.c.bf16 %v782_v23, %v782_v23  ;;  %v7022_v60 = vsel %vm1220_vm12, %v7002_v28, %v1263_v53  ;;  %v1450_v23 = vor.u32 %v1449_v13, %v1445_v12 }
 0x247   : > { %v6106_v63 = vld [vmem:[#allocation2 + $0x28] sm:$0xff]  }
 0x248   : > { %807 = vst.msk [vmem:[#allocation2 + $0x34] sm:$0xf] %vm801_vm10, %v798_v24  ;;  %v1266_v1 = vshrl.u32 %v6106_v63, 16  ;;  %v1269_v2 = vshll.u32 %v6106_v63, 16  ;;  %v1454_v24 = vrot.slane %v1452_v14, 1 }
 0x24a   : > { %v1268_v7 = vrot.slane %v1266_v1, 3  ;;  %v1271_v9 = vrot.slane %v1269_v2, 4 }
 0x24c   : > { %5319 = vmatmul.msk.bf16.gmra.mxu0 %vm1135_vm11, %v6378_v27  ;;  %v1272_v19 = vor.u32 %v1271_v9, %v1268_v7  ;;  %v2030_v7 = vshll.u32 %v5853_v5, 16 }
 0x24d   : > { %v783_v30 = vpop.trf.xlu2 }
 0x24e   : > { %v799_v31 = vpack.c.bf16 %v783_v30, %v783_v30  ;;  %v7036_v27 = vsel %vm1220_vm12, %v1263_v53, %v1272_v19  ;;  %v5860_v30 = vld [vmem:[#allocation4 + $0x30] sm:$0xff]  ;;  %v2032_v12 = vrot.slane %v2030_v7, 1 }
 0x24f   : > { %5331 = vmatmul.msk.bf16.gmra.mxu1 %vm1135_vm11, %v7008_v32  ;;  %v6385_v33 = vld [vmem:[#allocation2 + $0x34] sm:$0xff]   ;;  %v5843_v53 = vld [vmem:[#allocation2 + $0x1c] sm:$0xff] }
 0x250   : > { %808 = vst.msk [vmem:[#allocation2 + $0x3c] sm:$0xf] %vm801_vm10, %v799_v31  ;;  %5323 = vmatmul.msk.bf16.vlgmr.msra.gmra.mxu2 %vm1135_vm11, %v6385_v33  ;;  %v6107_v36 = vld [vmem:[#allocation2 + $0x30] sm:$0xff]   ;;  %v5861_v31 = vld [vmem:[#allocation4 + $0x38] sm:$0xff]  ;;  %v1455_v33 = vsel %vm1443_vm13, %v1450_v23, %v1454_v24  ;;  %v1472_v13 = vshrl.u32 %v5843_v53, 16  ;;  %v2034_v23 = vshrl.u32 %v5853_v5, 16 }
 0x251   : > { %v1275_v39 = vshrl.u32 %v6107_v36, 16  ;;  %v1278_v40 = vshll.u32 %v6107_v36, 16  ;;  %2357 = vmatpush.bf16.msra.mxu2 %v5860_v30  ;;  %v1671_v36 = vshrl.u32 %v1661_v34, 16  ;;  %v1480_v30 = vshrl.u32 %v5844_v6, 16  ;;  %v6302_v6 = vld [vmem:[#allocation2 + $0x2c] sm:$0xff]  }
 0x253   : > { %v1277_v47 = vrot.slane %v1275_v39, 3  ;;  %v1280_v48 = vrot.slane %v1278_v40, 4  ;;  %v1673_v39 = vrot.slane %v1671_v36, 3  ;;  %v1676_v40 = vrot.slane %v1674_v37, 4 }
 0x254   : > { %v1482_v37 = vor.u32 %v1480_v30, %v1478_v15 }
 0x255   : > { %v784_v41 = vpop.trf.xlu2  ;;  %v7016_v57 = vor.u32 %v1280_v48, %v1277_v47  ;;  %v1677_v43 = vor.u32 %v1676_v40, %v1673_v39  ;;  %v1458_v48 = vor.u32 %v1456_v44, %v1454_v24  ;;  %v5855_v40 = vld [vmem:[#allocation2 + $0x2c] sm:$0xff] }
 0x256   : > { %v800_v42 = vpack.c.bf16 %v784_v41, %v784_v41  ;;  %v1460_v41 = vshll.u32 %v5842_v38, 16  ;;  %v2046_v44 = vshll.u32 %v5855_v40, 16 }
 0x257   : > { %v6108_v45 = vld [vmem:[#allocation2 + $0x38] sm:$0xff]   ;;  %v7048_v46 = vsel %vm1220_vm12, %v1272_v19, %v7016_v57  ;;  %v1686_v47 = vsel %vm1220_vm12, %v1677_v43, %v6990_v16  ;;  %v5854_v19 = vld [vmem:[#allocation2 + $0x24] sm:$0xff] }
 0x258   : > { %809 = vst.msk [vmem:[#allocation2 + $0x44] sm:$0xf] %vm801_vm10, %v800_v42  ;;  %v1284_v49 = vshrl.u32 %v6108_v45, 16  ;;  %v1287_v50 = vshll.u32 %v6108_v45, 16  ;;  %v5957_v51 = vunpack.c.h.b16 %v6108_v45  ;;  %v6384_v42 = vld [vmem:[#allocation2 + $0x2c] sm:$0xff]   ;;  %v1462_v45 = vrot.slane %v1460_v41, 1 }
 0x259   : > { %v2038_v22 = vshll.u32 %v5854_v19, 16 }
 0x25a   : > { %v1286_v54 = vrot.slane %v1284_v49, 3  ;;  %v1289_v55 = vrot.slane %v1287_v50, 4  ;;  %v1128_v59 = vpack.c.b16 %v1120_v56, %v5957_v51  ;;  %v1463_v49 = vsel %vm1443_vm13, %v1458_v48, %v1462_v45  ;;  %v5851_v50 = vld [vmem:[#allocation2 + $0xc] sm:$0xff]  ;;  %v5852_v51 = vld [vmem:[#allocation2 + $0x14] sm:$0xff] }
 0x25b   : > { %v2015_v62 = vshrl.u32 %v5851_v50, 16  ;;  %v1466_v4 = vor.u32 %v1464_v0, %v1462_v45  ;;  %v2026_v9 = vshrl.u32 %v5852_v51, 16  ;;  %v2042_v45 = vshrl.u32 %v5854_v19, 16 }
 0x25c   : > { %5320 = vmatmul.msk.bf16.gmra.mxu0 %vm1135_vm11, %v6380_v52  ;;  %v7018_v58 = vor.u32 %v1289_v55, %v1286_v54  ;;  %v2017_v52 = vshll.u32 %v5851_v50, 16  ;;  %v5960_v54 = vunpack.c.l.b16 %v6984_v8  ;;  %v2022_v55 = vshll.u32 %v5852_v51, 16 }
 0x25d   : > { %v2048_v50 = vrot.slane %v2046_v44, 1 }
 0x25e   : > { %v7027_v61 = vsel %vm1220_vm12, %v7016_v57, %v7018_v58  ;;  %v1300_v29 = vsel %vm1220_vm12, %v7018_v58, %v1299_v21  ;;  %v2019_v56 = vrot.slane %v2017_v52, 1  ;;  %v1848_v16 = vpack.c.b16 %v5960_v54, %v1645_v26  ;;  %v5845_v21 = vld [vmem:[#allocation2 + $0x2c] sm:$0xff]  ;;  %v6298_v26 = vld [vmem:[#allocation2 + $0x1c] sm:$0xff]  }
 0x25f   : > { %5332 = vmatmul.msk.bf16.gmra.mxu1 %vm1135_vm11, %v7022_v60  ;;  %5335 = vmatmul.msk.bf16.vlgmr.msra.gmra.mxu3 %vm1135_vm11, %v7027_v61  ;;  %v2024_v63 = vrot.slane %v2022_v55, 1  ;;  %v1484_v24 = vshll.u32 %v5845_v21, 16  ;;  %v1488_v51 = vshrl.u32 %v5845_v21, 16 }
 0x260   : > { %5324 = vmatmul.msk.bf16.gmra.mxu2 %vm1135_vm11, %v1128_v59  ;;  %2463 = vmatpush.bf16.msra.mxu3 %v5861_v31  ;;  %v1468_v59 = vshll.u32 %v5843_v53, 16  ;;  %v2020_v1 = vor.u32 %v2019_v56, %v2015_v62 }
 0x261   : > { %v2028_v14 = vor.u32 %v2026_v9, %v2024_v63  ;;  %v1486_v34 = vrot.slane %v1484_v24, 1  ;;  %v5857_v24 = vld [vmem:[#allocation2 + $0x3c] sm:$0xff] }
 0x262   : > { %v1470_v2 = vrot.slane %v1468_v59, 1  ;;  %v2025_v3 = vsel %vm1443_vm13, %v2020_v1, %v2024_v63  ;;  %v5856_v63 = vld [vmem:[#allocation2 + $0x34] sm:$0xff]  ;;  %v5847_v1 = vld [vmem:[#allocation2 + $0x3c] sm:$0xff] }
 0x263   : > { %v1487_v38 = vsel %vm1443_vm13, %v1482_v37, %v1486_v34  ;;  %v1490_v59 = vor.u32 %v1488_v51, %v1486_v34  ;;  %v2058_v34 = vshrl.u32 %v5856_v63, 16  ;;  %v1504_v44 = vshrl.u32 %v5847_v1, 16 }
 0x264   : > { %v1471_v8 = vsel %vm1443_vm13, %v1466_v4, %v1470_v2  ;;  %v1474_v17 = vor.u32 %v1472_v13, %v1470_v2  ;;  %v2050_v4 = vshrl.u32 %v5855_v40, 16  ;;  %v6304_v40 = vld [vmem:[#allocation2 + $0x34] sm:$0xff]  }
 0x26c   : > { %5321 = vmatmul.msk.bf16.gmra.mxu0 %vm1135_vm11, %v6382_v18  ;;  %v1479_v18 = vsel %vm1443_vm13, %v1474_v17, %v1478_v15  ;;  %v7101_v17 = vld [vmem:[#allocation2 + $0x40] sm:$0xff]  }
 0x26f   : > { %5333 = vmatmul.msk.bf16.gmra.mxu1 %vm1135_vm11, %v7036_v27  ;;  %5336 = vmatmul.msk.bf16.gmra.mxu3 %vm1135_vm11, %v1300_v29  ;;  %v2040_v29 = vrot.slane %v2038_v22, 1  ;;  %v1733_v22 = vshrl.u32 %v7101_v17, 16 }
 0x270   : > { %5373 = vmatmul.msk.bf16.vlgmr.msrb.gmra.mxu2 %vm1135_vm11, %v1455_v33  ;;  %v2036_v33 = vor.u32 %v2034_v23, %v2032_v12  ;;  %v1736_v23 = vshll.u32 %v7101_v17, 16 }
 0x271   : > { %v2044_v53 = vor.u32 %v2042_v45, %v2040_v29 }
 0x272   : > { %v2041_v36 = vsel %vm1443_vm13, %v2036_v33, %v2040_v29  ;;  %v1735_v29 = vrot.slane %v1733_v22, 3  ;;  %v1738_v30 = vrot.slane %v1736_v23, 4  ;;  %v1623_v33 = vld [vmem:[#allocation2 + $0x48] sm:$0xf]  ;;  %v6305_v22 = vld [vmem:[#allocation2 + $0x3c] sm:$0xff]  }
 0x273   : > { %v2049_v56 = vsel %vm1443_vm13, %v2044_v53, %v2048_v50  ;;  %v7115_v45 = vunpack.c.l.b16 %v1623_v33 }
 0x27c   : > { %5322 = vmatmul.msk.bf16.gmra.mxu0 %vm1135_vm11, %v6384_v42  ;;  %v5846_v42 = vld [vmem:[#allocation2 + $0x34] sm:$0xff] }
 0x27d   : > { %v1496_v9 = vshrl.u32 %v5846_v42, 16 }
 0x27f   : > { %5334 = vmatmul.msk.bf16.gmra.mxu1 %vm1135_vm11, %v7048_v46  ;;  %5385 = vmatmul.msk.bf16.vlgmr.msrb.gmra.mxu3 %vm1135_vm11, %v1686_v47  ;;  %v1492_v47 = vshll.u32 %v5846_v42, 16 }
 0x280   : > { %5374 = vmatmul.msk.bf16.gmra.mxu2 %vm1135_vm11, %v1463_v49  ;;  %v6300_v49 = vld [vmem:[#allocation2 + $0x24] sm:$0xff]  }
 0x281   : > { %v1494_v54 = vrot.slane %v1492_v47, 1 }
 0x28c   : > { %5397 = vmatmul.msk.bf16.vlgmr.msrb.gmra.mxu0 %vm1135_vm11, %v1848_v16  ;;  %v1495_v16 = vsel %vm1443_vm13, %v1490_v59, %v1494_v54 }
 0x28f   : > { %5386 = vmatmul.msk.bf16.gmra.mxu3 %vm1135_vm11, %v7008_v32  ;;  %5441 = vmatmul.msk.bf16.vlgmr.msrb.gmra.mxu1 %vm1135_vm11, %v2025_v3  ;;  %v2033_v32 = vsel %vm1443_vm13, %v2028_v14, %v2032_v12  ;;  %v2054_v3 = vshll.u32 %v5856_v63, 16  ;;  %v1396_v14 = vld [vmem:[#allocation2 + $0x44] sm:$0x1] }
 0x290   : > { %5375 = vmatmul.msk.bf16.gmra.mxu2 %vm1135_vm11, %v1471_v8  ;;  %v1500_v8 = vshll.u32 %v5847_v1, 16  ;;  %v1433_v19 = vunpack.c.l.b16 %v1396_v14  ;;  %v2066_v14 = vshrl.u32 %v5857_v24, 16 }
 0x291   : > { %v2056_v7 = vrot.slane %v2054_v3, 1 }
 0x292   : > { %v1502_v12 = vrot.slane %v1500_v8, 1 }
 0x294   : > { %v1506_v59 = vor.u32 %v1504_v44, %v1502_v12 }
 0x29c   : > { %5398 = vmatmul.msk.bf16.gmra.mxu0 %vm1135_vm11, %v6296_v11  ;;  %v2052_v11 = vor.u32 %v2050_v4, %v2048_v50  ;;  %v5858_v4 = vld [vmem:[#allocation2 + $0x44] sm:$0xff] }
 0x29e   : > { %v2057_v15 = vsel %vm1443_vm13, %v2052_v11, %v2056_v7 }
 0x29f   : > { %5387 = vmatmul.msk.bf16.gmra.mxu3 %vm1135_vm11, %v7022_v60  ;;  %5442 = vmatmul.msk.bf16.gmra.mxu1 %vm1135_vm11, %v2033_v32  ;;  %v1498_v32 = vor.u32 %v1496_v9, %v1494_v54 }
 0x2a0   : > { %5376 = vmatmul.msk.bf16.gmra.mxu2 %vm1135_vm11, %v1479_v18 }
 0x2a1   : > { %v1503_v18 = vsel %vm1443_vm13, %v1498_v32, %v1502_v12  ;;  %v2070_v12 = vshll.u32 %v5858_v4, 16 }
 0x2a9   : > { %v1169_v25 = vpop.f32.mrf.mxu0 }
 0x2ac   : > { %v1340_v31 = vpop.f32.mrf.mxu1  ;;  %5399 = vmatmul.msk.bf16.gmra.mxu0 %vm1135_vm11, %v6298_v26 }
 0x2ad   : > { %v7073_v35 = vadd.f32 %v1340_v31, %v1169_v25  ;;  %v2062_v31 = vshll.u32 %v5857_v24, 16 }
 0x2af   : > { %5388 = vmatmul.msk.bf16.gmra.mxu3 %vm1135_vm11, %v7036_v27  ;;  %5443 = vmatmul.msk.bf16.gmra.mxu1 %vm1135_vm11, %v2041_v36  ;;  %v2064_v42 = vrot.slane %v2062_v31, 1 }
 0x2b0   : > { %5377 = vmatmul.msk.bf16.gmra.mxu2 %vm1135_vm11, %v1487_v38  ;;  %v2177_v38 = vld [vmem:[#allocation2 + $0x10] sm:$0x8] }
 0x2b1   : > { %v1171_v39 = vpop.f32.mrf.mxu0  ;;  %v2214_v51 = vunpack.c.l.b16 %v2177_v38  ;;  %v2068_v33 = vor.u32 %v2066_v14, %v2064_v42 }
 0x2b4   : > { %v1342_v41 = vpop.f32.mrf.mxu1 }
 0x2b5   : > { %v7081_v43 = vadd.f32 %v1342_v41, %v1171_v39  ;;  %v7111_v39 = vld [vmem:[#allocation2 + $0x14] sm:$0xf]  ;;  %v7113_v41 = vor.u32 %v1738_v30, %v1735_v29 }
 0x2b7   : > { %v1740_v54 = vsel %vm1220_vm12, %v7018_v58, %v7113_v41 }
 0x2b9   : > { %v1174_v48 = vpop.f32.mrf.mxu0 }
 0x2bc   : > { %v1345_v52 = vpop.f32.mrf.mxu1  ;;  %5400 = vmatmul.msk.bf16.gmra.mxu0 %vm1135_vm11, %v6300_v49  ;;  %v2060_v49 = vor.u32 %v2058_v34, %v2056_v7 }
 0x2bd   : > { %v7084_v55 = vadd.f32 %v1345_v52, %v1174_v48  ;;  %v2215_v52 = vunpack.c.l.b16 %v7111_v39 }
 0x2bf   : > { %5389 = vmatmul.msk.bf16.gmra.mxu3 %vm1135_vm11, %v7048_v46  ;;  %5444 = vmatmul.msk.bf16.gmra.mxu1 %vm1135_vm11, %v2049_v56  ;;  %v2065_v56 = vsel %vm1443_vm13, %v2060_v49, %v2064_v42  ;;  %v2231_v63 = vpack.c.b16 %v2215_v52, %v2214_v51 }
 0x2c0   : > { %5378 = vmatmul.msk.bf16.gmra.mxu2 %vm1135_vm11, %v1495_v16  ;;  %v1669_v16 = vpack.c.b16 %v7115_v45, %v7115_v45 }
 0x2c1   : > { %v1176_v62 = vpop.f32.mrf.mxu0  ;;  %v2241_v7 = vshrl.u32 %v2231_v63, 16  ;;  %v2244_v9 = vshll.u32 %v2231_v63, 16 }
 0x2c2   : > { %v1742_v1 = vshrl.u32 %v1669_v16, 16  ;;  %v1745_v3 = vshll.u32 %v1669_v16, 16 }
 0x2c3   : > { %v2246_v32 = vrot.slane %v2244_v9, 4 }
 0x2c4   : > { %v1347_v0 = vpop.f32.mrf.mxu1  ;;  %v1747_v11 = vrot.slane %v1745_v3, 4 }
 0x2c5   : > { %v7092_v2 = vadd.f32 %v1347_v0, %v1176_v62 }
 0x2c9   : > { %v1179_v5 = vpop.f32.mrf.mxu0 }
 0x2cc   : > { %v1350_v10 = vpop.f32.mrf.mxu1  ;;  %5401 = vmatmul.msk.bf16.gmra.mxu0 %vm1135_vm11, %v6302_v6 }
 0x2cd   : > { %v7095_v13 = vadd.f32 %v1350_v10, %v1179_v5  ;;  %v1744_v10 = vrot.slane %v1742_v1, 3 }
 0x2cf   : > { %5390 = vmatmul.msk.bf16.gmra.mxu3 %vm1135_vm11, %v7027_v61  ;;  %5445 = vmatmul.msk.bf16.gmra.mxu1 %vm1135_vm11, %v2057_v15  ;;  %v1442_v61 = vpack.c.b16 %v1433_v19, %v1433_v19  ;;  %v2243_v15 = vrot.slane %v2241_v7, 3  ;;  %v1748_v23 = vor.u32 %v1747_v11, %v1744_v10 }
 0x2d0   : > { %5379 = vmatmul.msk.bf16.gmra.mxu2 %vm1135_vm11, %v1503_v18 }
 0x2d1   : > { %v7104_v21 = vpop.f32.mrf.mxu0  ;;  %v1508_v36 = vshll.u32 %v1442_v61, 16  ;;  %v2072_v61 = vrot.slane %v2070_v12, 1  ;;  %v2247_v34 = vor.u32 %v2246_v32, %v2243_v15  ;;  %v1749_v24 = vsel %vm1220_vm12, %v7113_v41, %v1748_v23 }
 0x2d3   : > { %v1199_v26 = vpop.f32.mrf.mxu2  ;;  %v1510_v50 = vrot.slane %v1508_v36, 1 }
 0x2d4   : > { %v7109_v25 = vpop.f32.mrf.mxu1 }
 0x2d5   : > { %v1511_v62 = vsel %vm1443_vm13, %v1506_v59, %v1510_v50 }
 0x2d9   : > { %v1184_v37 = vpop.f32.mrf.mxu0 }
 0x2db   : > { %v1201_v48 = vpop.f32.mrf.mxu2 }
 0x2dc   : > { %v1355_v47 = vpop.f32.mrf.mxu1  ;;  %5402 = vmatmul.msk.bf16.gmra.mxu0 %vm1135_vm11, %v6304_v40  ;;  %v2256_v40 = vsel %vm1220_vm12, %v2247_v34, %v7002_v28  ;;  %v5988_v28 = vunpack.c.l.b16 %v6996_v20 }
 0x2dd   : > { %v7119_v53 = vadd.f32 %v1355_v47, %v1184_v37  ;;  %v2073_v37 = vsel %vm1443_vm13, %v2068_v33, %v2072_v61  ;;  %v6308_v33 = vld [vmem:[#allocation2 + $0x1c] sm:$0xff]  }
 0x2df   : > { %5391 = vmatmul.msk.bf16.gmra.mxu3 %vm1135_vm11, %v1740_v54  ;;  %5446 = vmatmul.msk.bf16.gmra.mxu1 %vm1135_vm11, %v2065_v56  ;;  %v5985_v54 = vunpack.c.h.b16 %v7101_v17  ;;  %v2074_v56 = vshrl.u32 %v5858_v4, 16  ;;  %v2418_v17 = vpack.c.b16 %v5988_v28, %v2215_v52  ;;  %v5862_v4 = vld [vmem:[#allocation2 + $0x14] sm:$0xff] }
 0x2e0   : > { %5380 = vmatmul.msk.bf16.gmra.mxu2 %vm1135_vm11, %v1511_v62  ;;  %v2587_v11 = vshll.u32 %v5862_v4, 16  ;;  %v2585_v52 = vshrl.u32 %v5862_v4, 16 }
 0x2e1   : > { %v7132_v0 = vpop.f32.mrf.mxu0  ;;  %v1855_v63 = vpack.c.b16 %v7115_v45, %v5985_v54  ;;  %v5863_v45 = vld [vmem:[#allocation2 + $0x1c] sm:$0xff] }
 0x2e2   : > { %v1370_v58 = vpop.f32.mrf.mxu3  ;;  %v2589_v32 = vrot.slane %v2587_v11, 1 }
 0x2e3   : > { %v7135_v8 = vadd.f32 %v1370_v58, %v1199_v26  ;;  %v1204_v6 = vpop.f32.mrf.mxu2  ;;  %v1967_v26 = vld [vmem:[#allocation2 + $0x4c] sm:$0x1]  ;;  %v2076_v58 = vor.u32 %v2074_v56, %v2072_v61 }
 0x2e4   : > { %v7137_v5 = vpop.f32.mrf.mxu1  ;;  %v2004_v38 = vunpack.c.l.b16 %v1967_v26 }
 0x2e6   : > { %v2013_v47 = vpack.c.b16 %v2004_v38, %v2004_v38 }
 0x2e8   : > { %v2078_v59 = vshll.u32 %v2013_v47, 16 }
 0x2e9   : > { %v1189_v18 = vpop.f32.mrf.mxu0 }
 0x2ea   : > { %v1372_v19 = vpop.f32.mrf.mxu3  ;;  %v2080_v1 = vrot.slane %v2078_v59, 1 }
 0x2eb   : > { %v7139_v29 = vadd.f32 %v1372_v19, %v1201_v48  ;;  %v1206_v31 = vpop.f32.mrf.mxu2 }
 0x2ec   : > { %v1360_v30 = vpop.f32.mrf.mxu1  ;;  %5403 = vmatmul.msk.bf16.gmra.mxu0 %vm1135_vm11, %v6305_v22  ;;  %v2081_v20 = vsel %vm1443_vm13, %v2076_v58, %v2080_v1  ;;  %v2590_v22 = vor.u32 %v2589_v32, %v2585_v52  ;;  %v6310_v58 = vld [vmem:[#allocation2 + $0x24] sm:$0xff]  }
 0x2ed   : > { %v7142_v36 = vadd.f32 %v1360_v30, %v1189_v18  ;;  %v5876_v1 = vld [vmem:[#allocation5 + $0x28] sm:$0xff] }
 0x2ee   : > { %3078 = vmatpush.bf16.msra.mxu1 %v5876_v1 }
 0x2ef   : > { %5392 = vmatmul.msk.bf16.gmra.mxu3 %vm1135_vm11, %v1749_v24  ;;  %5447 = vmatmul.msk.bf16.gmra.mxu1 %vm1135_vm11, %v2073_v37 }
 0x2f0   : > { %5453 = vmatmul.msk.bf16.vlgmr.msra.gmra.mxu2 %vm1135_vm11, %v2256_v40 }
 0x2f1   : > { %v7151_v44 = vpop.f32.mrf.mxu0 }
 0x2f2   : > { %v1375_v42 = vpop.f32.mrf.mxu3 }
 0x2f3   : > { %v7154_v48 = vadd.f32 %v1375_v42, %v1204_v6  ;;  %v1551_v50 = vpop.f32.mrf.mxu2 }
 0x2f4   : > { %v7156_v49 = vpop.f32.mrf.mxu1  ;;  %v1591_v51 = vadd.f32 %v1551_v50, %v7073_v35  ;;  %v2596_v50 = vshrl.u32 %v5863_v45, 16 }
 0x2f9   : > { %v1194_v16 = vpop.f32.mrf.mxu0 }
 0x2fa   : > { %v1377_v62 = vpop.f32.mrf.mxu3 }
 0x2fb   : > { %v7162_v3 = vadd.f32 %v1377_v62, %v1206_v31  ;;  %v1553_v7 = vpop.f32.mrf.mxu2 }
 0x2fc   : > { %v1365_v6 = vpop.f32.mrf.mxu1  ;;  %5404 = vmatmul.msk.bf16.gmra.mxu0 %vm1135_vm11, %v1855_v63  ;;  %v1592_v35 = vadd.f32 %v1553_v7, %v7081_v43  ;;  %v2592_v43 = vshll.u32 %v5863_v45, 16  ;;  %v6150_v7 = vld [vmem:[#allocation2 + $0x38] sm:$0xff]  }
 0x2fd   : > { %v7165_v9 = vadd.f32 %v1365_v6, %v1194_v16  ;;  %v1353_v16 = vadd.f32 %v7109_v25, %v7104_v21  ;;  %v2288_v45 = vshll.u32 %v6150_v7, 16 }
 0x2fe   : > { %v2594_v18 = vrot.slane %v2592_v43, 1 }
 0x2ff   : > { %5448 = vmatmul.msk.bf16.gmra.mxu1 %vm1135_vm11, %v2081_v20  ;;  %5465 = vmatmul.msk.bf16.vlgmr.msra.gmra.mxu3 %vm1135_vm11, %v2418_v17  ;;  %v2285_v20 = vshrl.u32 %v6150_v7, 16 }
 0x300   : > { %5454 = vmatmul.msk.bf16.gmra.mxu2 %vm1135_vm11, %v7022_v60  ;;  %v2595_v30 = vsel %vm1443_vm13, %v2590_v22, %v2594_v18 }
 0x301   : > { %v7173_v10 = vpop.f32.mrf.mxu0  ;;  %v2287_v43 = vrot.slane %v2285_v20, 3  ;;  %v2193_v20 = vld [vmem:[#allocation2 + $0x50] sm:$0xf] }
 0x302   : > { %v1789_v12 = vpop.f32.mrf.mxu3 }
 0x303   : > { %v1829_v14 = vadd.f32 %v1789_v12, %v1591_v51  ;;  %v1556_v15 = vpop.f32.mrf.mxu2 }
 0x304   : > { %v1593_v39 = vadd.f32 %v1556_v15, %v7084_v55  ;;  %v5864_v55 = vld [vmem:[#allocation2 + $0x24] sm:$0xff]  ;;  %v2290_v15 = vrot.slane %v2288_v45, 4 }
 0x305   : > { %v2600_v40 = vshll.u32 %v5864_v55, 16  ;;  %v2604_v12 = vshrl.u32 %v5864_v55, 16 }
 0x307   : > { %v2602_v51 = vrot.slane %v2600_v40, 1 }
 0x309   : > { %v1895_v19 = vpop.f32.mrf.mxu0  ;;  %v2606_v52 = vor.u32 %v2604_v12, %v2602_v51 }
 0x30a   : > { %v7178_v23 = vadd.f32 %v1895_v19, %v1829_v14  ;;  %v1791_v61 = vpop.f32.mrf.mxu3 }
 0x30b   : > { %v1830_v26 = vadd.f32 %v1791_v61, %v1592_v35  ;;  %v1558_v60 = vpop.f32.mrf.mxu2 }
 0x30c   : > { %5509 = vmatmul.msk.bf16.vlgmr.msra.gmra.mxu0 %vm1135_vm11, %v2595_v30  ;;  %v1594_v31 = vadd.f32 %v1558_v60, %v7092_v2  ;;  %v2598_v2 = vor.u32 %v2596_v50, %v2594_v18  ;;  %v1358_v18 = vadd.f32 %v7137_v5, %v7132_v0  ;;  %v6312_v30 = vld [vmem:[#allocation2 + $0x2c] sm:$0xff]   ;;  %v5866_v60 = vld [vmem:[#allocation2 + $0x34] sm:$0xff] }
 0x30f   : > { %5466 = vmatmul.msk.bf16.gmra.mxu3 %vm1135_vm11, %v6308_v33 }
 0x310   : > { %5455 = vmatmul.msk.bf16.gmra.mxu2 %vm1135_vm11, %v7036_v27  ;;  %v2603_v27 = vsel %vm1443_vm13, %v2598_v2, %v2602_v51 }
 0x311   : > { %v1897_v34 = vpop.f32.mrf.mxu0 }
 0x312   : > { %v7186_v24 = vadd.f32 %v1897_v34, %v1830_v26  ;;  %v1794_v37 = vpop.f32.mrf.mxu3  ;;  %v2291_v26 = vor.u32 %v2290_v15, %v2287_v43  ;;  %v2616_v34 = vshll.u32 %v5866_v60, 16 }
 0x313   : > { %v1831_v38 = vadd.f32 %v1794_v37, %v1593_v39  ;;  %v1561_v42 = vpop.f32.mrf.mxu2 }
 0x314   : > { %v1595_v47 = vadd.f32 %v1561_v42, %v7095_v13  ;;  %v5865_v13 = vld [vmem:[#allocation2 + $0x2c] sm:$0xff]  ;;  %v2618_v42 = vrot.slane %v2616_v34, 1 }
 0x315   : > { %v2608_v17 = vshll.u32 %v5865_v13, 16  ;;  %v2612_v40 = vshrl.u32 %v5865_v13, 16 }
 0x317   : > { %v2610_v14 = vrot.slane %v2608_v17, 1  ;;  %v2620_v17 = vshrl.u32 %v5866_v60, 16 }
 0x319   : > { %v1900_v54 = vpop.f32.mrf.mxu0  ;;  %v2611_v22 = vsel %vm1443_vm13, %v2606_v52, %v2610_v14  ;;  %v2614_v50 = vor.u32 %v2612_v40, %v2610_v14  ;;  %v2622_v14 = vor.u32 %v2620_v17, %v2618_v42  ;;  %v5875_v52 = vld [vmem:[#allocation5 + $0x20] sm:$0xff] }
 0x31a   : > { %v7189_v56 = vadd.f32 %v1900_v54, %v1831_v38  ;;  %v1796_v59 = vpop.f32.mrf.mxu3  ;;  %3079 = vmatpush.bf16.msra.mxu1 %v5875_v52 }
 0x31b   : > { %v1832_v28 = vadd.f32 %v1796_v59, %v1594_v31  ;;  %v1563_v62 = vpop.f32.mrf.mxu2  ;;  %v2292_v31 = vsel %vm1220_vm12, %v7016_v57, %v2291_v26  ;;  %v2619_v57 = vsel %vm1443_vm13, %v2614_v50, %v2618_v42 }
 0x31c   : > { %5510 = vmatmul.msk.bf16.gmra.mxu0 %vm1135_vm11, %v2603_v27  ;;  %v1596_v63 = vadd.f32 %v1563_v62, %v1353_v16  ;;  %v6314_v16 = vld [vmem:[#allocation2 + $0x34] sm:$0xff]   ;;  %v7224_v62 = vld [vmem:[#allocation2 + $0x48] sm:$0xff]  }
 0x31d   : > { %v2303_v7 = vshrl.u32 %v7224_v62, 16 }
 0x31f   : > { %5467 = vmatmul.msk.bf16.gmra.mxu3 %vm1135_vm11, %v6310_v58  ;;  %v2305_v45 = vrot.slane %v2303_v7, 3 }
 0x320   : > { %5456 = vmatmul.msk.bf16.gmra.mxu2 %vm1135_vm11, %v7048_v46 }
 0x321   : > { %v1902_v6 = vpop.f32.mrf.mxu0 }
 0x322   : > { %v7198_v35 = vadd.f32 %v1902_v6, %v1832_v28  ;;  %v1799_v21 = vpop.f32.mrf.mxu3  ;;  %v5867_v28 = vld [vmem:[#allocation2 + $0x3c] sm:$0xff] }
 0x323   : > { %v1833_v25 = vadd.f32 %v1799_v21, %v1595_v47  ;;  %v1566_v4 = vpop.f32.mrf.mxu2  ;;  %v2624_v13 = vshll.u32 %v5867_v28, 16  ;;  %v2306_v21 = vshll.u32 %v7224_v62, 16 }
 0x324   : > { %v1597_v11 = vadd.f32 %v1566_v4, %v7119_v53 }
 0x325   : > { %v2626_v4 = vrot.slane %v2624_v13, 1 }
 0x329   : > { %v1905_v39 = vpop.f32.mrf.mxu0 }
 0x32a   : > { %v7201_v32 = vadd.f32 %v1905_v39, %v1833_v25  ;;  %v1801_v46 = vpop.f32.mrf.mxu3  ;;  %v2230_v39 = vunpack.c.l.b16 %v2193_v20 }
 0x32b   : > { %v1834_v19 = vadd.f32 %v1801_v46, %v1596_v63  ;;  %v1568_v61 = vpop.f32.mrf.mxu2  ;;  %v2627_v46 = vsel %vm1443_vm13, %v2622_v14, %v2626_v4 }
 0x32c   : > { %5511 = vmatmul.msk.bf16.gmra.mxu0 %vm1135_vm11, %v2611_v22  ;;  %v1598_v53 = vadd.f32 %v1568_v61, %v1358_v18  ;;  %v2239_v22 = vpack.c.b16 %v2230_v39, %v2230_v39  ;;  %v5868_v61 = vld [vmem:[#allocation2 + $0x44] sm:$0xff] }
 0x32d   : > { %v2636_v7 = vshrl.u32 %v5868_v61, 16 }
 0x32e   : > { %v2312_v60 = vshrl.u32 %v2239_v22, 16 }
 0x32f   : > { %5468 = vmatmul.msk.bf16.gmra.mxu3 %vm1135_vm11, %v6312_v30 }
 0x330   : > { %5457 = vmatmul.msk.bf16.gmra.mxu2 %vm1135_vm11, %v2292_v31  ;;  %v2315_v31 = vshll.u32 %v2239_v22, 16 }
 0x331   : > { %v1907_v33 = vpop.f32.mrf.mxu0 }
 0x332   : > { %v7211_v55 = vadd.f32 %v1907_v33, %v1834_v19  ;;  %v1804_v0 = vpop.f32.mrf.mxu3  ;;  %v6316_v19 = vld [vmem:[#allocation2 + $0x3c] sm:$0xff]   ;;  %v2317_v40 = vrot.slane %v2315_v31, 4 }
 0x333   : > { %v1835_v5 = vadd.f32 %v1804_v0, %v1597_v11  ;;  %v1571_v37 = vpop.f32.mrf.mxu2  ;;  %v2308_v11 = vrot.slane %v2306_v21, 4  ;;  %v2632_v0 = vshll.u32 %v5868_v61, 16 }
 0x334   : > { %v1599_v38 = vadd.f32 %v1571_v37, %v7142_v36  ;;  %v2301_v36 = vsel %vm1220_vm12, %v2291_v26, %v7113_v41  ;;  %v2628_v37 = vshrl.u32 %v5867_v28, 16 }
 0x335   : > { %v2634_v42 = vrot.slane %v2632_v0, 1 }
 0x337   : > { %v2638_v20 = vor.u32 %v2636_v7, %v2634_v42 }
 0x339   : > { %v1910_v47 = vpop.f32.mrf.mxu0 }
 0x33a   : > { %v7214_v51 = vadd.f32 %v1910_v47, %v1835_v5  ;;  %v1806_v54 = vpop.f32.mrf.mxu3  ;;  %v7246_v47 = vpop.f32.mrf.mxu1 }
 0x33b   : > { %v1836_v2 = vadd.f32 %v1806_v54, %v1598_v53  ;;  %v7218_v59 = vpop.f32.mrf.mxu2 }
 0x33c   : > { %5512 = vmatmul.msk.bf16.gmra.mxu0 %vm1135_vm11, %v2619_v57 }
 0x33f   : > { %5469 = vmatmul.msk.bf16.gmra.mxu3 %vm1135_vm11, %v6314_v16 }
 0x340   : > { %5458 = vmatmul.msk.bf16.gmra.mxu2 %vm1135_vm11, %v2301_v36 }
 0x341   : > { %v1912_v27 = vpop.f32.mrf.mxu0 }
 0x342   : > { %v7226_v63 = vadd.f32 %v1912_v27, %v1836_v2  ;;  %v1809_v58 = vpop.f32.mrf.mxu3  ;;  %v5869_v27 = vld [vmem:[#allocation2 + $0x4c] sm:$0xff]  ;;  %v2121_v13 = vpop.f32.mrf.mxu1 }
 0x343   : > { %v1837_v1 = vadd.f32 %v1809_v58, %v1599_v38  ;;  %v1576_v6 = vpop.f32.mrf.mxu2  ;;  %v2314_v38 = vrot.slane %v2312_v60, 3  ;;  %v2640_v21 = vshll.u32 %v5869_v27, 16 }
 0x344   : > { %v1601_v25 = vadd.f32 %v1576_v6, %v7165_v9  ;;  %v2309_v9 = vor.u32 %v2308_v11, %v2305_v45  ;;  %v6013_v11 = vunpack.c.h.b16 %v7224_v62  ;;  %v2644_v62 = vshrl.u32 %v5869_v27, 16 }
 0x345   : > { %v2318_v57 = vor.u32 %v2317_v40, %v2314_v38  ;;  %v2642_v45 = vrot.slane %v2640_v21, 1 }
 0x346   : > { %v2310_v26 = vsel %vm1220_vm12, %v7113_v41, %v2309_v9  ;;  %v2630_v41 = vor.u32 %v2628_v37, %v2626_v4  ;;  %v2537_v4 = vld [vmem:[#allocation2 + $0x54] sm:$0x1] }
 0x347   : > { %v2319_v28 = vsel %vm1220_vm12, %v2309_v9, %v2318_v57  ;;  %v2574_v14 = vunpack.c.l.b16 %v2537_v4  ;;  %v2643_v9 = vsel %vm1443_vm13, %v2638_v20, %v2642_v45  ;;  %v2646_v0 = vor.u32 %v2644_v62, %v2642_v45  ;;  %v5873_v45 = vld [vmem:[#allocation5 + $0x10] sm:$0xff] }
 0x348   : > { %v2635_v16 = vsel %vm1443_vm13, %v2630_v41, %v2634_v42  ;;  %3260 = vmatpush.bf16.msrb.mxu2 %v5873_v45 }
 0x349   : > { %v1915_v12 = vpop.f32.mrf.mxu0 }
 0x34a   : > { %v7231_v43 = vadd.f32 %v1915_v12, %v1837_v1  ;;  %v7233_v15 = vpop.f32.mrf.mxu3  ;;  %v2123_v61 = vpop.f32.mrf.mxu1 }
 0x34b   : > { %v7237_v18 = vpop.f32.mrf.mxu2 }
 0x34c   : > { %5513 = vmatmul.msk.bf16.gmra.mxu0 %vm1135_vm11, %v2627_v46 }
 0x34f   : > { %5470 = vmatmul.msk.bf16.gmra.mxu3 %vm1135_vm11, %v6316_v19  ;;  %v2425_v19 = vpack.c.b16 %v2230_v39, %v6013_v11  ;;  %v5874_v11 = vld [vmem:[#allocation5 + $0x18] sm:$0xff] }
 0x350   : > { %5459 = vmatmul.msk.bf16.gmra.mxu2 %vm1135_vm11, %v2310_v26  ;;  %3080 = vmatpush.bf16.msra.mxu1 %v5874_v11 }
 0x351   : > { %v7242_v53 = vpop.f32.mrf.mxu0 }
 0x352   : > { %v1814_v30 = vpop.f32.mrf.mxu3 }
 0x353   : > { %v1839_v33 = vadd.f32 %v1814_v30, %v1601_v25  ;;  %v1581_v5 = vpop.f32.mrf.mxu2 }
 0x354   : > { %v1603_v34 = vadd.f32 %v1581_v5, %v7135_v8  ;;  %v6317_v8 = vld [vmem:[#allocation2 + $0x44] sm:$0xff]  }
 0x359   : > { %v1920_v50 = vpop.f32.mrf.mxu0 }
 0x35a   : > { %v7248_v54 = vadd.f32 %v1920_v50, %v1839_v33  ;;  %v7250_v2 = vpop.f32.mrf.mxu3 }
 0x35b   : > { %v7254_v36 = vpop.f32.mrf.mxu2 }
 0x35c   : > { %5514 = vmatmul.msk.bf16.gmra.mxu0 %vm1135_vm11, %v2635_v16  ;;  %v2161_v16 = vadd.f32 %v2121_v13, %v7178_v23 }
 0x35f   : > { %5471 = vmatmul.msk.bf16.gmra.mxu3 %vm1135_vm11, %v6317_v8 }
 0x360   : > { %5460 = vmatmul.msk.bf16.gmra.mxu2 %vm1135_vm11, %v2319_v28 }
 0x361   : > { %v7258_v58 = vpop.f32.mrf.mxu0 }
 0x362   : > { %v1819_v1 = vpop.f32.mrf.mxu3 }
 0x363   : > { %v1841_v6 = vadd.f32 %v1819_v1, %v1603_v34  ;;  %v1586_v25 = vpop.f32.mrf.mxu2  ;;  %v2126_v34 = vpop.f32.mrf.mxu1  ;;  %v7286_v1 = vld [vmem:[%s7952_s5] ss:$0 sm:$0xff] }
 0x364   : > { %v1605_v17 = vadd.f32 %v1586_v25, %v7154_v48  ;;  %v2583_v48 = vpack.c.b16 %v2574_v14, %v2574_v14 }
 0x366   : > { %v2648_v30 = vshll.u32 %v2583_v48, 16 }
 0x368   : > { %v2650_v5 = vrot.slane %v2648_v30, 1 }
 0x369   : > { %v1925_v12 = vpop.f32.mrf.mxu0 }
 0x36a   : > { %v7263_v52 = vadd.f32 %v1925_v12, %v1841_v6  ;;  %v7265_v46 = vpop.f32.mrf.mxu3  ;;  %v2651_v39 = vsel %vm1443_vm13, %v2646_v0, %v2650_v5  ;;  %v5871_v0 = vld [vmem:[#allocation5] sm:$0xff] }
 0x36b   : > { %v7269_v22 = vpop.f32.mrf.mxu2  ;;  %v2128_v50 = vpop.f32.mrf.mxu1 }
 0x36c   : > { %5515 = vmatmul.msk.bf16.gmra.mxu0 %vm1135_vm11, %v2643_v9 }
 0x36f   : > { %5472 = vmatmul.msk.bf16.gmra.mxu3 %vm1135_vm11, %v2425_v19  ;;  %v5872_v19 = vld [vmem:[#allocation5 + $0x8] sm:$0xff] }
 0x370   : > { %3261 = vmatpush.bf16.msrb.mxu2 %v5872_v19 }
 0x371   : > { %v7272_v26 = vpop.f32.mrf.mxu0 }
 0x372   : > { %v1824_v60 = vpop.f32.mrf.mxu3 }
 0x373   : > { %v1843_v31 = vadd.f32 %v1824_v60, %v1605_v17  ;;  %v2359_v33 = vpop.f32.mrf.mxu2  ;;  %v7288_v25 = vpop.f32.mrf.mxu1  ;;  %v2162_v17 = vadd.f32 %v2123_v61, %v7186_v24  ;;  %v2163_v60 = vadd.f32 %v2126_v34, %v7189_v56 }
 0x374   : > { %v2399_v28 = vadd.f32 %v2359_v33, %v2161_v16  ;;  %3262 = vmatpush.bf16.msrb.mxu2 %v5871_v0 }
 0x379   : > { %v1930_v37 = vpop.f32.mrf.mxu0 }
 0x37a   : > { %v7275_v38 = vadd.f32 %v1930_v37, %v1843_v31  ;;  %v7277_v40 = vpop.f32.mrf.mxu3 }
 0x37b   : > { %v2361_v42 = vpop.f32.mrf.mxu2  ;;  %v7294_v33 = vpop.f32.mrf.mxu1 }
 0x37c   : > { %5516 = vmatmul.msk.bf16.gmra.mxu0 %vm1135_vm11, %v2651_v39  ;;  %v2400_v23 = vadd.f32 %v2361_v42, %v2162_v17  ;;  %v5887_v42 = vld [vmem:[#allocation5 + $0x40] sm:$0xff] }
 0x37d   : > { %3486 = vmatpush.bf16.msrb.mxu3 %v5887_v42 }
 0x381   : > { %v7280_v41 = vpop.f32.mrf.mxu0 }
 0x382   : > { %v2465_v57 = vpop.f32.mrf.mxu3 }
 0x383   : > { %v2364_v8 = vpop.f32.mrf.mxu2  ;;  %v2505_v27 = vadd.f32 %v2465_v57, %v2399_v28  ;;  %v7296_v28 = vld [vmem:[#allocation3 + $0x4] sm:$0xf] }
 0x384   : > { %v2401_v5 = vadd.f32 %v2364_v8, %v2163_v60  ;;  %v3006_v17 = vunpack.c.l.b16 %v7296_v28  ;;  %v2164_v8 = vadd.f32 %v2128_v50, %v7198_v35 }
 0x389   : > { %v2691_v6 = vpop.f32.mrf.mxu0 }
 0x38a   : > { %v2731_v7 = vadd.f32 %v2691_v6, %v2505_v27  ;;  %v2467_v21 = vpop.f32.mrf.mxu3  ;;  %v2960_v27 = vld [vmem:[#allocation3] sm:$0x8] }
 0x38b   : > { %v2366_v20 = vpop.f32.mrf.mxu2  ;;  %v2506_v14 = vadd.f32 %v2467_v21, %v2400_v23  ;;  %v5886_v21 = vld [vmem:[#allocation5 + $0x38] sm:$0xff]  ;;  %v3123_v45 = vunpack.c.l.b16 %v2960_v27  ;;  %v2165_v27 = vadd.f32 %v7288_v25, %v7201_v32 }
 0x38c   : > { %v2751_v4 = vadd.f32 %v7286_v1, %v2731_v7  ;;  %3487 = vmatpush.bf16.msrb.mxu3 %v5886_v21  ;;  %v5888_v21 = vld [vmem:[#allocation5 + $0x48] sm:$0xff] }
 0x38d   : > { %v3124_v35 = vpack.c.b16 %v3006_v17, %v3123_v45 }
 0x38e   : > { %v2783_v13 = vmul.f32 0.044715, %v2751_v4  ;;  %v2767_v60 = vmul.f32 0.5, %v2751_v4 }
 0x390   : > { %v2799_v12 = vmul.f32 %v2783_v13, %v2751_v4 }
 0x391   : > { %v2693_v9 = vpop.f32.mrf.mxu0 }
 0x392   : > { %v2815_v48 = vmul.f32 %v2799_v12, %v2751_v4  ;;  %v2732_v62 = vadd.f32 %v2693_v9, %v2506_v14  ;;  %v2470_v30 = vpop.f32.mrf.mxu3  ;;  %v5890_v12 = vld [vmem:[#allocation5 + $0x58] sm:$0xff]  ;;  %v2402_v9 = vadd.f32 %v2366_v20, %v2164_v8  ;;  %v5889_v20 = vld [vmem:[#allocation5 + $0x50] sm:$0xff] }
 0x393   : > { %v2369_v31 = vpop.f32.mrf.mxu2  ;;  %v2507_v16 = vadd.f32 %v2470_v30, %v2401_v5  ;;  %v7306_v30 = vpop.f32.mrf.mxu1  ;;  %3740 = vmatpush.bf16.msrb.mxu0 %v5890_v12 }
 0x394   : > { %v2831_v24 = vadd.f32 %v2815_v48, %v2751_v4  ;;  %v2752_v61 = vadd.f32 %v7286_v1, %v2732_v62  ;;  %v5885_v62 = vld [vmem:[#allocation5 + $0x30] sm:$0xff]  ;;  %v3134_v4 = vshrl.u32 %v3124_v35, 16  ;;  %v2403_v8 = vadd.f32 %v2369_v31, %v2165_v27 }
 0x395   : > { %3488 = vmatpush.bf16.msrb.mxu3 %v5885_v62  ;;  %v7323_v62 = vld [vmem:[#allocation3 + $0x4] sm:$0xff]  ;;  %v2167_v28 = vadd.f32 %v7306_v30, %v7214_v51 }
 0x396   : > { %v2847_v37 = vmul.f32 0.7978846, %v2831_v24  ;;  %v2784_v39 = vmul.f32 0.044715, %v2752_v61  ;;  %v3374_v27 = vshll.u32 %v7323_v62, 16 }
 0x397   : > { %3741 = vmatpush.bf16.msrb.mxu0 %v5889_v20 }
 0x398   : > { %6469 = vtanh.f32 %v2847_v37  ;;  %v2800_v57 = vmul.f32 %v2784_v39, %v2752_v61 }
 0x399   : > { %v2696_v6 = vpop.f32.mrf.mxu0 }
 0x39a   : > { %v2816_v56 = vmul.f32 %v2800_v57, %v2752_v61  ;;  %v2733_v34 = vadd.f32 %v2696_v6, %v2507_v16  ;;  %v2472_v7 = vpop.f32.mrf.mxu3 }
 0x39b   : > { %v7303_v11 = vpop.f32.mrf.mxu2  ;;  %v2508_v0 = vadd.f32 %v2472_v7, %v2402_v9  ;;  %v3137_v7 = vshll.u32 %v3124_v35, 16  ;;  %3742 = vmatpush.bf16.msrb.mxu0 %v5888_v21 }
 0x39c   : > { %v2832_v23 = vadd.f32 %v2816_v56, %v2752_v61  ;;  %v7301_v13 = vadd.f32 %v7286_v1, %v2733_v34 }
 0x39e   : > { %v6470_v14 = vpop.eup %6469  ;;  %v2848_v19 = vmul.f32 0.7978846, %v2832_v23  ;;  %v2785_v48 = vmul.f32 0.044715, %v7301_v13 }
 0x39f   : > { %v2879_v24 = vadd.f32 1.0, %v6470_v14  ;;  %v2768_v14 = vmul.f32 0.5, %v2752_v61  ;;  %v2166_v61 = vadd.f32 %v7294_v33, %v7211_v55 }
 0x3a0   : > { %6471 = vtanh.f32 %v2848_v19  ;;  %v2801_v50 = vmul.f32 %v2785_v48, %v7301_v13  ;;  %v3136_v19 = vrot.slane %v3134_v4, 3  ;;  %v3139_v48 = vrot.slane %v3137_v7, 4 }
 0x3a1   : > { %v2895_v5 = vmul.f32 %v2879_v24, %v2767_v60  ;;  %v2698_v37 = vpop.f32.mrf.mxu0  ;;  %v3546_v60 = vld [vmem:[#allocation3 + $0x8] sm:$0x8]  ;;  %v7325_v24 = vpop.f32.mrf.mxu1  ;;  %v2404_v7 = vadd.f32 %v7303_v11, %v2166_v61 }
 0x3a2   : > { %v2817_v39 = vmul.f32 %v2801_v50, %v7301_v13  ;;  %v2734_v42 = vadd.f32 %v2698_v37, %v2508_v0  ;;  %v2475_v57 = vpop.f32.mrf.mxu3  ;;  %v3587_v20 = vunpack.c.l.b16 %v3546_v60  ;;  %v3140_v4 = vor.u32 %v3139_v48, %v3136_v19 }
 0x3a3   : > { %v2927_v16 = vpack.c.bf16 %v2895_v5, %v2895_v5  ;;  %v7318_v34 = vpop.f32.mrf.mxu2  ;;  %v2509_v25 = vadd.f32 %v2475_v57, %v2403_v8  ;;  %v2769_v8 = vmul.f32 0.5, %v7301_v13 }
 0x3a4   : > { %v2833_v6 = vadd.f32 %v2817_v39, %v7301_v13  ;;  %v7316_v56 = vadd.f32 %v7286_v1, %v2734_v42  ;;  %v2405_v51 = vadd.f32 %v7318_v34, %v2167_v28 }
 0x3a5   : > { %2944 = vst.msk [vmem:[#allocation3 + $0xc] sm:$0xf] %vm2943_vm14, %v2927_v16 }
 0x3a6   : > { %v6472_v45 = vpop.eup %6471  ;;  %v2849_v23 = vmul.f32 0.7978846, %v2833_v6  ;;  %v2786_v12 = vmul.f32 0.044715, %v7316_v56 }
 0x3a7   : > { %v2880_v9 = vadd.f32 1.0, %v6472_v45 }
 0x3a8   : > { %6473 = vtanh.f32 %v2849_v23  ;;  %v2802_v32 = vmul.f32 %v2786_v12, %v7316_v56 }
 0x3a9   : > { %v2896_v35 = vmul.f32 %v2880_v9, %v2768_v14  ;;  %v2701_v50 = vpop.f32.mrf.mxu0 }
 0x3aa   : > { %v2818_v31 = vmul.f32 %v2802_v32, %v7316_v56  ;;  %v2735_v0 = vadd.f32 %v2701_v50, %v2509_v25  ;;  %v2477_v5 = vpop.f32.mrf.mxu3 }
 0x3ab   : > { %v2912_v37 = vmul.f32 0.0, %v2896_v35  ;;  %v7334_v57 = vpop.f32.mrf.mxu2  ;;  %v2510_v19 = vadd.f32 %v2477_v5, %v2404_v7 }
 0x3ac   : > { %v2834_v39 = vadd.f32 %v2818_v31, %v7316_v56  ;;  %v7332_v42 = vadd.f32 %v7286_v1, %v2735_v0  ;;  %v6183_v16 = vld [vmem:[#allocation3 + $0x8] sm:$0xff]  }
 0x3ad   : > { %v2928_v6 = vpack.c.bf16 %v2912_v37, %v2912_v37  ;;  %v6016_v21 = vunpack.c.l.b16 %v6183_v16  ;;  %v3142_v45 = vshrl.u32 %v6183_v16, 16  ;;  %v7338_v55 = vld [vmem:[#allocation3 + $0xc] sm:$0xf]  ;;  %v3145_v14 = vshll.u32 %v6183_v16, 16 }
 0x3ae   : > { %v6474_v33 = vpop.eup %6473  ;;  %v2850_v23 = vmul.f32 0.7978846, %v2834_v39  ;;  %v2787_v12 = vmul.f32 0.044715, %v7332_v42  ;;  %v3588_v60 = vunpack.c.l.b16 %v7338_v55  ;;  %v3372_v37 = vshrl.u32 %v7323_v62, 16  ;;  %v5893_v62 = vld [vmem:[#allocation5 + $0x70] sm:$0xff] }
 0x3af   : > { %2945 = vst.msk [vmem:[#allocation3 + $0x10] sm:$0xf] %vm2943_vm14, %v2928_v6  ;;  %v2881_v9 = vadd.f32 1.0, %v6474_v33  ;;  %v3022_v32 = vpack.c.b16 %v6016_v21, %v3006_v17  ;;  %v3144_v25 = vrot.slane %v3142_v45, 3  ;;  %v3147_v48 = vrot.slane %v3145_v14, 4  ;;  %v7353_v17 = vpop.f32.mrf.mxu1  ;;  %3862 = vmatpush.bf16.msrb.mxu1 %v5893_v62 }
 0x3b0   : > { %6475 = vtanh.f32 %v2850_v23  ;;  %v2803_v11 = vmul.f32 %v2787_v12, %v7332_v42  ;;  %v3376_v39 = vrot.slane %v3374_v27, 1  ;;  %v3604_v21 = vpack.c.b16 %v3588_v60, %v3587_v20 }
 0x3b1   : > { %v2897_v35 = vmul.f32 %v2881_v9, %v2769_v8  ;;  %v2703_v13 = vpop.f32.mrf.mxu0  ;;  %5529 = vmatmul.msk.bf16.vlgmr.msra.gmra.mxu1 %vm3048_vm15, %v3022_v32  ;;  %v7349_v61 = vor.u32 %v3147_v48, %v3144_v25 }
 0x3b2   : > { %v2819_v50 = vmul.f32 %v2803_v11, %v7332_v42  ;;  %v2736_v31 = vadd.f32 %v2703_v13, %v2510_v19  ;;  %v2480_v0 = vpop.f32.mrf.mxu3  ;;  %v3377_v20 = vor.u32 %v3376_v39, %v3372_v37  ;;  %v3614_v9 = vshrl.u32 %v3604_v21, 16 }
 0x3b3   : > { %v2929_v5 = vpack.c.bf16 %v2897_v35, %v2897_v35  ;;  %v3149_v7 = vsel %vm1220_vm12, %v3140_v4, %v7349_v61  ;;  %v7367_v30 = vpop.f32.mrf.mxu2  ;;  %v2770_v4 = vmul.f32 0.5, %v7316_v56  ;;  %v2511_v12 = vadd.f32 %v2480_v0, %v2405_v51 }
 0x3b4   : > { %v2835_v16 = vadd.f32 %v2819_v50, %v7332_v42  ;;  %v7358_v6 = vadd.f32 %v7286_v1, %v2736_v31  ;;  %5549 = vmatmul.msk.bf16.vlgmr.msrb.gmra.mxu2 %vm3048_vm15, %v3149_v7  ;;  %v2168_v19 = vadd.f32 %v7325_v24, %v7226_v63  ;;  %v3617_v11 = vshll.u32 %v3604_v21, 16 }
 0x3b5   : > { %2946 = vst.msk [vmem:[#allocation3 + $0x14] sm:$0xf] %vm2943_vm14, %v2929_v5  ;;  %v3616_v5 = vrot.slane %v3614_v9, 3 }
 0x3b6   : > { %v6476_v27 = vpop.eup %6475  ;;  %v2851_v45 = vmul.f32 0.7978846, %v2835_v16  ;;  %v2788_v33 = vmul.f32 0.044715, %v7358_v6  ;;  %v7370_v8 = vld [vmem:[#allocation3 + $0xc] sm:$0xff]  ;;  %v2406_v31 = vadd.f32 %v7334_v57, %v2168_v19  ;;  %v3619_v21 = vrot.slane %v3617_v11, 4 }
 0x3b7   : > { %v2882_v23 = vadd.f32 1.0, %v6476_v27  ;;  %v3379_v14 = vshll.u32 %v7370_v8, 16  ;;  %v7387_v37 = vpop.f32.mrf.mxu1  ;;  %v2771_v57 = vmul.f32 0.5, %v7332_v42  ;;  %v1363_v42 = vadd.f32 %v7156_v49, %v7151_v44 }
 0x3b8   : > { %6477 = vtanh.f32 %v2851_v45  ;;  %v2804_v34 = vmul.f32 %v2788_v33, %v7358_v6  ;;  %v3620_v11 = vor.u32 %v3619_v21, %v3616_v5  ;;  %v2169_v49 = vadd.f32 %v7353_v17, %v7231_v43 }
 0x3b9   : > { %v2898_v32 = vmul.f32 %v2882_v23, %v2770_v4  ;;  %v2706_v25 = vpop.f32.mrf.mxu0  ;;  %v7378_v13 = vrot.slane %v3379_v14, 1  ;;  %v6388_v23 = vld [vmem:[#allocation3 + $0xc] sm:$0xff]  }
 0x3ba   : > { %v2820_v48 = vmul.f32 %v2804_v34, %v7358_v6  ;;  %v2737_v35 = vadd.f32 %v2706_v25, %v2511_v12  ;;  %v2482_v56 = vpop.f32.mrf.mxu3 }
 0x3bb   : > { %v2914_v50 = vmul.f32 0.0, %v2898_v32  ;;  %v3382_v63 = vsel %vm1443_vm13, %v3377_v20, %v7378_v13  ;;  %v2381_v4 = vpop.f32.mrf.mxu2  ;;  %v2512_v14 = vadd.f32 %v2482_v56, %v2406_v31  ;;  %v1600_v56 = vadd.f32 %v7218_v59, %v1363_v42 }
 0x3bc   : > { %v2836_v0 = vadd.f32 %v2820_v48, %v7358_v6  ;;  %v7383_v28 = vadd.f32 %v7286_v1, %v2737_v35  ;;  %v6184_v24 = vld [vmem:[#allocation3 + $0x10] sm:$0xff]   ;;  %5601 = vmatmul.msk.bf16.vlgmr.msrb.gmra.mxu3 %vm3048_vm15, %v3382_v63  ;;  %v2407_v63 = vadd.f32 %v7367_v30, %v2169_v49 }
 0x3bd   : > { %v2930_v39 = vpack.c.bf16 %v2914_v50, %v2914_v50  ;;  %v3151_v16 = vshrl.u32 %v6184_v24, 16  ;;  %v3154_v7 = vshll.u32 %v6184_v24, 16  ;;  %v6044_v45 = vunpack.c.l.b16 %v6184_v24 }
 0x3be   : > { %v6478_v51 = vpop.eup %6477  ;;  %v2852_v62 = vmul.f32 0.7978846, %v2836_v0  ;;  %v2789_v27 = vmul.f32 0.044715, %v7383_v28  ;;  %v1838_v59 = vadd.f32 %v7233_v15, %v1600_v56  ;;  %v3383_v15 = vshrl.u32 %v7370_v8, 16 }
 0x3bf   : > { %2947 = vst.msk [vmem:[#allocation3 + $0x18] sm:$0xf] %vm2943_vm14, %v2930_v39  ;;  %v2883_v33 = vadd.f32 1.0, %v6478_v51  ;;  %v3153_v12 = vrot.slane %v3151_v16, 3  ;;  %v3156_v20 = vrot.slane %v3154_v7, 4  ;;  %v7396_v9 = vpack.c.b16 %v6044_v45, %v3588_v60  ;;  %v2146_v39 = vpop.f32.mrf.mxu1 }
 0x3c0   : > { %6479 = vtanh.f32 %v2852_v62  ;;  %v2805_v34 = vmul.f32 %v2789_v27, %v7383_v28  ;;  %v1944_v17 = vadd.f32 %v7242_v53, %v1838_v59  ;;  %v2772_v16 = vmul.f32 0.5, %v7358_v6 }
 0x3c1   : > { %v2899_v19 = vmul.f32 %v2883_v33, %v2771_v57  ;;  %v2708_v32 = vpop.f32.mrf.mxu0  ;;  %5530 = vmatmul.msk.bf16.gmra.mxu1 %vm3048_vm15, %v6388_v23  ;;  %v7401_v25 = vor.u32 %v3156_v20, %v3153_v12  ;;  %v3385_v53 = vor.u32 %v3383_v15, %v7378_v13  ;;  %v1368_v59 = vadd.f32 %v7246_v47, %v7173_v10 }
 0x3c2   : > { %v2821_v48 = vmul.f32 %v2805_v34, %v7383_v28  ;;  %v2738_v35 = vadd.f32 %v2708_v32, %v2512_v14  ;;  %v2485_v50 = vpop.f32.mrf.mxu3  ;;  %v2170_v20 = vadd.f32 %v7387_v37, %v1944_v17  ;;  %v2171_v10 = vadd.f32 %v2146_v39, %v7248_v54 }
 0x3c3   : > { %v2931_v31 = vpack.c.bf16 %v2899_v19, %v2899_v19  ;;  %v3158_v55 = vsel %vm1220_vm12, %v7349_v61, %v7401_v25  ;;  %v3629_v44 = vsel %vm1220_vm12, %v3620_v11, %v7401_v25  ;;  %v2513_v51 = vadd.f32 %v2485_v50, %v2407_v63  ;;  %v2384_v62 = vpop.f32.mrf.mxu2 }
 0x3c4   : > { %v2837_v60 = vadd.f32 %v2821_v48, %v7383_v28  ;;  %v7414_v0 = vadd.f32 %v7286_v1, %v2738_v35  ;;  %5621 = vmatmul.msk.bf16.vlgmr.msrb.gmra.mxu0 %vm3048_vm15, %v3629_v44  ;;  %5550 = vmatmul.msk.bf16.gmra.mxu2 %vm3048_vm15, %v3158_v55  ;;  %v2773_v48 = vmul.f32 0.5, %v7383_v28  ;;  %v2408_v37 = vadd.f32 %v2381_v4, %v2170_v20 }
 0x3c5   : > { %2948 = vst.msk [vmem:[#allocation3 + $0x1c] sm:$0xf] %vm2943_vm14, %v2931_v31 }
 0x3c6   : > { %v6480_v61 = vpop.eup %6479  ;;  %v2853_v24 = vmul.f32 0.7978846, %v2837_v60  ;;  %v2790_v5 = vmul.f32 0.044715, %v7414_v0  ;;  %v7422_v43 = vld [vmem:[#allocation3 + $0x14] sm:$0xff]  ;;  %v2774_v39 = vmul.f32 0.5, %v7414_v0 }
 0x3c7   : > { %v2884_v7 = vadd.f32 1.0, %v6480_v61  ;;  %v3387_v57 = vshll.u32 %v7422_v43, 16  ;;  %v6390_v31 = vld [vmem:[#allocation3 + $0x14] sm:$0xff]   ;;  %v2148_v61 = vpop.f32.mrf.mxu1 }
 0x3c8   : > { %6481 = vtanh.f32 %v2853_v24  ;;  %v2806_v21 = vmul.f32 %v2790_v5, %v7414_v0 }
 0x3c9   : > { %v2900_v30 = vmul.f32 %v2884_v7, %v2772_v16  ;;  %v2711_v27 = vpop.f32.mrf.mxu0  ;;  %v3389_v12 = vrot.slane %v3387_v57, 1  ;;  %v1602_v16 = vadd.f32 %v7237_v18, %v1368_v59 }
 0x3ca   : > { %v2822_v45 = vmul.f32 %v2806_v21, %v7414_v0  ;;  %v2739_v33 = vadd.f32 %v2711_v27, %v2513_v51  ;;  %v2487_v23 = vpop.f32.mrf.mxu3 }
 0x3cb   : > { %v2916_v6 = vmul.f32 0.0, %v2900_v30  ;;  %v3390_v14 = vsel %vm1443_vm13, %v3385_v53, %v3389_v12  ;;  %v2514_v60 = vadd.f32 %v2487_v23, %v2408_v37  ;;  %v2386_v15 = vpop.f32.mrf.mxu2  ;;  %v1840_v57 = vadd.f32 %v7250_v2, %v1602_v16 }
 0x3cc   : > { %v2838_v8 = vadd.f32 %v2822_v45, %v7414_v0  ;;  %v7434_v34 = vadd.f32 %v7286_v1, %v2739_v33  ;;  %v7437_v42 = vld [vmem:[#allocation3 + $0x18] sm:$0xff]   ;;  %5602 = vmatmul.msk.bf16.gmra.mxu3 %vm3048_vm15, %v3390_v14  ;;  %v2409_v30 = vadd.f32 %v2384_v62, %v2171_v10  ;;  %v3391_v23 = vshrl.u32 %v7422_v43, 16 }
 0x3cd   : > { %v2932_v19 = vpack.c.bf16 %v2916_v6, %v2916_v6  ;;  %v3160_v32 = vshrl.u32 %v7437_v42, 16  ;;  %v3163_v13 = vshll.u32 %v7437_v42, 16  ;;  %v1946_v54 = vadd.f32 %v7258_v58, %v1840_v57 }
 0x3ce   : > { %v6482_v11 = vpop.eup %6481  ;;  %v2854_v35 = vmul.f32 0.7978846, %v2838_v8  ;;  %v2791_v50 = vmul.f32 0.044715, %v7434_v34 }
 0x3cf   : > { %2949 = vst.msk [vmem:[#allocation3 + $0x20] sm:$0xf] %vm2943_vm14, %v2932_v19  ;;  %v2885_v56 = vadd.f32 1.0, %v6482_v11  ;;  %v3162_v55 = vrot.slane %v3160_v32, 3  ;;  %v3165_v44 = vrot.slane %v3163_v13, 4  ;;  %v3393_v32 = vor.u32 %v3391_v23, %v3389_v12  ;;  %v2151_v58 = vpop.f32.mrf.mxu1 }
 0x3d0   : > { %6483 = vtanh.f32 %v2854_v35  ;;  %v2807_v49 = vmul.f32 %v2791_v50, %v7434_v34  ;;  %v2172_v11 = vadd.f32 %v2148_v61, %v1946_v54 }
 0x3d1   : > { %v2901_v63 = vmul.f32 %v2885_v56, %v2773_v48  ;;  %v2713_v28 = vpop.f32.mrf.mxu0  ;;  %5531 = vmatmul.msk.bf16.gmra.mxu1 %vm3048_vm15, %v6390_v31  ;;  %v7449_v4 = vor.u32 %v3165_v44, %v3162_v55  ;;  %v2775_v44 = vmul.f32 0.5, %v7434_v34 }
 0x3d2   : > { %v2823_v24 = vmul.f32 %v2807_v49, %v7434_v34  ;;  %v2740_v5 = vadd.f32 %v2713_v28, %v2514_v60  ;;  %v2490_v17 = vpop.f32.mrf.mxu3  ;;  %v2410_v49 = vadd.f32 %v2386_v15, %v2172_v11 }
 0x3d3   : > { %v2933_v7 = vpack.c.bf16 %v2901_v63, %v2901_v63  ;;  %v3167_v21 = vsel %vm1220_vm12, %v7401_v25, %v7449_v4  ;;  %v2515_v53 = vadd.f32 %v2490_v17, %v2409_v30  ;;  %v2389_v56 = vpop.f32.mrf.mxu2  ;;  %v2173_v30 = vadd.f32 %v2151_v58, %v7263_v52 }
 0x3d4   : > { %v2839_v47 = vadd.f32 %v2823_v24, %v7434_v34  ;;  %v7459_v51 = vadd.f32 %v7286_v1, %v2740_v5  ;;  %5622 = vmatmul.msk.bf16.gmra.mxu0 %vm3048_vm15, %v3167_v21  ;;  %5551 = vmatmul.msk.bf16.gmra.mxu2 %vm3048_vm15, %v3167_v21 }
 0x3d5   : > { %2950 = vst.msk [vmem:[#allocation3 + $0x24] sm:$0xf] %vm2943_vm14, %v2933_v7 }
 0x3d6   : > { %v6484_v18 = vpop.eup %6483  ;;  %v2855_v27 = vmul.f32 0.7978846, %v2839_v47  ;;  %v2792_v25 = vmul.f32 0.044715, %v7459_v51  ;;  %v7466_v45 = vld [vmem:[#allocation3 + $0x1c] sm:$0xff]  ;;  %v1604_v47 = vadd.f32 %v7254_v36, %v7139_v29  ;;  %v5892_v29 = vld [vmem:[#allocation5 + $0x68] sm:$0xff] }
 0x3d7   : > { %v2886_v33 = vadd.f32 1.0, %v6484_v18  ;;  %v3395_v6 = vshll.u32 %v7466_v45, 16  ;;  %v6392_v63 = vld [vmem:[#allocation3 + $0x1c] sm:$0xff]   ;;  %3863 = vmatpush.bf16.msrb.mxu1 %v5892_v29 }
 0x3d8   : > { %6485 = vtanh.f32 %v2855_v27  ;;  %v2808_v2 = vmul.f32 %v2792_v25, %v7459_v51  ;;  %v1842_v54 = vadd.f32 %v7265_v46, %v1604_v47 }
 0x3d9   : > { %v2902_v20 = vmul.f32 %v2886_v33, %v2774_v39  ;;  %v2716_v62 = vpop.f32.mrf.mxu0  ;;  %v7474_v13 = vrot.slane %v3395_v6, 1  ;;  %v2153_v39 = vpop.f32.mrf.mxu1  ;;  %v2411_v33 = vadd.f32 %v2389_v56, %v2173_v30  ;;  %v2776_v6 = vmul.f32 0.5, %v7459_v51 }
 0x3da   : > { %v2824_v8 = vmul.f32 %v2808_v2, %v7459_v51  ;;  %v2741_v14 = vadd.f32 %v2716_v62, %v2515_v53  ;;  %v2492_v19 = vpop.f32.mrf.mxu3  ;;  %v1948_v53 = vadd.f32 %v7272_v26, %v1842_v54  ;;  %v3399_v62 = vshrl.u32 %v7466_v45, 16 }
 0x3db   : > { %v2918_v0 = vmul.f32 0.0, %v2902_v20  ;;  %v3398_v37 = vsel %vm1443_vm13, %v3393_v32, %v7474_v13  ;;  %v2516_v17 = vadd.f32 %v2492_v19, %v2410_v49  ;;  %v2391_v46 = vpop.f32.mrf.mxu2  ;;  %v1606_v30 = vadd.f32 %v7269_v22, %v7162_v3 }
 0x3dc   : > { %v2840_v43 = vadd.f32 %v2824_v8, %v7459_v51  ;;  %v7478_v48 = vadd.f32 %v7286_v1, %v2741_v14  ;;  %v6186_v35 = vld [vmem:[#allocation3 + $0x20] sm:$0xff]   ;;  %5603 = vmatmul.msk.bf16.gmra.mxu3 %vm3048_vm15, %v3398_v37  ;;  %v3401_v26 = vor.u32 %v3399_v62, %v7474_v13 }
 0x3dd   : > { %v2934_v50 = vpack.c.bf16 %v2918_v0, %v2918_v0  ;;  %v3169_v31 = vshrl.u32 %v6186_v35, 16  ;;  %v3172_v12 = vshll.u32 %v6186_v35, 16  ;;  %v2174_v35 = vadd.f32 %v2153_v39, %v1948_v53 }
 0x3de   : > { %v6486_v55 = vpop.eup %6485  ;;  %v2856_v60 = vmul.f32 0.7978846, %v2840_v43  ;;  %v2793_v59 = vmul.f32 0.044715, %v7478_v48 }
 0x3df   : > { %2951 = vst.msk [vmem:[#allocation3 + $0x28] sm:$0xf] %vm2943_vm14, %v2934_v50  ;;  %v2887_v61 = vadd.f32 1.0, %v6486_v55  ;;  %v3171_v28 = vrot.slane %v3169_v31, 3  ;;  %v3174_v24 = vrot.slane %v3172_v12, 4  ;;  %v2412_v13 = vadd.f32 %v2391_v46, %v2174_v35 }
 0x3e0   : > { %6487 = vtanh.f32 %v2856_v60  ;;  %v2809_v5 = vmul.f32 %v2793_v59, %v7478_v48  ;;  %v2777_v60 = vmul.f32 0.5, %v7478_v48 }
 0x3e1   : > { %v2903_v16 = vmul.f32 %v2887_v61, %v2775_v44  ;;  %v2718_v7 = vpop.f32.mrf.mxu0  ;;  %5532 = vmatmul.msk.bf16.gmra.mxu1 %vm3048_vm15, %v6392_v63  ;;  %v7488_v21 = vor.u32 %v3174_v24, %v3171_v28  ;;  %v2156_v63 = vpop.f32.mrf.mxu1 }
 0x3e2   : > { %v2825_v34 = vmul.f32 %v2809_v5, %v7478_v48  ;;  %v2742_v15 = vadd.f32 %v2718_v7, %v2516_v17  ;;  %v2495_v10 = vpop.f32.mrf.mxu3  ;;  %v2175_v29 = vadd.f32 %v2156_v63, %v7275_v38 }
 0x3e3   : > { %v2935_v57 = vpack.c.bf16 %v2903_v16, %v2903_v16  ;;  %v7496_v18 = vsel %vm1220_vm12, %v7449_v4, %v7488_v21  ;;  %v2517_v14 = vadd.f32 %v2495_v10, %v2411_v33 }
 0x3e4   : > { %v2841_v27 = vadd.f32 %v2825_v34, %v7478_v48  ;;  %v7501_v25 = vadd.f32 %v7286_v1, %v2742_v15  ;;  %5623 = vmatmul.msk.bf16.gmra.mxu0 %vm3048_vm15, %v7496_v18  ;;  %5552 = vmatmul.msk.bf16.gmra.mxu2 %vm3048_vm15, %v7496_v18  ;;  %v2394_v15 = vpop.f32.mrf.mxu2 }
 0x3e5   : > { %2952 = vst.msk [vmem:[#allocation3 + $0x2c] sm:$0xf] %vm2943_vm14, %v2935_v57  ;;  %v2413_v22 = vadd.f32 %v2394_v15, %v2175_v29 }
 0x3e6   : > { %v6488_v36 = vpop.eup %6487  ;;  %v2857_v52 = vmul.f32 0.7978846, %v2841_v27  ;;  %v2794_v23 = vmul.f32 0.044715, %v7501_v25  ;;  %v7510_v2 = vld [vmem:[#allocation3 + $0x24] sm:$0xff] }
 0x3e7   : > { %v2888_v20 = vadd.f32 1.0, %v6488_v36  ;;  %v3403_v19 = vshll.u32 %v7510_v2, 16  ;;  %v6394_v24 = vld [vmem:[#allocation3 + $0x24] sm:$0xff]   ;;  %v3407_v46 = vshrl.u32 %v7510_v2, 16 }
 0x3e8   : > { %6489 = vtanh.f32 %v2857_v52  ;;  %v2810_v8 = vmul.f32 %v2794_v23, %v7501_v25  ;;  %v1844_v52 = vadd.f32 %v7277_v40, %v1606_v30 }
 0x3e9   : > { %v2904_v32 = vmul.f32 %v2888_v20, %v2776_v6  ;;  %v2721_v58 = vpop.f32.mrf.mxu0  ;;  %v3405_v51 = vrot.slane %v3403_v19, 1  ;;  %v2778_v6 = vmul.f32 0.5, %v7501_v25 }
 0x3ea   : > { %v2826_v0 = vmul.f32 %v2810_v8, %v7501_v25  ;;  %v2743_v11 = vadd.f32 %v2721_v58, %v2517_v14  ;;  %v2497_v43 = vpop.f32.mrf.mxu3  ;;  %v1950_v53 = vadd.f32 %v7280_v41, %v1844_v52  ;;  %v2158_v14 = vpop.f32.mrf.mxu1 }
 0x3eb   : > { %v2920_v37 = vmul.f32 0.0, %v2904_v32  ;;  %v3406_v56 = vsel %vm1443_vm13, %v3401_v26, %v3405_v51  ;;  %v2518_v7 = vadd.f32 %v2497_v43, %v2412_v13 }
 0x3ec   : > { %v2842_v50 = vadd.f32 %v2826_v0, %v7501_v25  ;;  %v7521_v45 = vadd.f32 %v7286_v1, %v2743_v11  ;;  %v6187_v31 = vld [vmem:[#allocation3 + $0x28] sm:$0xff]   ;;  %5604 = vmatmul.msk.bf16.gmra.mxu3 %vm3048_vm15, %v3406_v56  ;;  %v3409_v11 = vor.u32 %v3407_v46, %v3405_v51  ;;  %v2396_v26 = vpop.f32.mrf.mxu2  ;;  %v2176_v25 = vadd.f32 %v2158_v14, %v1950_v53 }
 0x3ed   : > { %v2936_v12 = vpack.c.bf16 %v2920_v37, %v2920_v37  ;;  %v3178_v55 = vshrl.u32 %v6187_v31, 16  ;;  %v3181_v44 = vshll.u32 %v6187_v31, 16 }
 0x3ee   : > { %v6490_v49 = vpop.eup %6489  ;;  %v2858_v59 = vmul.f32 0.7978846, %v2842_v50  ;;  %v2795_v61 = vmul.f32 0.044715, %v7521_v45  ;;  %v2779_v51 = vmul.f32 0.5, %v7521_v45 }
 0x3ef   : > { %2953 = vst.msk [vmem:[#allocation3 + $0x30] sm:$0xf] %vm2943_vm14, %v2936_v12  ;;  %v2889_v28 = vadd.f32 1.0, %v6490_v49  ;;  %v3180_v5 = vrot.slane %v3178_v55, 3  ;;  %v3183_v17 = vrot.slane %v3181_v44, 4  ;;  %v2414_v49 = vadd.f32 %v2396_v26, %v2176_v25 }
 0x3f0   : > { %6491 = vtanh.f32 %v2858_v59  ;;  %v2811_v16 = vmul.f32 %v2795_v61, %v7521_v45 }
 0x3f1   : > { %v2905_v34 = vmul.f32 %v2889_v28, %v2777_v60  ;;  %v2723_v10 = vpop.f32.mrf.mxu0  ;;  %5533 = vmatmul.msk.bf16.gmra.mxu1 %vm3048_vm15, %v6394_v24  ;;  %v7530_v48 = vor.u32 %v3183_v17, %v3180_v5  ;;  %v5891_v24 = vld [vmem:[#allocation5 + $0x60] sm:$0xff] }
 0x3f2   : > { %v2827_v47 = vmul.f32 %v2811_v16, %v7521_v45  ;;  %v2744_v57 = vadd.f32 %v2723_v10, %v2518_v7  ;;  %v2500_v54 = vpop.f32.mrf.mxu3  ;;  %3864 = vmatpush.bf16.msrb.mxu1 %v5891_v24 }
 0x3f3   : > { %v2937_v27 = vpack.c.bf16 %v2905_v34, %v2905_v34  ;;  %v7538_v39 = vsel %vm1220_vm12, %v7488_v21, %v7530_v48  ;;  %v2519_v62 = vadd.f32 %v2500_v54, %v2413_v22  ;;  %v5903_v22 = vld [vmem:[#allocation5 + $0x80] sm:$0xff] }
 0x3f4   : > { %v2843_v36 = vadd.f32 %v2827_v47, %v7521_v45  ;;  %v7543_v33 = vadd.f32 %v7286_v1, %v2744_v57  ;;  %5624 = vmatmul.msk.bf16.gmra.mxu0 %vm3048_vm15, %v7538_v39  ;;  %5553 = vmatmul.msk.bf16.gmra.mxu2 %vm3048_vm15, %v7538_v39 }
 0x3f5   : > { %2954 = vst.msk [vmem:[#allocation3 + $0x34] sm:$0xf] %vm2943_vm14, %v2937_v27  ;;  %v5904_v27 = vld [vmem:[#allocation5 + $0x88] sm:$0xff] }
 0x3f6   : > { %v6492_v3 = vpop.eup %6491  ;;  %v2859_v21 = vmul.f32 0.7978846, %v2843_v36  ;;  %v2796_v38 = vmul.f32 0.044715, %v7543_v33  ;;  %v7552_v23 = vld [vmem:[#allocation3 + $0x2c] sm:$0xff]  ;;  %4104 = vmatpush.bf16.msra.mxu2 %v5904_v27 }
 0x3f7   : > { %v2890_v20 = vadd.f32 1.0, %v6492_v3  ;;  %v3411_v8 = vshll.u32 %v7552_v23, 16  ;;  %v6396_v59 = vld [vmem:[#allocation3 + $0x2c] sm:$0xff]   ;;  %v2780_v3 = vmul.f32 0.5, %v7543_v33 }
 0x3f8   : > { %6493 = vtanh.f32 %v2859_v21  ;;  %v2812_v40 = vmul.f32 %v2796_v38, %v7543_v33  ;;  %v3415_v21 = vshrl.u32 %v7552_v23, 16 }
 0x3f9   : > { %v2906_v19 = vmul.f32 %v2890_v20, %v2778_v6  ;;  %v2726_v32 = vpop.f32.mrf.mxu0  ;;  %v3413_v43 = vrot.slane %v3411_v8, 1 }
 0x3fa   : > { %v2828_v58 = vmul.f32 %v2812_v40, %v7543_v33  ;;  %v2745_v0 = vadd.f32 %v2726_v32, %v2519_v62  ;;  %v2502_v31 = vpop.f32.mrf.mxu3  ;;  %4105 = vmatpush.bf16.msra.mxu2 %v5903_v22 }
 0x3fb   : > { %v2922_v41 = vmul.f32 0.0, %v2906_v19  ;;  %v3414_v35 = vsel %vm1443_vm13, %v3409_v11, %v3413_v43  ;;  %v2520_v17 = vadd.f32 %v2502_v31, %v2414_v49  ;;  %v3417_v20 = vor.u32 %v3415_v21, %v3413_v43 }
 0x3fc   : > { %v2844_v37 = vadd.f32 %v2828_v58, %v7543_v33  ;;  %v2765_v2 = vadd.f32 %v7286_v1, %v2745_v0  ;;  %v6188_v50 = vld [vmem:[#allocation3 + $0x30] sm:$0xff]   ;;  %5605 = vmatmul.msk.bf16.gmra.mxu3 %vm3048_vm15, %v3414_v35  ;;  %v5902_v35 = vld [vmem:[#allocation5 + $0x78] sm:$0xff] }
 0x3fd   : > { %v2938_v56 = vpack.c.bf16 %v2922_v41, %v2922_v41  ;;  %v3187_v12 = vshrl.u32 %v6188_v50, 16  ;;  %v3190_v55 = vshll.u32 %v6188_v50, 16  ;;  %v5907_v50 = vld [vmem:[#allocation5 + $0xa0] sm:$0xff] }
 0x3fe   : > { %v6494_v44 = vpop.eup %6493  ;;  %v2860_v60 = vmul.f32 0.7978846, %v2844_v37  ;;  %v2797_v13 = vmul.f32 0.044715, %v2765_v2  ;;  %v2781_v0 = vmul.f32 0.5, %v2765_v2  ;;  %4106 = vmatpush.bf16.msra.mxu2 %v5902_v35  ;;  %4358 = vmatpush.bf16.msra.mxu3 %v5907_v50 }
 0x3ff   : > { %2955 = vst.msk [vmem:[#allocation3 + $0x38] sm:$0xf] %vm2943_vm14, %v2938_v56  ;;  %v2891_v61 = vadd.f32 1.0, %v6494_v44  ;;  %v3189_v63 = vrot.slane %v3187_v12, 3  ;;  %v3192_v28 = vrot.slane %v3190_v55, 4 }
 0x400   : > { %6495 = vtanh.f32 %v2860_v60  ;;  %v2813_v5 = vmul.f32 %v2797_v13, %v2765_v2 }
 0x401   : > { %v2907_v16 = vmul.f32 %v2891_v61, %v2779_v51  ;;  %v2728_v7 = vpop.f32.mrf.mxu0  ;;  %5534 = vmatmul.msk.bf16.gmra.mxu1 %vm3048_vm15, %v6396_v59  ;;  %v3193_v34 = vor.u32 %v3192_v28, %v3189_v63  ;;  %v5906_v63 = vld [vmem:[#allocation5 + $0x98] sm:$0xff] }
 0x402   : > { %v2829_v15 = vmul.f32 %v2813_v5, %v2765_v2  ;;  %v2746_v45 = vadd.f32 %v2728_v7, %v2520_v17  ;;  %v5910_v28 = vld [vmem:[#allocation5 + $0xb8] sm:$0xff]  ;;  %4359 = vmatpush.bf16.msra.mxu3 %v5906_v63 }
 0x403   : > { %v2939_v10 = vpack.c.bf16 %v2907_v16, %v2907_v16  ;;  %v7569_v47 = vsel %vm1220_vm12, %v7530_v48, %v3193_v34  ;;  %4480 = vmatpush.bf16.msra.mxu0 %v5910_v28 }
 0x404   : > { %v2845_v57 = vadd.f32 %v2829_v15, %v2765_v2  ;;  %v2766_v30 = vadd.f32 %v7286_v1, %v2746_v45  ;;  %5625 = vmatmul.msk.bf16.gmra.mxu0 %vm3048_vm15, %v7569_v47  ;;  %5554 = vmatmul.msk.bf16.gmra.mxu2 %vm3048_vm15, %v7569_v47  ;;  %v5909_v15 = vld [vmem:[#allocation5 + $0xb0] sm:$0xff] }
 0x405   : > { %2956 = vst.msk [vmem:[#allocation3 + $0x3c] sm:$0xf] %vm2943_vm14, %v2939_v10 }
 0x406   : > { %v6496_v54 = vpop.eup %6495  ;;  %v2861_v29 = vmul.f32 0.7978846, %v2845_v57  ;;  %v2798_v36 = vmul.f32 0.044715, %v2766_v30  ;;  %v5883_v52 = vld [vmem:[#allocation3 + $0x34] sm:$0xff]  ;;  %v2782_v44 = vmul.f32 0.5, %v2766_v30 }
 0x407   : > { %v2892_v48 = vadd.f32 1.0, %v6496_v54  ;;  %v3419_v38 = vshll.u32 %v5883_v52, 16  ;;  %v6397_v41 = vld [vmem:[#allocation3 + $0x34] sm:$0xff]   ;;  %v3423_v60 = vshrl.u32 %v5883_v52, 16  ;;  %4481 = vmatpush.bf16.msra.mxu0 %v5909_v15 }
 0x408   : > { %6497 = vtanh.f32 %v2861_v29  ;;  %v2814_v1 = vmul.f32 %v2798_v36, %v2766_v30 }
 0x409   : > { %v2908_v53 = vmul.f32 %v2892_v48, %v2780_v3  ;;  %v3421_v46 = vrot.slane %v3419_v38, 1  ;;  %v5921_v48 = vld [vmem:[#allocation5 + $0xd0] sm:$0xff] }
 0x40a   : > { %v2830_v6 = vmul.f32 %v2814_v1, %v2766_v30  ;;  %4722 = vmatpush.bf16.msra.mxu1 %v5921_v48 }
 0x40b   : > { %v2924_v40 = vmul.f32 0.0, %v2908_v53  ;;  %v3422_v8 = vsel %vm1443_vm13, %v3417_v20, %v3421_v46  ;;  %v3425_v24 = vor.u32 %v3423_v60, %v3421_v46  ;;  %v5908_v20 = vld [vmem:[#allocation5 + $0xa8] sm:$0xff] }
 0x40c   : > { %v2846_v62 = vadd.f32 %v2830_v6, %v2766_v30  ;;  %v6189_v14 = vld [vmem:[#allocation3 + $0x38] sm:$0xff]   ;;  %5606 = vmatmul.msk.bf16.gmra.mxu3 %vm3048_vm15, %v3422_v8  ;;  %4482 = vmatpush.bf16.msra.mxu0 %v5908_v20 }
 0x40d   : > { %v2940_v19 = vpack.c.bf16 %v2924_v40, %v2924_v40  ;;  %v3196_v33 = vshrl.u32 %v6189_v14, 16  ;;  %v3199_v32 = vshll.u32 %v6189_v14, 16  ;;  %v6041_v10 = vunpack.c.h.b16 %v6189_v14  ;;  %v5894_v14 = vld [vmem:[#allocation3 + $0xc] sm:$0xff] }
 0x40e   : > { %v6498_v58 = vpop.eup %6497  ;;  %v2862_v11 = vmul.f32 0.7978846, %v2846_v62 }
 0x40f   : > { %2957 = vst.msk [vmem:[#allocation3 + $0x40] sm:$0xf] %vm2943_vm14, %v2940_v19  ;;  %v2893_v23 = vadd.f32 1.0, %v6498_v58  ;;  %v3198_v43 = vrot.slane %v3196_v33, 3  ;;  %v3201_v26 = vrot.slane %v3199_v32, 4 }
 0x410   : > { %6499 = vtanh.f32 %v2862_v11  ;;  %v4165_v33 = vld [vmem:[#allocation3 + $0x14] sm:$0xf] }
 0x411   : > { %v2909_v25 = vmul.f32 %v2893_v23, %v2781_v0  ;;  %5535 = vmatmul.msk.bf16.gmra.mxu1 %vm3048_vm15, %v6397_v41  ;;  %v3202_v37 = vor.u32 %v3201_v26, %v3198_v43  ;;  %v5895_v11 = vld [vmem:[#allocation3 + $0x14] sm:$0xff]  ;;  %v4164_v41 = vld [vmem:[#allocation3 + $0x10] sm:$0x8] }
 0x413   : > { %v2941_v56 = vpack.c.bf16 %v2909_v25, %v2909_v25  ;;  %v7584_v31 = vsel %vm1220_vm12, %v3193_v34, %v3202_v37  ;;  %v5905_v34 = vld [vmem:[#allocation5 + $0x90] sm:$0xff]  ;;  %v3992_v25 = vshll.u32 %v5894_v14, 16 }
 0x414   : > { %5626 = vmatmul.msk.bf16.gmra.mxu0 %vm3048_vm15, %v7584_v31  ;;  %5555 = vmatmul.msk.bf16.gmra.mxu2 %vm3048_vm15, %v7584_v31 }
 0x415   : > { %2958 = vst.msk [vmem:[#allocation3 + $0x44] sm:$0xf] %vm2943_vm14, %v2941_v56  ;;  %4360 = vmatpush.bf16.msra.mxu3 %v5905_v34 }
 0x416   : > { %v6500_v2 = vpop.eup %6499  ;;  %v5884_v12 = vld [vmem:[#allocation3 + $0x3c] sm:$0xff] }
 0x417   : > { %v2976_v55 = vld [vmem:[#allocation3 + $0x40] sm:$0xf]  ;;  %v2894_v51 = vadd.f32 1.0, %v6500_v2  ;;  %v3427_v13 = vshll.u32 %v5884_v12, 16  ;;  %v3431_v58 = vshrl.u32 %v5884_v12, 16  ;;  %v3997_v2 = vshll.u32 %v5895_v11, 16 }
 0x418   : > { %v3021_v49 = vunpack.c.l.b16 %v2976_v55  ;;  %v4205_v55 = vunpack.c.l.b16 %v4164_v41 }
 0x419   : > { %v2910_v59 = vmul.f32 %v2894_v51, %v2782_v44  ;;  %v3429_v5 = vrot.slane %v3427_v13, 1 }
 0x41a   : > { %v3132_v61 = vpack.c.b16 %v3021_v49, %v3021_v49  ;;  %v3029_v22 = vpack.c.b16 %v3021_v49, %v6041_v10  ;;  %v3994_v49 = vrot.slane %v3992_v25, 1 }
 0x41b   : > { %v2926_v17 = vmul.f32 0.0, %v2910_v59  ;;  %v3430_v45 = vsel %vm1443_vm13, %v3425_v24, %v3429_v5  ;;  %v3433_v26 = vor.u32 %v3431_v58, %v3429_v5  ;;  %v3990_v59 = vshrl.u32 %v5894_v14, 16  ;;  %v5920_v58 = vld [vmem:[#allocation5 + $0xc8] sm:$0xff] }
 0x41c   : > { %v3205_v16 = vshrl.u32 %v3132_v61, 16  ;;  %v3208_v7 = vshll.u32 %v3132_v61, 16  ;;  %v6196_v57 = vld [vmem:[#allocation3 + $0x40] sm:$0xff]   ;;  %5607 = vmatmul.msk.bf16.gmra.mxu3 %vm3048_vm15, %v3430_v45  ;;  %v3999_v61 = vrot.slane %v3997_v2, 1  ;;  %4723 = vmatpush.bf16.msra.mxu1 %v5920_v58  ;;  %v6366_v58 = vld [vmem:[#allocation3 + $0x2c] sm:$0xff]  }
 0x41d   : > { %v3320_v30 = vld [vmem:[#allocation3 + $0x44] sm:$0x1]  ;;  %v2942_v27 = vpack.c.bf16 %v2926_v17, %v2926_v17  ;;  %v3676_v36 = vshrl.u32 %v6196_v57, 16  ;;  %v3679_v52 = vshll.u32 %v6196_v57, 16  ;;  %v6069_v32 = vunpack.c.h.b16 %v6196_v57  ;;  %v5896_v45 = vld [vmem:[#allocation3 + $0x1c] sm:$0xff] }
 0x41e   : > { %v3207_v54 = vrot.slane %v3205_v16, 3  ;;  %v3210_v29 = vrot.slane %v3208_v7, 4  ;;  %v3361_v3 = vunpack.c.l.b16 %v3320_v30  ;;  %v3995_v63 = vor.u32 %v3994_v49, %v3990_v59 }
 0x41f   : > { %2959 = vst.msk [vmem:[#allocation3 + $0x48] sm:$0xf] %vm2943_vm14, %v2942_v27  ;;  %v3678_v1 = vrot.slane %v3676_v36, 3  ;;  %v3681_v38 = vrot.slane %v3679_v52, 4  ;;  %v4005_v30 = vshll.u32 %v5896_v45, 16  ;;  %v4009_v25 = vshrl.u32 %v5896_v45, 16 }
 0x420   : > { %v3211_v21 = vor.u32 %v3210_v29, %v3207_v54  ;;  %v3370_v53 = vpack.c.b16 %v3361_v3, %v3361_v3  ;;  %v4000_v17 = vsel %vm1443_vm13, %v3995_v63, %v3999_v61  ;;  %v6350_v54 = vld [vmem:[#allocation3 + $0x14] sm:$0xff]   ;;  %v6072_v29 = vunpack.c.l.b16 %v7437_v42 }
 0x421   : > { %5536 = vmatmul.msk.bf16.gmra.mxu1 %vm3048_vm15, %v3029_v22  ;;  %v7595_v6 = vor.u32 %v3681_v38, %v3678_v1  ;;  %v4001_v3 = vshrl.u32 %v5895_v11, 16  ;;  %v4007_v48 = vrot.slane %v4005_v30, 1  ;;  %v6364_v30 = vld [vmem:[#allocation3 + $0x24] sm:$0xff]  }
 0x422   : > { %v3212_v46 = vsel %vm1220_vm12, %v3202_v37, %v3211_v21  ;;  %v3435_v62 = vshll.u32 %v3370_v53, 16 }
 0x423   : > { %v7600_v40 = vsel %vm1220_vm12, %v3202_v37, %v7595_v6  ;;  %v4206_v37 = vunpack.c.l.b16 %v4165_v33  ;;  %v4003_v38 = vor.u32 %v4001_v3, %v3999_v61  ;;  %v4011_v2 = vor.u32 %v4009_v25, %v4007_v48 }
 0x424   : > { %5556 = vmatmul.msk.bf16.gmra.mxu2 %vm3048_vm15, %v3212_v46  ;;  %5627 = vmatmul.msk.bf16.gmra.mxu0 %vm3048_vm15, %v7600_v40  ;;  %v3437_v0 = vrot.slane %v3435_v62, 1 }
 0x425   : > { %v4222_v60 = vpack.c.b16 %v4206_v37, %v4205_v55  ;;  %v4008_v20 = vsel %vm1443_vm13, %v4003_v38, %v4007_v48  ;;  %v6356_v38 = vld [vmem:[#allocation3 + $0x2c] sm:$0xff]  }
 0x426   : > { %v3562_v8 = vld [vmem:[#allocation3 + $0x48] sm:$0xf]  ;;  %v3438_v56 = vsel %vm1443_vm13, %v3433_v26, %v3437_v0 }
 0x427   : > { %v3603_v19 = vunpack.c.l.b16 %v3562_v8  ;;  %v4232_v28 = vshrl.u32 %v4222_v60, 16  ;;  %v4235_v24 = vshll.u32 %v4222_v60, 16  ;;  %v5897_v8 = vld [vmem:[#allocation3 + $0x24] sm:$0xff]  ;;  %v5898_v60 = vld [vmem:[#allocation3 + $0x2c] sm:$0xff] }
 0x428   : > { %v4013_v0 = vshll.u32 %v5897_v8, 16 }
 0x429   : > { %v3612_v23 = vpack.c.b16 %v3603_v19, %v3603_v19  ;;  %v7605_v43 = vpack.c.b16 %v3603_v19, %v6069_v32  ;;  %v4234_v7 = vrot.slane %v4232_v28, 3  ;;  %v4237_v34 = vrot.slane %v4235_v24, 4 }
 0x42a   : > { %v4021_v28 = vshll.u32 %v5898_v60, 16 }
 0x42b   : > { %v3685_v35 = vshrl.u32 %v3612_v23, 16  ;;  %v3688_v50 = vshll.u32 %v3612_v23, 16  ;;  %v4238_v57 = vor.u32 %v4237_v34, %v4234_v7  ;;  %v6352_v23 = vld [vmem:[#allocation3 + $0x1c] sm:$0xff]   ;;  %v4017_v7 = vshrl.u32 %v5897_v8, 16 }
 0x42c   : > { %5608 = vmatmul.msk.bf16.gmra.mxu3 %vm3048_vm15, %v3438_v56  ;;  %v4023_v34 = vrot.slane %v4021_v28, 1  ;;  %v6368_v28 = vld [vmem:[#allocation3 + $0x34] sm:$0xff]  }
 0x42d   : > { %v3687_v44 = vrot.slane %v3685_v35, 3  ;;  %v3690_v51 = vrot.slane %v3688_v50, 4 }
 0x42e   : > { %v3082_v12 = vpop.f32.mrf.mxu1 }
 0x42f   : > { %v3691_v13 = vor.u32 %v3690_v51, %v3687_v44  ;;  %v6362_v44 = vld [vmem:[#allocation3 + $0x1c] sm:$0xff]  }
 0x431   : > { %5641 = vmatmul.msk.bf16.vlgmr.msrb.gmra.mxu1 %vm3048_vm15, %v7396_v9  ;;  %v3692_v5 = vsel %vm1220_vm12, %v7595_v6, %v3691_v13  ;;  %v4247_v9 = vsel %vm1220_vm12, %v4238_v57, %v7449_v4  ;;  %v4425_v4 = vpack.c.b16 %v6072_v29, %v4206_v37  ;;  %v4015_v37 = vrot.slane %v4013_v0, 1 }
 0x433   : > { %v4016_v51 = vsel %vm1443_vm13, %v4011_v2, %v4015_v37  ;;  %v4019_v57 = vor.u32 %v4017_v7, %v4015_v37  ;;  %v5901_v7 = vld [vmem:[#allocation3 + $0x44] sm:$0xff] }
 0x434   : > { %5628 = vmatmul.msk.bf16.gmra.mxu0 %vm3048_vm15, %v3692_v5  ;;  %5693 = vmatmul.msk.bf16.vlgmr.msra.gmra.mxu2 %vm3048_vm15, %v4000_v17  ;;  %v6354_v5 = vld [vmem:[#allocation3 + $0x24] sm:$0xff]  }
 0x436   : > { %v3084_v16 = vpop.f32.mrf.mxu1 }
 0x437   : > { %v3264_v15 = vpop.f32.mrf.mxu2 }
 0x438   : > { %v3265_v10 = vadd.f32 %v3264_v15, %v3082_v12 }
 0x43c   : > { %5713 = vmatmul.msk.bf16.vlgmr.msra.gmra.mxu3 %vm3048_vm15, %v4247_v9 }
 0x43e   : > { %v3087_v27 = vpop.f32.mrf.mxu1 }
 0x43f   : > { %v3266_v36 = vpop.f32.mrf.mxu2  ;;  %v3490_v52 = vpop.f32.mrf.mxu3 }
 0x440   : > { %v3267_v22 = vadd.f32 %v3266_v36, %v3084_v16  ;;  %v3530_v1 = vadd.f32 %v3490_v52, %v3265_v10  ;;  %v5899_v36 = vld [vmem:[#allocation3 + $0x34] sm:$0xff] }
 0x441   : > { %v3744_v21 = vpop.f32.mrf.mxu0  ;;  %5642 = vmatmul.msk.bf16.gmra.mxu1 %vm3048_vm15, %v6350_v54 }
 0x442   : > { %v7621_v53 = vadd.f32 %v3744_v21, %v3530_v1  ;;  %v4029_v1 = vshll.u32 %v5899_v36, 16 }
 0x444   : > { %5694 = vmatmul.msk.bf16.gmra.mxu2 %vm3048_vm15, %v4008_v20  ;;  %5733 = vmatmul.msk.bf16.vlgmr.msra.gmra.mxu0 %vm3048_vm15, %v4425_v4 }
 0x446   : > { %v3089_v42 = vpop.f32.mrf.mxu1 }
 0x447   : > { %v3269_v46 = vpop.f32.mrf.mxu2  ;;  %v3492_v62 = vpop.f32.mrf.mxu3 }
 0x448   : > { %v3270_v14 = vadd.f32 %v3269_v46, %v3087_v27  ;;  %v3531_v19 = vadd.f32 %v3492_v62, %v3267_v22  ;;  %v4024_v27 = vsel %vm1443_vm13, %v4019_v57, %v4023_v34  ;;  %v4031_v46 = vrot.slane %v4029_v1, 1 }
 0x449   : > { %v3746_v33 = vpop.f32.mrf.mxu0  ;;  %v4045_v57 = vshll.u32 %v5901_v7, 16 }
 0x44a   : > { %v7626_v32 = vadd.f32 %v3746_v33, %v3531_v19 }
 0x44c   : > { %5714 = vmatmul.msk.bf16.gmra.mxu3 %vm3048_vm15, %v7496_v18 }
 0x44e   : > { %v3092_v11 = vpop.f32.mrf.mxu1 }
 0x44f   : > { %v3271_v41 = vpop.f32.mrf.mxu2  ;;  %v3495_v26 = vpop.f32.mrf.mxu3 }
 0x450   : > { %v3272_v35 = vadd.f32 %v3271_v41, %v3089_v42  ;;  %v3532_v50 = vadd.f32 %v3495_v26, %v3270_v14  ;;  %v4025_v42 = vshrl.u32 %v5898_v60, 16  ;;  %v5900_v26 = vld [vmem:[#allocation3 + $0x3c] sm:$0xff] }
 0x451   : > { %v3749_v56 = vpop.f32.mrf.mxu0  ;;  %5643 = vmatmul.msk.bf16.gmra.mxu1 %vm3048_vm15, %v6352_v23 }
 0x452   : > { %v7631_v55 = vadd.f32 %v3749_v56, %v3532_v50  ;;  %v4027_v19 = vor.u32 %v4025_v42, %v4023_v34  ;;  %v4037_v56 = vshll.u32 %v5900_v26, 16 }
 0x454   : > { %5695 = vmatmul.msk.bf16.gmra.mxu2 %vm3048_vm15, %v4016_v51  ;;  %5734 = vmatmul.msk.bf16.gmra.mxu0 %vm3048_vm15, %v6362_v44  ;;  %v4032_v0 = vsel %vm1443_vm13, %v4027_v19, %v4031_v46  ;;  %v6358_v44 = vld [vmem:[#allocation3 + $0x34] sm:$0xff]  }
 0x456   : > { %v3094_v18 = vpop.f32.mrf.mxu1 }
 0x457   : > { %v3274_v12 = vpop.f32.mrf.mxu2  ;;  %v3497_v49 = vpop.f32.mrf.mxu3 }
 0x458   : > { %v3275_v13 = vadd.f32 %v3274_v12, %v3092_v11  ;;  %v3533_v59 = vadd.f32 %v3497_v49, %v3272_v35  ;;  %v4033_v12 = vshrl.u32 %v5899_v36, 16  ;;  %v4039_v49 = vrot.slane %v4037_v56, 1 }
 0x459   : > { %v3751_v61 = vpop.f32.mrf.mxu0  ;;  %v4041_v36 = vshrl.u32 %v5900_v26, 16 }
 0x45a   : > { %v7636_v63 = vadd.f32 %v3751_v61, %v3533_v59  ;;  %v4035_v59 = vor.u32 %v4033_v12, %v4031_v46 }
 0x45c   : > { %5715 = vmatmul.msk.bf16.gmra.mxu3 %vm3048_vm15, %v7538_v39 }
 0x45e   : > { %v3097_v24 = vpop.f32.mrf.mxu1 }
 0x45f   : > { %v3276_v17 = vpop.f32.mrf.mxu2  ;;  %v3500_v16 = vpop.f32.mrf.mxu3 }
 0x460   : > { %v3277_v15 = vadd.f32 %v3276_v17, %v3094_v18  ;;  %v3534_v45 = vadd.f32 %v3500_v16, %v3275_v13 }
 0x461   : > { %v3754_v10 = vpop.f32.mrf.mxu0  ;;  %5644 = vmatmul.msk.bf16.gmra.mxu1 %vm3048_vm15, %v6354_v5 }
 0x462   : > { %v7641_v9 = vadd.f32 %v3754_v10, %v3534_v45 }
 0x464   : > { %5696 = vmatmul.msk.bf16.gmra.mxu2 %vm3048_vm15, %v4024_v27  ;;  %5735 = vmatmul.msk.bf16.gmra.mxu0 %vm3048_vm15, %v6364_v30  ;;  %v7670_v30 = vld [vmem:[#allocation3 + $0x48] sm:$0xff]  }
 0x466   : > { %v3099_v39 = vpop.f32.mrf.mxu1 }
 0x467   : > { %v3279_v54 = vpop.f32.mrf.mxu2  ;;  %v3502_v29 = vpop.f32.mrf.mxu3 }
 0x468   : > { %v3280_v52 = vadd.f32 %v3279_v54, %v3097_v24  ;;  %v3535_v3 = vadd.f32 %v3502_v29, %v3277_v15  ;;  %v4040_v24 = vsel %vm1443_vm13, %v4035_v59, %v4039_v49 }
 0x469   : > { %v3756_v48 = vpop.f32.mrf.mxu0 }
 0x46a   : > { %v7646_v22 = vadd.f32 %v3756_v48, %v3535_v3  ;;  %v4294_v3 = vshrl.u32 %v7670_v30, 16  ;;  %v4297_v48 = vshll.u32 %v7670_v30, 16 }
 0x46c   : > { %5716 = vmatmul.msk.bf16.gmra.mxu3 %vm3048_vm15, %v7569_v47  ;;  %v5919_v47 = vld [vmem:[#allocation5 + $0xc0] sm:$0xff]  ;;  %v4296_v46 = vrot.slane %v4294_v3, 3 }
 0x46d   : > { %4724 = vmatpush.bf16.msra.mxu1 %v5919_v47 }
 0x46e   : > { %v3102_v21 = vpop.f32.mrf.mxu1 }
 0x46f   : > { %v3281_v4 = vpop.f32.mrf.mxu2  ;;  %v3505_v20 = vpop.f32.mrf.mxu3 }
 0x470   : > { %v3282_v62 = vadd.f32 %v3281_v4, %v3099_v39  ;;  %v3536_v8 = vadd.f32 %v3505_v20, %v3280_v52  ;;  %v6359_v39 = vld [vmem:[#allocation3 + $0x3c] sm:$0xff]   ;;  %v4047_v52 = vrot.slane %v4045_v57, 1  ;;  %v4043_v4 = vor.u32 %v4041_v36, %v4039_v49 }
 0x471   : > { %v3759_v14 = vpop.f32.mrf.mxu0  ;;  %5645 = vmatmul.msk.bf16.gmra.mxu1 %vm3048_vm15, %v6356_v38  ;;  %v3938_v38 = vld [vmem:[#allocation3 + $0x4c] sm:$0x1] }
 0x472   : > { %v7651_v33 = vadd.f32 %v3759_v14, %v3536_v8  ;;  %v4048_v42 = vsel %vm1443_vm13, %v4043_v4, %v4047_v52  ;;  %v3979_v8 = vunpack.c.l.b16 %v3938_v38  ;;  %v4180_v14 = vld [vmem:[#allocation3 + $0x50] sm:$0xf] }
 0x474   : > { %5697 = vmatmul.msk.bf16.gmra.mxu2 %vm3048_vm15, %v4032_v0  ;;  %5736 = vmatmul.msk.bf16.gmra.mxu0 %vm3048_vm15, %v6366_v58 }
 0x476   : > { %v3104_v11 = vpop.f32.mrf.mxu1 }
 0x477   : > { %v3284_v23 = vpop.f32.mrf.mxu2  ;;  %v3507_v41 = vpop.f32.mrf.mxu3 }
 0x478   : > { %v3285_v25 = vadd.f32 %v3284_v23, %v3102_v21  ;;  %v3537_v37 = vadd.f32 %v3507_v41, %v3282_v62  ;;  %v4299_v62 = vrot.slane %v4297_v48, 4  ;;  %v3988_v23 = vpack.c.b16 %v3979_v8, %v3979_v8 }
 0x479   : > { %v3761_v35 = vpop.f32.mrf.mxu0  ;;  %v4221_v41 = vunpack.c.l.b16 %v4180_v14 }
 0x47a   : > { %v7656_v50 = vadd.f32 %v3761_v35, %v3537_v37 }
 0x47c   : > { %5717 = vmatmul.msk.bf16.gmra.mxu3 %vm3048_vm15, %v7584_v31 }
 0x47e   : > { %v3107_v2 = vpop.f32.mrf.mxu1 }
 0x47f   : > { %v3286_v51 = vpop.f32.mrf.mxu2  ;;  %v3510_v18 = vpop.f32.mrf.mxu3 }
 0x480   : > { %v3538_v60 = vadd.f32 %v3510_v18, %v3285_v25  ;;  %v3287_v5 = vadd.f32 %v3286_v51, %v3104_v11  ;;  %v4300_v11 = vor.u32 %v4299_v62, %v4296_v46  ;;  %v4049_v18 = vshrl.u32 %v5901_v7, 16  ;;  %v5912_v7 = vld [vmem:[#allocation3 + $0x1c] sm:$0xff] }
 0x481   : > { %v3764_v13 = vpop.f32.mrf.mxu0  ;;  %5646 = vmatmul.msk.bf16.gmra.mxu1 %vm3048_vm15, %v6358_v44  ;;  %v4230_v44 = vpack.c.b16 %v4221_v41, %v4221_v41  ;;  %v6097_v62 = vunpack.c.h.b16 %v7670_v30 }
 0x482   : > { %v7661_v61 = vadd.f32 %v3764_v13, %v3538_v60  ;;  %v4301_v56 = vsel %vm1220_vm12, %v7595_v6, %v4300_v11  ;;  %v4051_v60 = vor.u32 %v4049_v18, %v4047_v52  ;;  %v6371_v6 = vld [vmem:[#allocation3 + $0x44] sm:$0xff]  }
 0x483   : > { %v4303_v59 = vshrl.u32 %v4230_v44, 16 }
 0x484   : > { %5698 = vmatmul.msk.bf16.gmra.mxu2 %vm3048_vm15, %v4040_v24  ;;  %5737 = vmatmul.msk.bf16.gmra.mxu0 %vm3048_vm15, %v6368_v28  ;;  %v4306_v28 = vshll.u32 %v4230_v44, 16 }
 0x486   : > { %v3109_v31 = vpop.f32.mrf.mxu1 }
 0x487   : > { %v3289_v17 = vpop.f32.mrf.mxu2  ;;  %v3512_v16 = vpop.f32.mrf.mxu3 }
 0x488   : > { %v3290_v34 = vadd.f32 %v3289_v17, %v3107_v2  ;;  %v3539_v15 = vadd.f32 %v3512_v16, %v3287_v5  ;;  %v4053_v2 = vshll.u32 %v3988_v23, 16  ;;  %v5911_v5 = vld [vmem:[#allocation3 + $0x14] sm:$0xff]  ;;  %v5913_v23 = vld [vmem:[#allocation3 + $0x24] sm:$0xff] }
 0x489   : > { %v3766_v45 = vpop.f32.mrf.mxu0  ;;  %v4610_v57 = vshll.u32 %v5911_v5, 16  ;;  %v4608_v38 = vshrl.u32 %v5911_v5, 16 }
 0x48a   : > { %v7666_v10 = vadd.f32 %v3766_v45, %v3539_v15  ;;  %v4055_v13 = vrot.slane %v4053_v2, 1  ;;  %v4308_v15 = vrot.slane %v4306_v28, 4 }
 0x48b   : > { %v4612_v48 = vrot.slane %v4610_v57, 1 }
 0x48c   : > { %5718 = vmatmul.msk.bf16.gmra.mxu3 %vm3048_vm15, %v7600_v40  ;;  %v6370_v40 = vld [vmem:[#allocation3 + $0x3c] sm:$0xff]   ;;  %v4056_v16 = vsel %vm1443_vm13, %v4051_v60, %v4055_v13 }
 0x48e   : > { %v3112_v27 = vpop.f32.mrf.mxu1 }
 0x48f   : > { %v3291_v54 = vpop.f32.mrf.mxu2  ;;  %v3515_v29 = vpop.f32.mrf.mxu3 }
 0x490   : > { %v3540_v1 = vadd.f32 %v3515_v29, %v3290_v34  ;;  %v3292_v58 = vadd.f32 %v3291_v54, %v3109_v31  ;;  %v4305_v34 = vrot.slane %v4303_v59, 3  ;;  %v4615_v29 = vshll.u32 %v5912_v7, 16 }
 0x491   : > { %v3769_v21 = vpop.f32.mrf.mxu0  ;;  %5647 = vmatmul.msk.bf16.gmra.mxu1 %vm3048_vm15, %v6359_v39 }
 0x492   : > { %v7675_v20 = vadd.f32 %v3769_v21, %v3540_v1  ;;  %v4617_v4 = vrot.slane %v4615_v29, 1 }
 0x494   : > { %5699 = vmatmul.msk.bf16.gmra.mxu2 %vm3048_vm15, %v4048_v42  ;;  %5738 = vmatmul.msk.bf16.gmra.mxu0 %vm3048_vm15, %v6370_v40  ;;  %v4613_v42 = vor.u32 %v4612_v48, %v4608_v38 }
 0x496   : > { %v3114_v19 = vpop.f32.mrf.mxu1 }
 0x497   : > { %v3294_v0 = vpop.f32.mrf.mxu2  ;;  %v3517_v47 = vpop.f32.mrf.mxu3 }
 0x498   : > { %v3295_v26 = vadd.f32 %v3294_v0, %v3112_v27  ;;  %v3541_v25 = vadd.f32 %v3517_v47, %v3292_v58 }
 0x499   : > { %v3771_v37 = vpop.f32.mrf.mxu0 }
 0x49a   : > { %v7680_v35 = vadd.f32 %v3771_v37, %v3541_v25 }
 0x49c   : > { %5719 = vmatmul.msk.bf16.gmra.mxu3 %vm3048_vm15, %v4301_v56  ;;  %v4623_v56 = vshll.u32 %v5913_v23, 16 }
 0x49e   : > { %v3117_v51 = vpop.f32.mrf.mxu1 }
 0x49f   : > { %v3296_v12 = vpop.f32.mrf.mxu2  ;;  %v3520_v49 = vpop.f32.mrf.mxu3 }
 0x4a0   : > { %v3542_v24 = vadd.f32 %v3520_v49, %v3295_v26  ;;  %v3297_v27 = vadd.f32 %v3296_v12, %v3114_v19  ;;  %v4618_v19 = vsel %vm1443_vm13, %v4613_v42, %v4617_v4  ;;  %v4619_v12 = vshrl.u32 %v5912_v7, 16 }
 0x4a1   : > { %5648 = vmatmul.msk.bf16.gmra.mxu1 %vm3048_vm15, %v7605_v43  ;;  %v3774_v31 = vpop.f32.mrf.mxu0  ;;  %v4309_v43 = vor.u32 %v4308_v15, %v4305_v34  ;;  %v4625_v49 = vrot.slane %v4623_v56, 1 }
 0x4a2   : > { %v7687_v17 = vadd.f32 %v3774_v31, %v3542_v24  ;;  %v4621_v13 = vor.u32 %v4619_v12, %v4617_v4  ;;  %v5916_v12 = vld [vmem:[#allocation3 + $0x3c] sm:$0xff] }
 0x4a3   : > { %v4310_v21 = vsel %vm1220_vm12, %v4300_v11, %v4309_v43  ;;  %v4432_v11 = vpack.c.b16 %v4221_v41, %v6097_v62  ;;  %v4627_v43 = vshrl.u32 %v5913_v23, 16 }
 0x4a4   : > { %5700 = vmatmul.msk.bf16.gmra.mxu2 %vm3048_vm15, %v4056_v16  ;;  %5739 = vmatmul.msk.bf16.gmra.mxu0 %vm3048_vm15, %v6371_v6  ;;  %v4626_v24 = vsel %vm1443_vm13, %v4621_v13, %v4625_v49  ;;  %v5914_v16 = vld [vmem:[#allocation3 + $0x2c] sm:$0xff]  ;;  %v4647_v13 = vshll.u32 %v5916_v12, 16 }
 0x4a5   : > { %v4631_v57 = vshll.u32 %v5914_v16, 16 }
 0x4a6   : > { %v3119_v45 = vpop.f32.mrf.mxu1 }
 0x4a7   : > { %v3299_v39 = vpop.f32.mrf.mxu2  ;;  %v3522_v54 = vpop.f32.mrf.mxu3  ;;  %v4633_v29 = vrot.slane %v4631_v57, 1 }
 0x4a8   : > { %v3300_v36 = vadd.f32 %v3299_v39, %v3117_v51  ;;  %v3543_v52 = vadd.f32 %v3522_v54, %v3297_v27 }
 0x4a9   : > { %v3776_v3 = vpop.f32.mrf.mxu0 }
 0x4aa   : > { %v7692_v1 = vadd.f32 %v3776_v3, %v3543_v52  ;;  %v4629_v52 = vor.u32 %v4627_v43, %v4625_v49 }
 0x4ac   : > { %5720 = vmatmul.msk.bf16.gmra.mxu3 %vm3048_vm15, %v4310_v21  ;;  %v4634_v38 = vsel %vm1443_vm13, %v4629_v52, %v4633_v29 }
 0x4ae   : > { %v3866_v40 = vpop.f32.mrf.mxu1 }
 0x4af   : > { %v3906_v46 = vadd.f32 %v3866_v40, %v7621_v53  ;;  %v3301_v8 = vpop.f32.mrf.mxu2  ;;  %v3525_v14 = vpop.f32.mrf.mxu3 }
 0x4b0   : > { %v3544_v58 = vadd.f32 %v3525_v14, %v3300_v36  ;;  %v3302_v25 = vadd.f32 %v3301_v8, %v3119_v45 }
 0x4b1   : > { %5785 = vmatmul.msk.bf16.vlgmr.msra.gmra.mxu1 %vm3048_vm15, %v4618_v19  ;;  %v3779_v0 = vpop.f32.mrf.mxu0 }
 0x4b2   : > { %v7700_v47 = vadd.f32 %v3779_v0, %v3544_v58 }
 0x4b4   : > { %5740 = vmatmul.msk.bf16.gmra.mxu0 %vm3048_vm15, %v4432_v11 }
 0x4b6   : > { %v3868_v26 = vpop.f32.mrf.mxu1 }
 0x4b7   : > { %v3907_v53 = vadd.f32 %v3868_v26, %v7626_v32  ;;  %v4108_v37 = vpop.f32.mrf.mxu2  ;;  %v3527_v30 = vpop.f32.mrf.mxu3  ;;  %v4635_v26 = vshrl.u32 %v5914_v16, 16 }
 0x4b8   : > { %v4148_v2 = vadd.f32 %v4108_v37, %v3906_v46  ;;  %v3545_v44 = vadd.f32 %v3527_v30, %v3302_v25  ;;  %v5915_v46 = vld [vmem:[#allocation3 + $0x34] sm:$0xff] }
 0x4b9   : > { %v3781_v51 = vpop.f32.mrf.mxu0  ;;  %v4639_v58 = vshll.u32 %v5915_v46, 16  ;;  %v4637_v37 = vor.u32 %v4635_v26, %v4633_v29  ;;  %v4556_v29 = vld [vmem:[#allocation3 + $0x54] sm:$0x1] }
 0x4ba   : > { %v7704_v18 = vadd.f32 %v3781_v51, %v3545_v44 }
 0x4bb   : > { %v4641_v25 = vrot.slane %v4639_v58, 1 }
 0x4be   : > { %v3871_v60 = vpop.f32.mrf.mxu1 }
 0x4bf   : > { %v3908_v41 = vadd.f32 %v3871_v60, %v7631_v55  ;;  %v4110_v59 = vpop.f32.mrf.mxu2  ;;  %v4362_v28 = vpop.f32.mrf.mxu3 }
 0x4c0   : > { %v4149_v31 = vadd.f32 %v4110_v59, %v3907_v53  ;;  %v4402_v32 = vadd.f32 %v4362_v28, %v4148_v2  ;;  %v4642_v2 = vsel %vm1443_vm13, %v4637_v37, %v4641_v25  ;;  %v4649_v59 = vrot.slane %v4647_v13, 1 }
 0x4c1   : > { %5786 = vmatmul.msk.bf16.gmra.mxu1 %vm3048_vm15, %v4626_v24  ;;  %v4484_v5 = vpop.f32.mrf.mxu0 }
 0x4c2   : > { %v7709_v6 = vadd.f32 %v4484_v5, %v4402_v32  ;;  %v5917_v32 = vld [vmem:[#allocation3 + $0x44] sm:$0xff] }
 0x4c6   : > { %v3873_v34 = vpop.f32.mrf.mxu1 }
 0x4c7   : > { %v3909_v15 = vadd.f32 %v3873_v34, %v7636_v63  ;;  %v4113_v7 = vpop.f32.mrf.mxu2  ;;  %v4364_v45 = vpop.f32.mrf.mxu3  ;;  %v4655_v34 = vshll.u32 %v5917_v32, 16 }
 0x4c8   : > { %v4150_v27 = vadd.f32 %v4113_v7, %v3908_v41  ;;  %v4403_v55 = vadd.f32 %v4364_v45, %v4149_v31  ;;  %v4643_v41 = vshrl.u32 %v5915_v46, 16 }
 0x4c9   : > { %v4486_v39 = vpop.f32.mrf.mxu0 }
 0x4ca   : > { %v7712_v54 = vadd.f32 %v4486_v39, %v4403_v55 }
 0x4ce   : > { %v3876_v36 = vpop.f32.mrf.mxu1 }
 0x4cf   : > { %v3910_v3 = vadd.f32 %v3876_v36, %v7641_v9  ;;  %v4115_v48 = vpop.f32.mrf.mxu2  ;;  %v4367_v21 = vpop.f32.mrf.mxu3 }
 0x4d0   : > { %v4151_v4 = vadd.f32 %v4115_v48, %v3909_v15  ;;  %v4404_v63 = vadd.f32 %v4367_v21, %v4150_v27  ;;  %v4657_v15 = vrot.slane %v4655_v34, 1  ;;  %v5918_v27 = vld [vmem:[#allocation3 + $0x4c] sm:$0xff]  ;;  %v4597_v48 = vunpack.c.l.b16 %v4556_v29 }
 0x4d1   : > { %5787 = vmatmul.msk.bf16.gmra.mxu1 %vm3048_vm15, %v4634_v38  ;;  %v4489_v40 = vpop.f32.mrf.mxu0  ;;  %v4663_v43 = vshll.u32 %v5918_v27, 16 }
 0x4d2   : > { %v7717_v42 = vadd.f32 %v4489_v40, %v4404_v63  ;;  %v4606_v38 = vpack.c.b16 %v4597_v48, %v4597_v48  ;;  %v4667_v63 = vshrl.u32 %v5918_v27, 16 }
 0x4d3   : > { %v4665_v52 = vrot.slane %v4663_v43, 1 }
 0x4d4   : > { %v4671_v40 = vshll.u32 %v4606_v38, 16 }
 0x4d5   : > { %v4669_v46 = vor.u32 %v4667_v63, %v4665_v52 }
 0x4d6   : > { %v3878_v62 = vpop.f32.mrf.mxu1 }
 0x4d7   : > { %v7720_v8 = vadd.f32 %v3878_v62, %v7646_v22  ;;  %v4118_v14 = vpop.f32.mrf.mxu2  ;;  %v4369_v19 = vpop.f32.mrf.mxu3  ;;  %v4673_v62 = vrot.slane %v4671_v40, 1 }
 0x4d8   : > { %v4152_v9 = vadd.f32 %v4118_v14, %v3910_v3  ;;  %v4405_v0 = vadd.f32 %v4369_v19, %v4151_v4 }
 0x4d9   : > { %v4491_v11 = vpop.f32.mrf.mxu0  ;;  %v4674_v19 = vsel %vm1443_vm13, %v4669_v46, %v4673_v62 }
 0x4da   : > { %v7722_v23 = vadd.f32 %v4491_v11, %v4405_v0 }
 0x4de   : > { %v3881_v53 = vpop.f32.mrf.mxu1 }
 0x4df   : > { %v7725_v30 = vadd.f32 %v3881_v53, %v7651_v33  ;;  %v4372_v56 = vpop.f32.mrf.mxu3  ;;  %v4645_v33 = vor.u32 %v4643_v41, %v4641_v25  ;;  %v4120_v25 = vpop.f32.mrf.mxu2 }
 0x4e0   : > { %v4406_v22 = vadd.f32 %v4372_v56, %v4152_v9 }
 0x4e1   : > { %5788 = vmatmul.msk.bf16.gmra.mxu1 %vm3048_vm15, %v4642_v2  ;;  %v4494_v44 = vpop.f32.mrf.mxu0  ;;  %v4650_v31 = vsel %vm1443_vm13, %v4645_v33, %v4649_v59 }
 0x4e2   : > { %v7729_v51 = vadd.f32 %v4494_v44, %v4406_v22 }
 0x4e6   : > { %v3883_v49 = vpop.f32.mrf.mxu1 }
 0x4e7   : > { %v7732_v60 = vadd.f32 %v3883_v49, %v7656_v50  ;;  %v4651_v50 = vshrl.u32 %v5916_v12, 16  ;;  %v4374_v37 = vpop.f32.mrf.mxu3  ;;  %v4123_v49 = vpop.f32.mrf.mxu2 }
 0x4e8   : > { %v4154_v43 = vadd.f32 %v4123_v49, %v7725_v30 }
 0x4e9   : > { %v4653_v45 = vor.u32 %v4651_v50, %v4649_v59  ;;  %v4496_v22 = vpop.f32.mrf.mxu0  ;;  %v4153_v50 = vadd.f32 %v4120_v25, %v7720_v8 }
 0x4ee   : > { %v3886_v28 = vpop.f32.mrf.mxu1 }
 0x4ef   : > { %v7735_v24 = vadd.f32 %v3886_v28, %v7661_v61  ;;  %v4658_v61 = vsel %vm1443_vm13, %v4653_v45, %v4657_v15 }
 0x4f1   : > { %5789 = vmatmul.msk.bf16.gmra.mxu1 %vm3048_vm15, %v4650_v31  ;;  %v4499_v59 = vpop.f32.mrf.mxu0  ;;  %v4125_v31 = vpop.f32.mrf.mxu2 }
 0x4f2   : > { %v4155_v38 = vadd.f32 %v4125_v31, %v7732_v60 }
 0x4f6   : > { %v3888_v5 = vpop.f32.mrf.mxu1 }
 0x4f7   : > { %v7740_v16 = vadd.f32 %v3888_v5, %v7666_v10  ;;  %v4659_v10 = vshrl.u32 %v5917_v32, 16 }
 0x4f9   : > { %v4661_v36 = vor.u32 %v4659_v10, %v4657_v15  ;;  %v4407_v15 = vadd.f32 %v4374_v37, %v4153_v50  ;;  %v4501_v45 = vpop.f32.mrf.mxu0 }
 0x4fb   : > { %v4529_v27 = vadd.f32 %v4496_v22, %v4407_v15 }
 0x4fe   : > { %v3891_v7 = vpop.f32.mrf.mxu1 }
 0x4ff   : > { %v7743_v57 = vadd.f32 %v3891_v7, %v7675_v20  ;;  %v4666_v20 = vsel %vm1443_vm13, %v4661_v36, %v4665_v52 }
 0x501   : > { %5790 = vmatmul.msk.bf16.gmra.mxu1 %vm3048_vm15, %v4658_v61  ;;  %v4504_v48 = vpop.f32.mrf.mxu0 }
 0x506   : > { %v3893_v55 = vpop.f32.mrf.mxu1 }
 0x507   : > { %v7748_v39 = vadd.f32 %v3893_v55, %v7680_v35  ;;  %v4128_v55 = vpop.f32.mrf.mxu2 }
 0x50e   : > { %v3896_v3 = vpop.f32.mrf.mxu1 }
 0x50f   : > { %v7751_v21 = vadd.f32 %v3896_v3, %v7687_v17  ;;  %v4130_v63 = vpop.f32.mrf.mxu2 }
 0x511   : > { %5791 = vmatmul.msk.bf16.gmra.mxu1 %vm3048_vm15, %v4666_v20 }
 0x516   : > { %v3898_v4 = vpop.f32.mrf.mxu1 }
 0x517   : > { %v7756_v35 = vadd.f32 %v3898_v4, %v7692_v1  ;;  %v4133_v25 = vpop.f32.mrf.mxu2 }
 0x51e   : > { %v3901_v14 = vpop.f32.mrf.mxu1 }
 0x51f   : > { %v7760_v58 = vadd.f32 %v3901_v14, %v7700_v47 }
 0x521   : > { %5792 = vmatmul.msk.bf16.gmra.mxu1 %vm3048_vm15, %v4674_v19  ;;  %v4506_v19 = vpop.f32.mrf.mxu0 }
 0x526   : > { %v3903_v17 = vpop.f32.mrf.mxu1 }
 0x527   : > { %v7764_v9 = vadd.f32 %v3903_v17, %v7704_v18 }
 0x52e   : > { %v4726_v0 = vpop.f32.mrf.mxu1 }
 0x52f   : > { %v4766_v11 = vadd.f32 %v4726_v0, %v7709_v6  ;;  %v4377_v6 = vpop.f32.mrf.mxu3  ;;  %v4156_v0 = vadd.f32 %v4128_v55, %v7735_v24 }
 0x530   : > { %v4408_v36 = vadd.f32 %v4377_v6, %v4154_v43 }
 0x531   : > { %v4798_v56 = vsel %vm3048_vm15, %v4766_v11, 0.0 }
 0x532   : > { %v4530_v20 = vadd.f32 %v4499_v59, %v4408_v36 }
 0x536   : > { %v4728_v26 = vpop.f32.mrf.mxu1 }
 0x537   : > { %v4767_v1 = vadd.f32 %v4728_v26, %v7712_v54  ;;  %v4379_v5 = vpop.f32.mrf.mxu3 }
 0x538   : > { %v4409_v40 = vadd.f32 %v4379_v5, %v4155_v38 }
 0x539   : > { %v4783_v53 = vmul.f32 0.0, %v4767_v1 }
 0x53a   : > { %v4531_v30 = vadd.f32 %v4501_v45, %v4409_v40 }
 0x53b   : > { %v4799_v47 = vsel %vm3048_vm15, %v4783_v53, 0.0 }
 0x53c   : > { %v4800_v2 = vadd.f32 %v4799_v47, %v4798_v56 }
 0x53e   : > { %v4731_v44 = vpop.f32.mrf.mxu1 }
 0x53f   : > { %v4768_v12 = vadd.f32 %v4731_v44, %v7717_v42  ;;  %v4382_v29 = vpop.f32.mrf.mxu3  ;;  %v4509_v44 = vpop.f32.mrf.mxu0 }
 0x540   : > { %v4410_v26 = vadd.f32 %v4382_v29, %v4156_v0 }
 0x541   : > { %v4801_v18 = vsel %vm3048_vm15, %v4768_v12, 0.0 }
 0x542   : > { %v4802_v13 = vadd.f32 %v4801_v18, %v4800_v2  ;;  %v4532_v56 = vadd.f32 %v4504_v48, %v4410_v26  ;;  %v4157_v2 = vadd.f32 %v4130_v63, %v7740_v16 }
 0x546   : > { %v4733_v41 = vpop.f32.mrf.mxu1 }
 0x547   : > { %v4769_v54 = vadd.f32 %v4733_v41, %v7722_v23  ;;  %v4384_v62 = vpop.f32.mrf.mxu3  ;;  %v4511_v31 = vpop.f32.mrf.mxu0 }
 0x548   : > { %v4411_v12 = vadd.f32 %v4384_v62, %v4157_v2 }
 0x549   : > { %v4785_v28 = vmul.f32 0.0, %v4769_v54  ;;  %v4158_v54 = vadd.f32 %v4133_v25, %v7743_v57 }
 0x54a   : > { %v4533_v24 = vadd.f32 %v4506_v19, %v4411_v12 }
 0x54b   : > { %v4803_v33 = vsel %vm3048_vm15, %v4785_v28, 0.0 }
 0x54c   : > { %v4804_v32 = vadd.f32 %v4803_v33, %v4802_v13  ;;  %v4135_v13 = vpop.f32.mrf.mxu2 }
 0x54e   : > { %v4736_v34 = vpop.f32.mrf.mxu1 }
 0x54f   : > { %v4770_v42 = vadd.f32 %v4736_v34, %v7729_v51  ;;  %v4387_v37 = vpop.f32.mrf.mxu3  ;;  %v4514_v55 = vpop.f32.mrf.mxu0 }
 0x550   : > { %v4412_v28 = vadd.f32 %v4387_v37, %v4158_v54 }
 0x551   : > { %v4805_v7 = vsel %vm3048_vm15, %v4770_v42, 0.0  ;;  %v4159_v42 = vadd.f32 %v4135_v13, %v7748_v39 }
 0x552   : > { %v4806_v61 = vadd.f32 %v4805_v7, %v4804_v32  ;;  %v4534_v16 = vadd.f32 %v4509_v44, %v4412_v28 }
 0x554   : > { %v4138_v34 = vpop.f32.mrf.mxu2 }
 0x555   : > { %v4160_v43 = vadd.f32 %v4138_v34, %v7751_v21 }
 0x556   : > { %v4738_v23 = vpop.f32.mrf.mxu1 }
 0x557   : > { %v4771_v10 = vadd.f32 %v4738_v23, %v4529_v27  ;;  %v4389_v6 = vpop.f32.mrf.mxu3 }
 0x558   : > { %v4413_v45 = vadd.f32 %v4389_v6, %v4159_v42 }
 0x559   : > { %v4787_v52 = vmul.f32 0.0, %v4771_v10 }
 0x55a   : > { %v4535_v57 = vadd.f32 %v4511_v31, %v4413_v45 }
 0x55b   : > { %v4807_v3 = vsel %vm3048_vm15, %v4787_v52, 0.0 }
 0x55c   : > { %v4808_v8 = vadd.f32 %v4807_v3, %v4806_v61  ;;  %v4140_v29 = vpop.f32.mrf.mxu2 }
 0x55d   : > { %v4161_v38 = vadd.f32 %v4140_v29, %v7756_v35  ;;  %v5922_v29 = vld [vmem:[%s7954_s7] sm:$0xff] }
 0x55e   : > { %v4741_v51 = vpop.f32.mrf.mxu1  ;;  %4898 = vmatpush.bf16.msrb.mxu2 %v5922_v29  ;;  %v5926_v29 = vld [vmem:[%s8013_s20] sm:$0xff] }
 0x55f   : > { %v4772_v4 = vadd.f32 %v4741_v51, %v4530_v20  ;;  %v4392_v7 = vpop.f32.mrf.mxu3  ;;  %v4516_v20 = vpop.f32.mrf.mxu0 }
 0x560   : > { %v4414_v36 = vadd.f32 %v4392_v7, %v4160_v43 }
 0x561   : > { %v4809_v46 = vsel %vm3048_vm15, %v4772_v4, 0.0 }
 0x562   : > { %v4810_v14 = vadd.f32 %v4809_v46, %v4808_v8  ;;  %v4536_v39 = vadd.f32 %v4514_v55, %v4414_v36  ;;  %v7810_v36 = vld [vmem:[%s6917_s29] sm:$0xff] }
 0x564   : > { %v4143_v46 = vpop.f32.mrf.mxu2 }
 0x565   : > { %v4162_v19 = vadd.f32 %v4143_v46, %v7760_v58  ;;  %v4952_v46 = vld [vmem:[%s7959_s12 + $0x8] sm:$0xff] }
 0x566   : > { %v4743_v17 = vpop.f32.mrf.mxu1 }
 0x567   : > { %v4773_v11 = vadd.f32 %v4743_v17, %v4531_v30  ;;  %v4394_v3 = vpop.f32.mrf.mxu3  ;;  %v4519_v0 = vpop.f32.mrf.mxu0 }
 0x568   : > { %v4415_v63 = vadd.f32 %v4394_v3, %v4161_v38 }
 0x569   : > { %v4789_v1 = vmul.f32 0.0, %v4773_v11 }
 0x56b   : > { %v4811_v53 = vsel %vm3048_vm15, %v4789_v1, 0.0 }
 0x56c   : > { %v4812_v60 = vadd.f32 %v4811_v53, %v4810_v14  ;;  %v4537_v14 = vadd.f32 %v4516_v20, %v4415_v63  ;;  %v4145_v25 = vpop.f32.mrf.mxu2  ;;  %v4908_v63 = vld [vmem:[%s7957_s10] sm:$0xff] }
 0x56e   : > { %v4746_v47 = vpop.f32.mrf.mxu1 }
 0x56f   : > { %v4774_v22 = vadd.f32 %v4746_v47, %v4532_v56  ;;  %v4397_v21 = vpop.f32.mrf.mxu3  ;;  %v4163_v56 = vadd.f32 %v4145_v25, %v7764_v9  ;;  %v4521_v44 = vpop.f32.mrf.mxu0  ;;  %v4836_v9 = vld [vmem:[%s7953_s6] sm:$0x1] }
 0x570   : > { %v4416_v11 = vadd.f32 %v4397_v21, %v4162_v19  ;;  %v5065_v21 = vld [vmem:[%s7962_s15 + $0x8] sm:$0xff] }
 0x571   : > { %v4813_v18 = vsel %vm3048_vm15, %v4774_v22, 0.0 }
 0x572   : > { %v4814_v49 = vadd.f32 %v4813_v18, %v4812_v60  ;;  %v4538_v35 = vadd.f32 %v4519_v0, %v4416_v11  ;;  %v708_v0 = vld [vmem:[%s614_s0] sm:$0x1] }
 0x576   : > { %v4748_v41 = vpop.f32.mrf.mxu1 }
 0x577   : > { %v4775_v59 = vadd.f32 %v4748_v41, %v4533_v24  ;;  %v4399_v37 = vpop.f32.mrf.mxu3 }
 0x578   : > { %v4417_v2 = vadd.f32 %v4399_v37, %v4163_v56 }
 0x579   : > { %v4791_v33 = vmul.f32 0.0, %v4775_v59 }
 0x57a   : > { %v4539_v58 = vadd.f32 %v4521_v44, %v4417_v2  ;;  %v5067_v44 = vld [vmem:[%s7962_s15 + $0x18] sm:$0xff] }
 0x57b   : > { %v4815_v32 = vsel %vm3048_vm15, %v4791_v33, 0.0 }
 0x57c   : > { %v4816_v5 = vadd.f32 %v4815_v32, %v4814_v49 }
 0x57e   : > { %v4751_v50 = vpop.f32.mrf.mxu1 }
 0x57f   : > { %v4776_v15 = vadd.f32 %v4751_v50, %v4534_v16 }
 0x581   : > { %v4817_v61 = vsel %vm3048_vm15, %v4776_v15, 0.0 }
 0x582   : > { %v4818_v27 = vadd.f32 %v4817_v61, %v4816_v5 }
 0x586   : > { %v4753_v23 = vpop.f32.mrf.mxu1 }
 0x587   : > { %v4777_v10 = vadd.f32 %v4753_v23, %v4535_v57 }
 0x589   : > { %v4793_v52 = vmul.f32 0.0, %v4777_v10 }
 0x58b   : > { %v4819_v48 = vsel %vm3048_vm15, %v4793_v52, 0.0  ;;  %v7813_v52 = vld [vmem:[%s6917_s29 + $0x8] sm:$0xff]  ;;  %s8017_s29 = sld [smem:[#allocation39_spill]] }
 0x58c   : > { %v4820_v8 = vadd.f32 %v4819_v48, %v4818_v27  ;;  %v4907_v3 = vpack.c.bf16 %v7813_v52, %v7810_v36  ;;  %v6706_v48 = vmov 0  }
 0x58d   : > { %6460 = vset.pattern.permute.xlu0 %v6706_v48  ;;  %6461 = vset.pattern.permute.xlu1 %v6706_v48 }
 0x58e   : > { %v4756_v51 = vpop.f32.mrf.mxu1  ;;  %4935 = vmatpush.bf16.msrb.mxu3 %v4907_v3 }
 0x58f   : > { %v4778_v4 = vadd.f32 %v4756_v51, %v4536_v39  ;;  %v5923_v39 = vld [vmem:[%s7956_s9] sm:$0xff] }
 0x591   : > { %v4821_v40 = vsel %vm3048_vm15, %v4778_v4, 0.0  ;;  %5802 = vmatmul.msk.bf16.vlgmr.msrb.gmra.mxu3 %vm1135_vm11, %v5923_v39 }
 0x592   : > { %v4822_v62 = vadd.f32 %v4821_v40, %v4820_v8  ;;  %v4909_v40 = vld [vmem:[%s7957_s10 + $0x8] sm:$0xff] }
 0x596   : > { %v4758_v30 = vpop.f32.mrf.mxu1 }
 0x597   : > { %v4779_v17 = vadd.f32 %v4758_v30, %v4537_v14  ;;  %v5066_v30 = vld [vmem:[%s7962_s15 + $0x10] sm:$0xff] }
 0x599   : > { %v4795_v26 = vmul.f32 0.0, %v4779_v17 }
 0x59b   : > { %v4823_v1 = vsel %vm3048_vm15, %v4795_v26, 0.0 }
 0x59c   : > { %v4824_v53 = vadd.f32 %v4823_v1, %v4822_v62  ;;  %v5064_v62 = vld [vmem:[%s7962_s15] sm:$0xff] }
 0x59e   : > { %v4761_v60 = vpop.f32.mrf.mxu1 }
 0x59f   : > { %v4780_v47 = vadd.f32 %v4761_v60, %v4538_v35 }
 0x5a1   : > { %v4825_v22 = vsel %vm3048_vm15, %v4780_v47, 0.0 }
 0x5a2   : > { %v4826_v12 = vadd.f32 %v4825_v22, %v4824_v53  ;;  %v4951_v22 = vld [vmem:[%s7959_s12] sm:$0xff] }
 0x5a6   : > { %v4763_v18 = vpop.f32.mrf.mxu1 }
 0x5a7   : > { %v4781_v49 = vadd.f32 %v4763_v18, %v4539_v58 }
 0x5a9   : > { %v4797_v13 = vmul.f32 0.0, %v4781_v49  ;;  %v6099_v49 = vld [vmem:[%s7958_s11] sm:$0xff]  }
 0x5ab   : > { %v4827_v24 = vsel %vm3048_vm15, %v4797_v13, 0.0  ;;  %v6100_v13 = vunpack.c.l.bf16 %v6099_v49 }
 0x5ac   : > { %v4828_v6 = vadd.f32 %v4827_v24, %v4826_v12  ;;  %v4881_v12 = vld [vmem:[%s7955_s8] sm:$0x1]  ;;  %v6101_v24 = vunpack.c.h.bf16 %v6099_v49 }
 0x5ae   : > { %v4829_v41 = vrot.slane %v4828_v6, 4 }
 0x5b0   : > { %v4830_v54 = vadd.f32 %v4829_v41, %v4828_v6 }
 0x5b2   : > { %v4831_v59 = vrot.slane %v4830_v54, 2 }
 0x5b4   : > { %v4832_v28 = vadd.f32 %v4831_v59, %v4830_v54 }
 0x5b6   : > { %v4833_v33 = vrot.slane %v4832_v28, 1 }
 0x5b8   : > { %v4834_v31 = vadd.f32 %v4833_v33, %v4832_v28 }
 0x5ba   : > { %v4835_v32 = vmul.f32 0.015625, %v4834_v31  ;;  %v704_v31 = vld [vmem:[%s6899_s22 + $0x10] sm:$0xff] }
 0x5bc   : > { %v4837_v5 = vadd.f32 %v4836_v9, %v4835_v32  ;;  %v705_v9 = vld [vmem:[%s6899_s22 + $0x18] sm:$0xff] }
 0x5bd   : > { %v4987_v32 = vpack.c.bf16 %v705_v9, %v704_v31 }
 0x5be   : > { %v4851_v16 = vsel %vm4850_vm0, %v4837_v5, -inf  ;;  %v4839_v34 = vsel %vm4838_vm1, %v4837_v5, -inf }
 0x5bf   : > { %4852 = vmax.xlane.f32.xlu0 %v4851_v16  ;;  %4840 = vmax.xlane.f32.xlu2 %v4839_v34  ;;  %v703_v16 = vld [vmem:[%s6899_s22 + $0x8] sm:$0xff] }
 0x614   : > { %v4937_v35 = vpop.f32.mrf.mxu3 }
 0x61c   : > { %v4939_v56 = vpop.f32.mrf.mxu3 }
 0x632   : > { %v4853_v50 = vpop.xlane.xlu0 %4852  ;;  %v4841_v45 = vpop.xlane.xlu2 %4840 }
 0x633   : > { %v4854_v42 = vsub.f32 %v4837_v5, %v4853_v50  ;;  %v4842_v61 = vsub.f32 %v4837_v5, %v4841_v45 }
 0x635   : > { %v4855_v15 = vmul.f32 1.442695, %v4854_v42  ;;  %v4843_v27 = vmul.f32 1.442695, %v4842_v61 }
 0x637   : > { %6501 = vpow2.f32 %v4855_v15 }
 0x638   : > { %6503 = vpow2.f32 %v4843_v27 }
 0x639   : > { %6505 = vtanh.f32 %v4837_v5  ;;  %v702_v5 = vld [vmem:[%s6899_s22] sm:$0xff]  ;;  %s5152_s22 = sshll.u32 %s5149_s2, 4  ;;  %s5153_s22 = int_to_ptr.hbm [resolvable:$true] %s5152_s22 }
 0x63a   : > { %v4986_v34 = vpack.c.bf16 %v703_v16, %v702_v5  ;;  %s6609_s20 = sshra.s32 %s5153_s22, 4  ;;  %s6610_s20 = int_to_ptr.hbm [resolvable:$true] %s6609_s20 }
 0x63b   : > { %s6611_s0 = scalar_lea.hbm %s6610_s20, 32  ;;  %p6616_p3 = scmp.lt.s32.totalorder %s6610_s20, %s8015_s17 }
 0x63c   : > { %p6612_p13 = scmp.ne.s32.totalorder %s6610_s20, %s6611_s0  ;;  %p6617_p4 = scmp.lt.s32.totalorder %s6615_s30, %s6611_s0 }
 0x63d   : > { %v6502_v7 = vpop.eup %6501 }
 0x63e   : > { %4858 = vrot.lane.b32.xlu1 %v6502_v7, %s6705_s25  ;;  %v6504_v55 = vpop.eup %6503  ;;  %p6613_p0 = pnand %p6612_p13, %p6859_p11  ;;  %p6618_p7 = por %p6617_p4, %p6616_p3 }
 0x63f   : > { %v4845_v57 = vsel %vm4838_vm1, %v6504_v55, 0.0  ;;  %v6506_v10 = vpop.eup %6505 }
 0x640   : > { %p6614_p1 = pneg %p6613_p0 }
 0x642   : > { %p6619_p5 = pnand %p6618_p7, %p6614_p1 }
 0x668   : > { %4846 = vadd.xlane.f32.xlu1 %v4845_v57 }
 0x681   : > { %4955 = vperm.xlu1 %6461, %v4951_v22  }
 0x689   : > { %5085 = vperm.xlu1 %6461, %v5067_v44  }
 0x6b0   : > { %v4859_v23 = vpop.permute.xlu1 %4858 }
 0x6b1   : > { %v4861_v43 = vsel %vm4838_vm1, %v4859_v23, 0.0 }
 0x6b2   : > { %4862 = vadd.xlane.f32.xlu0 %v4861_v43  ;;  %v5928_v43 = vld [vmem:[%s8012_s27] sm:$0xff] }
 0x6c6   : > { %4869 = vrot.lane.b32.xlu0 %v6506_v10, %s6705_s25 }
 0x6db   : > { %v4847_v14 = vpop.xlane.xlu1 %4846 }
 0x725   : > { %v4863_v8 = vpop.xlane.xlu0 %4862 }
 0x726   : > { %6507 = vrcp.f32 %v4863_v8 }
 0x727   : > { %6509 = vrcp.f32 %v4847_v14 }
 0x72c   : > { %v6508_v20 = vpop.eup %6507 }
 0x72d   : > { %v4865_v51 = vmul.f32 %v6508_v20, %v6502_v7  ;;  %v6510_v19 = vpop.eup %6509  ;;  %v4956_v7 = vpop.permute.xlu1 %4955 }
 0x72e   : > { %v4849_v17 = vmul.f32 %v6510_v19, %v6504_v55 }
 0x730   : > { %v4867_v11 = vmul.f32 %v4849_v17, %v708_v0 }
 0x738   : > { %v4870_v38 = vpop.permute.xlu0 %4869 }
 0x739   : > { %v4872_v4 = vmul.f32 %v4870_v38, %v4865_v51 }
 0x73b   : > { %4874 = vrot.lane.b32.xlu0 %v4872_v4, %s6705_s25  ;;  %s8011_s25 = sld [smem:[#allocation36_spill]] }
 0x741   : > { %v5924_v50 = vld [vmem:[%s8011_s25] sm:$0xff]  ;;  %v5925_v15 = vld [vmem:[%s8011_s25 + $0x8] sm:$0xff] }
 0x743   : > { %4912 = vperm.xlu0 %6460, %v4908_v63  }
 0x74b   : > { %4917 = vperm.xlu0 %6460, %v4909_v40  }
 0x753   : > { %4960 = vperm.xlu0 %6460, %v4952_v46  }
 0x75b   : > { %5070 = vperm.xlu0 %6460, %v5064_v62  }
 0x763   : > { %5075 = vperm.xlu0 %6460, %v5065_v21  }
 0x76b   : > { %5080 = vperm.xlu0 %6460, %v5066_v30  }
 0x7ad   : > { %v4875_v26 = vpop.permute.xlu0 %4874 }
 0x7ae   : > { %v4877_v1 = vadd.f32 %v4875_v26, %v4867_v11 }
 0x7b0   : > { %v4878_v25 = vpack.c.bf16 %v4877_v1, %v4877_v1  ;;  %v5086_v1 = vpop.permute.xlu1 %5085 }
 0x7b2   : > { %5797 = vmatmul.msk.bf16.vlgmr.msrb.gmra.mxu2 %vm1135_vm11, %v4878_v25 }
 0x7b5   : > { %v4913_v53 = vpop.permute.xlu0 %4912 }
 0x7b6   : > { %v4938_v37 = vadd.f32 %v4937_v35, %v4913_v53  ;;  %v5102_v35 = vld [vmem:[%s8017_s29] sm:$0x1] }
 0x7bd   : > { %v4918_v60 = vpop.permute.xlu0 %4917 }
 0x7be   : > { %v4940_v47 = vadd.f32 %v4939_v56, %v4918_v60 }
 0x7c0   : > { %v4950_v2 = vpack.c.bf16 %v4940_v47, %v4938_v37 }
 0x7c2   : > { %4973 = vmatpush.bf16.msra.mxu2 %v4950_v2 }
 0x7c5   : > { %v4961_v61 = vpop.permute.xlu0 %4960 }
 0x7c6   : > { %5051 = vmatpush.bf16.msrb.mxu2 %v4987_v32 }
 0x7ca   : > { %5052 = vmatpush.bf16.msrb.mxu2 %v4986_v34 }
 0x7cd   : > { %v5071_v3 = vpop.permute.xlu0 %5070 }
 0x7d5   : > { %v5076_v38 = vpop.permute.xlu0 %5075 }
 0x7dd   : > { %v5081_v30 = vpop.permute.xlu0 %5080 }
 0x835   : > { %v4900_v58 = vpop.f32.mrf.mxu2 }
 0x836   : > { %v4901_v18 = vadd.f32 %v4900_v58, %v4881_v12 }
 0x838   : > { %6511 = vtanh.f32 %v4901_v18 }
 0x83d   : > { %v4902_v6 = vpop.f32.mrf.mxu2 }
 0x83e   : > { %v6512_v41 = vpop.eup %6511 }
 0x83f   : > { %v4946_v54 = vperm.slane %v6512_v41, 0 }
 0x841   : > { %v4947_v59 = vmul.f32 %v6100_v13, %v4946_v54  ;;  %v4948_v28 = vmul.f32 %v6101_v24, %v4946_v54 }
 0x843   : > { %v4949_v33 = vpack.c.bf16 %v4948_v28, %v4947_v59 }
 0x845   : > { %5803 = vmatmul.msk.bf16.vlgmr.msra.gmra.mxu2 %vm1135_vm11, %v4949_v33 }
 0x855   : > { %5822 = vmatmul.msk.bf16.vlgmr.msrb.gmra.mxu2 %vm5038_vm3, %v5924_v50 }
 0x865   : > { %5823 = vmatmul.msk.bf16.gmra.mxu2 %vm5038_vm3, %v5925_v15 }
 0x8c8   : > { %v4975_v42 = vpop.f32.mrf.mxu2 }
 0x8c9   : > { %v4976_v45 = vadd.f32 %v4975_v42, %v4956_v7 }
 0x8cb   : > { %v4980_v57 = vadd.f32 %v7810_v36, %v4976_v45  ;;  %v5927_v36 = vld [vmem:[%s8014_s14 + $0x8] sm:$0xff] }
 0x8d0   : > { %v4977_v27 = vpop.f32.mrf.mxu2 }
 0x8d1   : > { %v4978_v55 = vadd.f32 %v4977_v27, %v4961_v61 }
 0x8d3   : > { %v4981_v23 = vadd.f32 %v7813_v52, %v4978_v55 }
 0x8d5   : > { %v4992_v10 = vpack.c.bf16 %v4981_v23, %v4980_v57 }
 0x8d7   : > { %5016 = vmatpush.bf16.msra.mxu3 %v4992_v10 }
 0x8d8   : > { %v5054_v52 = vpop.f32.mrf.mxu2 }
 0x8da   : > { %5812 = vmatmul.msk.bf16.vlgmr.msra.gmra.mxu3 %vm1135_vm11, %v5926_v29 }
 0x8db   : > { %5116 = vmatpush.bf16.msrb.mxu3 %v5928_v43 }
 0x8e0   : > { %v5056_v39 = vpop.f32.mrf.mxu2 }
 0x8e8   : > { %v5059_v46 = vpop.f32.mrf.mxu2 }
 0x8ea   : > { %5813 = vmatmul.msk.bf16.gmra.mxu3 %vm1135_vm11, %v5927_v36 }
 0x8f0   : > { %v5061_v0 = vpop.f32.mrf.mxu2 }
 0x8fa   : > { %5828 = vmatmul.msk.bf16.vlgmr.msrb.gmra.mxu3 %vm1135_vm11, %v4878_v25 }
 0x95d   : > { %v5018_v48 = vpop.f32.mrf.mxu3 }
 0x95e   : > { %v5055_v8 = vadd.f32 %v5054_v52, %v5018_v48 }
 0x960   : > { %v5088_v20 = vadd.f32 %v5071_v3, %v5055_v8 }
 0x962   : > { %v5092_v51 = vadd.f32 %v5088_v20, %v702_v5 }
 0x964   : > { %5096 = vst.msk [vmem:[%s6919_s26] sm:$0xff] %vm709_vm2, %v5092_v51 }
 0x965   : > { %v5020_v4 = vpop.f32.mrf.mxu3 }
 0x966   : > { %v5057_v63 = vadd.f32 %v5056_v39, %v5020_v4 }
 0x968   : > { %v5089_v40 = vadd.f32 %v5076_v38, %v5057_v63 }
 0x96a   : > { %v5093_v62 = vadd.f32 %v5089_v40, %v703_v16 }
 0x96c   : > { %5097 = vst.msk [vmem:[%s6919_s26 + $0x8] sm:$0xff] %vm709_vm2, %v5093_v62 }
 0x96d   : > { %v5023_v21 = vpop.f32.mrf.mxu3 }
 0x96e   : > { %v5060_v14 = vadd.f32 %v5059_v46, %v5023_v21 }
 0x970   : > { %v5090_v19 = vadd.f32 %v5081_v30, %v5060_v14 }
 0x972   : > { %v5094_v17 = vadd.f32 %v5090_v19, %v704_v31 }
 0x974   : > { %5098 = vst.msk [vmem:[%s6919_s26 + $0x10] sm:$0xff] %vm709_vm2, %v5094_v17 }
 0x975   : > { %v5025_v11 = vpop.f32.mrf.mxu3 }
 0x976   : > { %v5062_v26 = vadd.f32 %v5061_v0, %v5025_v11 }
 0x978   : > { %v5091_v25 = vadd.f32 %v5086_v1, %v5062_v26 }
 0x97a   : > { %v5095_v53 = vadd.f32 %v5091_v25, %v705_v9 }
 0x97c   : > { %5099 = vst.msk [vmem:[%s6919_s26 + $0x18] sm:$0xff] %vm709_vm2, %v5095_v53 }
 0x97d   : > { %v5118_v37 = vpop.f32.mrf.mxu3 }
 0x97e   : > { %6622 = shalt.err (!%p6619_p5)
}
 0x97f   : > { %s6707_s26 = smov 128   ;;  %s6708_s18 = smov 8   ;;  %v5119_v60 = vadd.f32 %v5118_v37, %v5102_v35  ;;  %vm5131_vm2 = vcmask 57344  }
 0x980   : > { %6400 = dma.vmem_to_hbm [thread:$0]  (%p6859_p11), %s5151_s28, 512, %s5153_s22, %s5134_s16, %s6707_s26, %s6707_s26, %s6708_s18  }
 0x981   : > { %v5123_v56 = vmul.f32 0.044715, %v5119_v60  ;;  %s8018_s20 = sld [smem:[#allocation41_spill]]  ;;  %s5166_s13 = sshll.u32 %s606_s23, 4  ;;  %v5122_v18 = vmul.f32 0.5, %v5119_v60  ;;  %s5167_s13 = int_to_ptr.vmem [resolvable:$true] %s5166_s13 }
 0x982   : > { %s5139_s28 = scalar_lea.sflag [#allocation12], %s6895_s24 }
 0x983   : > { %v5124_v47 = vmul.f32 %v5123_v56, %v5119_v60 }
 0x985   : > { %v5125_v2 = vmul.f32 %v5124_v47, %v5119_v60  ;;  %v5120_v22 = vpop.f32.mrf.mxu3 }
 0x987   : > { %v5126_v44 = vadd.f32 %v5125_v2, %v5119_v60  ;;  %s8019_s19 = smov %s8018_s20  ;;  %s5164_s0 = scalar_lea.hbm %s8018_s20, %s6830_s1 }
 0x988   : > { %s5168_s30 = sshll.u32 %s5164_s0, 4  ;;  %s6643_s2 = scalar_lea.hbm %s8019_s19, 2  ;;  %s5169_s30 = int_to_ptr.hbm [resolvable:$true] %s5168_s30 }
 0x989   : > { %v5127_v12 = vmul.f32 0.7978846, %v5126_v44  ;;  %s6637_s22 = sshra.s32 %s5169_s30, 4  ;;  %s6638_s22 = int_to_ptr.hbm [resolvable:$true] %s6637_s22 }
 0x98a   : > { %s6639_s16 = scalar_lea.hbm %s6638_s22, 1  ;;  %p6644_p9 = scmp.lt.s32.totalorder %s6638_s22, %s8019_s19 }
 0x98b   : > { %6513 = vtanh.f32 %v5127_v12  ;;  %p6640_p8 = scmp.ne.s32.totalorder %s6638_s22, %s6639_s16  ;;  %p6645_p6 = scmp.lt.s32.totalorder %s6643_s2, %s6639_s16 }
 0x98d   : > { %p6641_p10 = pnand %p6640_p8, %p6859_p11  ;;  %p6646_p13 = por %p6645_p6, %p6644_p9 }
 0x98f   : > { %p6642_p2 = pneg %p6641_p10 }
 0x991   : > { %v6514_v58 = vpop.eup %6513  ;;  %p6647_p0 = pnand %p6646_p13, %p6642_p2 }
 0x992   : > { %v5129_v49 = vadd.f32 1.0, %v6514_v58 }
 0x994   : > { %v5130_v13 = vmul.f32 %v5129_v49, %v5122_v18 }
 0x996   : > { %5132 = vst.msk [vmem:[%s606_s23] sm:$0x1] %vm5131_vm2, %v5130_v13 }
 0x997   : > { %6650 = shalt.err (!%p6647_p0)
}
 0x998   : > { %6401 = dma.vmem_to_hbm [thread:$0]  (%p6859_p11), %s5167_s13, 16, %s5169_s30, %s5139_s28  }
 0x999 PF: > { %s8020_s24 = sld [smem:[#allocation24_spill]] }
 0x99a   : > { %s8022_s27 = sld [smem:[#allocation27_spill]] }
 0x99f   : > { %s5180_s29 = sand.u32 1, %s8020_s24  }
 0x9a0   : > { %p8023_p1 = scmp.ge.s32.totalorder %s8022_s27, 2  ;;  %s5181_s20 = scalar_lea.sflag [#allocation9], %s5180_s29 }
 0x9a2   : > { %p6409_p3 = pnand %p8023_p1, %p6863_p12 }
 0x9a4   : > { %p6410_p4 = pneg %p6409_p3 }
 0x9a6   : > { %6676 = dma.done.wait (%p6410_p4), %s5181_s20, 512  }
 0x9a7   : > { %6678 = vsyncadd (%p6410_p4), %s5181_s20, 4294966784  ;;  %s5191_s0 = scalar_lea.sflag [#allocation12], %s5180_s29 }
 0x9a8   : > { %6680 = dma.done.wait (%p6410_p4), %s5191_s0, 16  }
 0x9a9   : > { %6682 = vsyncadd (%p6410_p4), %s5191_s0, 4294967280  ;;  %s8024_s21 = sld [smem:[#allocation28_spill]] }
 0x9aa   : > { %s8025_s0 = sld [smem:[#allocation25_spill]] }
 0x9ab   : > { %s8026_s30 = sld [smem:[#allocation26_spill]] }
 0x9ac   : > { %s8027_s20 = sld [smem:[#allocation29_spill]] }
 0x9af   : > { %p36_p11 = scmp.ge.s32.totalorder %s8024_s21, 4  }
 0x9b1   :  { %38 = sbr.rel (!%p36_p11) target bundleno = 18 (0x12), region = 182 }
 0x9b6   :  { %5196 = vsyncpa [#allocation8], 1 }
 0x9b7   :  { %5198 = vsyncpa [#allocation8 + $0x1], 1 }
 0x9b8   :  { %5199 = vsyncpa [#allocation9], 1 }
 0x9b9   :  { %5201 = vsyncpa [#allocation9 + $0x1], 1 }
 0x9ba   :  { %5202 = vsyncpa [#allocation12], 1 }
 0x9bb   :  { %5204 = vsyncpa [#allocation12 + $0x1], 1 }
 0x9bc   :  { %5205 = vsyncmov [#allocation6] }
 0x9bf   :  { %s5206_s3 = vpop.sfrf %5205 }
 0x9c0   :  { %p5834_p12 = scmp.ne.s32.totalorder %s5206_s3, 0 }
 0x9c2   :  { %5210 = shalt.err (%p5834_p12)  }
 0x9c3   :  { %5212 = vsyncmov [#allocation6 + $0x1] }
 0x9c6   :  { %s5213_s13 = vpop.sfrf %5212 }
 0x9c7   :  { %p5835_p7 = scmp.ne.s32.totalorder %s5213_s13, 0 }
 0x9c9   :  { %5217 = shalt.err (%p5835_p7)  }

</bundles_post_ra>
